<compile_context>
chip_gen: v7x
topology: tpu7x:2x2x1
jax: 0.10.0
libtpu: 0.0.40
codegen_flags: <defaults>
</compile_context>

<pallas_src>
import math
import functools

import jax
import jax.numpy as jnp
from jax import lax
from jax.experimental import pallas as pl
from jax.experimental.pallas import tpu as pltpu

BBOX_XFORM_CLIP = math.log(1000.0 / 16.0)
OUT_LANES = 128          # lane-dense fused output width: [cls|x1|y1|x2|y2|pad]
HALO_ROWS = 3            # extra feature rows per H-tile (ky<=2 plus corner-tap slack)


def _round_up(x, m):
    return -(-x // m) * m


# ---------------------------------------------------------------------------
# Pallas kernel: fused RPN head (3x3 conv + 1x1 heads) + box decode + clip
# ---------------------------------------------------------------------------
def _make_fused_head_kernel(w_pad, c_in, num_a, p_rows, img_h, img_w, use_kx_fold):
    halo = HALO_ROWS * w_pad

    def kernel(xm_ref, xh_ref, w1_ref, b1_ref, wcat_ref, bcat_ref, anc_ref,
               out_ref, win_ref):
        # ---- assemble the halo'd window once in bf16 VMEM scratch.
        # Both stores land at sublane-aligned offsets (w_pad % 8 == 0); all conv
        # taps then read this Ref directly in bf16 (no f32 slab, no re-casts).
        win_ref[0:p_rows, :] = xm_ref[...]
        win_ref[p_rows:p_rows + halo, :] = xh_ref[...]

        # ---- 3x3 conv as shifted-slice matmuls (no im2col in HBM)
        acc = jnp.zeros((p_rows, c_in), jnp.float32)
        if use_kx_fold:
            # kx folded into the contraction: 3 matmuls of (P,3C)x(3C,C).
            # Contiguous lane placement (not a shuffle) because C % 128 == 0.
            for ky in range(3):
                base = ky * w_pad
                lhs = jnp.concatenate(
                    [win_ref[base + kx: base + kx + p_rows, :] for kx in range(3)],
                    axis=-1)
                acc = acc + jnp.dot(lhs,
                                    w1_ref[ky * 3 * c_in:(ky + 1) * 3 * c_in, :],
                                    preferred_element_type=jnp.float32)
        else:
            # generic path (toy C): 9 shifted (P,C)x(C,C) matmuls, bf16 in, f32 acc.
            for t in range(9):
                off = (t // 3) * w_pad + (t % 3)
                acc = acc + jnp.dot(win_ref[off: off + p_rows, :],
                                    w1_ref[t * c_in:(t + 1) * c_in, :],
                                    preferred_element_type=jnp.float32)
        hid = jnp.maximum(acc + b1_ref[...], 0.0)      # conv bias + ReLU (f32)

        # ---- fused 1x1 heads: one lane-dense (P, 128) matmul
        z = jnp.dot(hid.astype(jnp.bfloat16), wcat_ref[...],
                    preferred_element_type=jnp.float32) + bcat_ref[...]

        # ---- BoxCoder.decode (weights=(1,1,1,1)) + clip_boxes_to_image
        anc = anc_ref[...]                             # (P, 4A) coordinate-major
        ax1 = anc[:, 0 * num_a:1 * num_a]
        ay1 = anc[:, 1 * num_a:2 * num_a]
        ax2 = anc[:, 2 * num_a:3 * num_a]
        ay2 = anc[:, 3 * num_a:4 * num_a]
        aw = ax2 - ax1
        ah = ay2 - ay1
        acx = ax1 + 0.5 * aw
        acy = ay1 + 0.5 * ah

        cls = z[:, 0:num_a]
        dx = z[:, 1 * num_a:2 * num_a]
        dy = z[:, 2 * num_a:3 * num_a]
        dw = jnp.minimum(z[:, 3 * num_a:4 * num_a], BBOX_XFORM_CLIP)
        dh = jnp.minimum(z[:, 4 * num_a:5 * num_a], BBOX_XFORM_CLIP)

        pcx = dx * aw + acx
        pcy = dy * ah + acy
        pw = jnp.exp(dw) * aw
        ph = jnp.exp(dh) * ah

        px1 = jnp.clip(pcx - 0.5 * pw, 0.0, img_w)
        py1 = jnp.clip(pcy - 0.5 * ph, 0.0, img_h)
        px2 = jnp.clip(pcx + 0.5 * pw, 0.0, img_w)
        py2 = jnp.clip(pcy + 0.5 * ph, 0.0, img_h)

        pad = jnp.zeros((p_rows, OUT_LANES - 5 * num_a), jnp.float32)
        out_ref[...] = jnp.concatenate([cls, px1, py1, px2, py2, pad], axis=-1)

    return kernel


def rpn_head_decode_pallas(feats_nchw, params, image_size, anchors_hw, row_tile=8):
    """Fused RPN head + decode + clip.

    feats_nchw : (N, C, H, W) float32 features (PyTorch layout).
    anchors_hw : (H, W, A, 4) per-cell anchors (x1, y1, x2, y2).
    Returns objectness logits (N, H*W*A) and clipped proposals (N, H*W*A, 4).
    """
    n, c, h, w = feats_nchw.shape
    num_a = anchors_hw.shape[2]
    assert 5 * num_a <= OUT_LANES
    img_h, img_w = float(image_size[0]), float(image_size[1])

    w_pad = _round_up(w + 2, 8)          # ky offsets (0, w_pad, 2*w_pad) sublane-aligned
    nh = -(-h // row_tile)
    h_pad = nh * row_tile
    p_rows = row_tile * w_pad            # output rows per grid step (M-tile)
    halo_rows = HALO_ROWS * w_pad
    use_kx_fold = (c % 128 == 0)         # real torchvision RPN: C=256

    # ---- single layout pass: NCHW -> NHWC bf16 + zero pad.  Main tiles are a
    # free reshape (no halo duplication); only 3 rows per row_tile are gathered
    # into a small side array for the halo.
    x = jnp.transpose(feats_nchw, (0, 2, 3, 1)).astype(jnp.bfloat16)       # (N,H,W,C)
    xq = jnp.pad(x, ((0, 0), (1, h_pad - h + 2), (1, w_pad - w - 1), (0, 0)))
    xm = xq[:, :h_pad].reshape(n * nh * p_rows, c)                         # main tiles
    hrow = (jnp.arange(nh)[:, None] * row_tile + row_tile
            + jnp.arange(HALO_ROWS)[None, :]).reshape(-1)
    xh = xq[:, hrow].reshape(n * nh * halo_rows, c)                        # 3-row halos

    # ---- anchors: per-tile, coordinate-major ([x1(A)|y1(A)|x2(A)|y2(A)]),
    # NOT broadcast over the batch (index_map reuses the same tile for all b).
    anc_cm = jnp.transpose(anchors_hw, (0, 1, 3, 2)).reshape(h, w, 4 * num_a)
    anc_cm = jnp.pad(anc_cm, ((0, h_pad - h), (0, w_pad - w), (0, 0)))
    anc_cm = anc_cm.reshape(nh * p_rows, 4 * num_a).astype(jnp.float32)

    # ---- fused head weights: [w_cls(A) | w_dx(A) | w_dy(A) | w_dw(A) | w_dh(A)],
    # zero-padded to 128 lanes so the single output block is lane-dense.
    w_box_cm = params["w_box"].reshape(c, num_a, 4).transpose(0, 2, 1).reshape(c, 4 * num_a)
    b_box_cm = params["b_box"].reshape(num_a, 4).T.reshape(1, 4 * num_a)
    wcat = jnp.concatenate([params["w_cls"], w_box_cm], axis=1)
    bcat = jnp.concatenate([params["b_cls"], b_box_cm], axis=1)
    wcat = jnp.pad(wcat, ((0, 0), (0, OUT_LANES - 5 * num_a))).astype(jnp.bfloat16)
    bcat = jnp.pad(bcat, ((0, 0), (0, OUT_LANES - 5 * num_a))).astype(jnp.float32)
    w1 = params["w_conv"].astype(jnp.bfloat16)     # (9*C, C), rows = (ky, kx, cin)
    b1 = params["b_conv"].astype(jnp.float32)      # (1, C)

    # ---- VMEM budget derived from the actual blocks (double-buffered inputs/
    # output + window scratch + in-kernel f32 temporaries), not a flat constant.
    blk_bytes = (
        2 * p_rows * c * 2 + 2 * halo_rows * c * 2                      # xm, xh
        + 2 * p_rows * 4 * num_a * 4                                    # anchors
        + 2 * p_rows * OUT_LANES * 4                                    # output
        + 2 * (9 * c * c * 2 + c * 4 + c * OUT_LANES * 2 + OUT_LANES * 4)  # weights
        + (p_rows + halo_rows) * c * 2                                  # window scratch
        + 2 * p_rows * c * 4 + 4 * p_rows * OUT_LANES * 4               # acc/hid/epilogue
    )
    vmem_limit = max(16 << 20, min(int(blk_bytes * 1.5) + (2 << 20), 100 << 20))
    # TODO(synk): on v7x (64 MiB VMEM/TC) choose row_tile so blk_bytes stays
    # <= ~40 MiB (row_tile ~16-32 for C=256 maps); v5e/v6e can take 32-64.

    kernel = _make_fused_head_kernel(w_pad, c, num_a, p_rows, img_h, img_w, use_kx_fold)
    out = pl.pallas_call(
        kernel,
        out_shape=jax.ShapeDtypeStruct((n * nh * p_rows, OUT_LANES), jnp.float32),
        grid_spec=pltpu.PrefetchScalarGridSpec(
            num_scalar_prefetch=0,
            grid=(n, nh),
            in_specs=(
                pl.BlockSpec((p_rows, c), lambda b, t: (b * nh + t, 0)),       # main tile
                pl.BlockSpec((halo_rows, c), lambda b, t: (b * nh + t, 0)),    # halo rows
                pl.BlockSpec((9 * c, c), lambda b, t: (0, 0)),                 # conv weight
                pl.BlockSpec((1, c), lambda b, t: (0, 0)),                     # conv bias
                pl.BlockSpec((c, OUT_LANES), lambda b, t: (0, 0)),             # fused heads W
                pl.BlockSpec((1, OUT_LANES), lambda b, t: (0, 0)),             # fused heads b
                pl.BlockSpec((p_rows, 4 * num_a), lambda b, t: (t, 0)),        # anchors (shared over b)
            ),
            out_specs=pl.BlockSpec((p_rows, OUT_LANES), lambda b, t: (b * nh + t, 0)),
            scratch_shapes=[pltpu.VMEM((p_rows + halo_rows, c), jnp.bfloat16)],
        ),
        compiler_params=pltpu.CompilerParams(
            dimension_semantics=("parallel", "parallel"),
            vmem_limit_bytes=vmem_limit,
        ),
    )(xm, xh, w1, b1, wcat, bcat, anc_cm)

    # ---- strip padded rows/columns and split cls / decoded proposals.
    out = out.reshape(n, h_pad, w_pad, OUT_LANES)[:, :h, :w, :]          # (N,H,W,128)
    objectness = out[..., 0:num_a].reshape(n, h * w * num_a)
    coords = out[..., num_a:5 * num_a].reshape(n, h, w, 4, num_a)
    proposals = jnp.transpose(coords, (0, 1, 2, 4, 3)).reshape(n, h * w * num_a, 4)
    return objectness, proposals


# ---------------------------------------------------------------------------
# Plain-JAX glue: anchor generation, top-k, NMS (data-dependent / sequential).
# ---------------------------------------------------------------------------
def generate_anchors_grid(feat_h, feat_w, img_h, img_w,
                          sizes=(32.0,), aspect_ratios=(0.5, 1.0, 2.0)):
    scales = jnp.asarray(sizes, jnp.float32)
    ratios = jnp.asarray(aspect_ratios, jnp.float32)
    h_ratios = jnp.sqrt(ratios)
    w_ratios = 1.0 / h_ratios
    ws = (w_ratios[:, None] * scales[None, :]).reshape(-1)
    hs = (h_ratios[:, None] * scales[None, :]).reshape(-1)
    base = jnp.round(jnp.stack([-ws, -hs, ws, hs], axis=1) / 2.0)        # (A, 4)

    stride_h = img_h / feat_h
    stride_w = img_w / feat_w
    shifts_x = jnp.arange(feat_w, dtype=jnp.float32) * stride_w
    shifts_y = jnp.arange(feat_h, dtype=jnp.float32) * stride_h
    sy, sx = jnp.meshgrid(shifts_y, shifts_x, indexing="ij")
    shifts = jnp.stack([sx, sy, sx, sy], axis=-1)                        # (H, W, 4)
    return shifts[:, :, None, :] + base[None, None, :, :]                # (H, W, A, 4)


def _box_iou(b1, b2):
    area1 = (b1[:, 2] - b1[:, 0]) * (b1[:, 3] - b1[:, 1])
    area2 = (b2[:, 2] - b2[:, 0]) * (b2[:, 3] - b2[:, 1])
    lt = jnp.maximum(b1[:, None, :2], b2[None, :, :2])
    rb = jnp.minimum(b1[:, None, 2:], b2[None, :, 2:])
    wh = jnp.maximum(rb - lt, 0.0)
    inter = wh[..., 0] * wh[..., 1]
    return inter / (area1[:, None] + area2[None, :] - inter)


def _nms_single(boxes, scores, iou_thresh, min_size, post_nms_top_n):
    # TODO(synk): greedy NMS is sequential & data-dependent; kept in plain JAX.
    k = boxes.shape[0]
    ws = boxes[:, 2] - boxes[:, 0]
    hs = boxes[:, 3] - boxes[:, 1]
    valid = (ws >= min_size) & (hs >= min_size)          # remove_small_boxes
    ious = _box_iou(boxes, boxes)
    idx = jnp.arange(k)

    def body(i, state):
        keep, suppressed = state
        is_keep = jnp.logical_not(suppressed[i])
        keep = keep.at[i].set(is_keep)
        sup = is_keep & (ious[i] > iou_thresh) & (idx > i)
        return keep, suppressed | sup

    keep0 = jnp.zeros((k,), bool)
    keep, _ = lax.fori_loop(0, k, body, (keep0, jnp.logical_not(valid)))

    # kept boxes already in descending-score order (input came from top_k)
    order = jnp.argsort(jnp.logical_not(keep), stable=True)   # kept first
    sel = order[:post_nms_top_n]
    n_keep = jnp.minimum(jnp.sum(keep.astype(jnp.int32)), post_nms_top_n)
    mask = jnp.arange(post_nms_top_n) < n_keep
    out_boxes = jnp.where(mask[:, None], boxes[sel], 0.0)
    out_scores = jnp.where(mask, scores[sel], 0.0)
    return out_boxes, out_scores, n_keep


def filter_proposals(proposals, objectness, pre_nms_top_n, post_nms_top_n,
                     nms_thresh, min_size):
    """proposals: (N, total, 4) already decoded + clipped; objectness: (N, total)."""
    _, total = objectness.shape
    k = min(pre_nms_top_n, total)
    top_scores, top_idx = lax.top_k(objectness, k)                  # (N, k)
    top_boxes = jnp.take_along_axis(proposals, top_idx[:, :, None], axis=1)
    top_probs = jax.nn.sigmoid(top_scores)   # monotonic: box outputs unchanged
    nms_fn = functools.partial(_nms_single, iou_thresh=nms_thresh,
                               min_size=min_size, post_nms_top_n=post_nms_top_n)
    boxes, scores, counts = jax.vmap(nms_fn)(top_boxes, top_probs)
    return boxes, scores, counts


# ---------------------------------------------------------------------------
# Full RPN forward (inference / eval path; losses branch not implemented).
# ---------------------------------------------------------------------------
def rpn_forward(feats_nchw, params, image_size,
                pre_nms_top_n=256, post_nms_top_n=64,
                nms_thresh=0.7, min_size=0.001, row_tile=8):
    _, _, h, w = feats_nchw.shape
    anchors_hw = generate_anchors_grid(h, w, image_size[0], image_size[1])

    objectness, proposals = rpn_head_decode_pallas(
        feats_nchw, params, image_size, anchors_hw, row_tile=row_tile)

    boxes, scores, counts = filter_proposals(
        proposals, objectness, pre_nms_top_n, post_nms_top_n,
        nms_thresh, min_size)
    # TODO(synk): training branch (Matcher, BalancedPositiveNegativeSampler,
    # smooth-L1 / BCE losses) intentionally not implemented (inference only).
    losses = {}
    return boxes, scores, counts, losses


# ---------------------------------------------------------------------------
if __name__ == "__main__":
    key = jax.random.PRNGKey(0)
    N, C, H, W = 2, 16, 16, 16
    IMG_H, IMG_W = 128, 128
    A = 3  # 1 size x 3 aspect ratios

    k0, k1, k2, k3 = jax.random.split(key, 4)
    feats_nchw = jax.random.normal(k0, (N, C, H, W), jnp.float32)

    # Synthetic RPNHead weights (torchvision init: N(0, 0.01), zero bias).
    # w_conv rows are ordered (tap = ky*3 + kx, cin); from a torch conv weight
    # Wt[cout, cin, ky, kx] this is Wt.permute(2, 3, 1, 0).reshape(9*C, C).
    # w_box columns follow torchvision's per-anchor channel order
    # (dx, dy, dw, dh) for each anchor a; the wrapper re-lays it out.
    params = {
        "w_conv": jax.random.normal(k1, (9 * C, C), jnp.float32) * 0.01,
        "b_conv": jnp.zeros((1, C), jnp.float32),
        "w_cls":  jax.random.normal(k2, (C, A), jnp.float32) * 0.01,
        "b_cls":  jnp.zeros((1, A), jnp.float32),
        "w_box":  jax.random.normal(k3, (C, 4 * A), jnp.float32) * 0.01,
        "b_box":  jnp.zeros((1, 4 * A), jnp.float32),
    }

    boxes, scores, counts, losses = rpn_forward(
        feats_nchw, params, image_size=(IMG_H, IMG_W),
        pre_nms_top_n=256, post_nms_top_n=64, nms_thresh=0.7, min_size=0.001)

    jax.block_until_ready((boxes, scores, counts))
    assert boxes.shape == (N, 64, 4)
    assert scores.shape == (N, 64)
    print("KERNEL_OK")
</pallas_src>

<mosaic_0001>
module attributes {stable_mosaic.version = 11 : i64} {
  func.func @kernel(%arg0: i32, %arg1: i32, %arg2: memref<192x16xbf16, #tpu.memory_space<vmem>>, %arg3: memref<72x16xbf16, #tpu.memory_space<vmem>>, %arg4: memref<144x16xbf16, #tpu.memory_space<vmem>>, %arg5: memref<1x16xf32, #tpu.memory_space<vmem>>, %arg6: memref<16x128xbf16, #tpu.memory_space<vmem>>, %arg7: memref<1x128xf32, #tpu.memory_space<vmem>>, %arg8: memref<192x12xf32, #tpu.memory_space<vmem>>, %arg9: memref<192x128xf32, #tpu.memory_space<vmem>>, %arg10: memref<264x16xbf16, #tpu.memory_space<vmem>>) attributes {dimension_semantics = [#tpu.dimension_semantics<parallel>, #tpu.dimension_semantics<parallel>], iteration_bounds = array<i64: 2, 2>, scalar_prefetch = 0 : i64, scratch_operands = 1 : i64, tpu.core_type = #tpu.core_type<tc>, window_params = [{transform_indices = @transform_0, window_bounds = array<i64: 192, 16>}, {transform_indices = @transform_1, window_bounds = array<i64: 72, 16>}, {pipeline_mode = #tpu.pipeline_mode<synchronous>, transform_indices = @transform_2, window_bounds = array<i64: 144, 16>}, {pipeline_mode = #tpu.pipeline_mode<synchronous>, transform_indices = @transform_3, window_bounds = array<i64: 1, 16>}, {pipeline_mode = #tpu.pipeline_mode<synchronous>, transform_indices = @transform_4, window_bounds = array<i64: 16, 128>}, {pipeline_mode = #tpu.pipeline_mode<synchronous>, transform_indices = @transform_5, window_bounds = array<i64: 1, 128>}, {transform_indices = @transform_6, window_bounds = array<i64: 192, 12>}, {transform_indices = @transform_7, window_bounds = array<i64: 192, 128>}]} {
    %c0 = arith.constant 0 : index
    %c0_0 = arith.constant 0 : index
    %0 = vector.load %arg2[%c0, %c0_0] : memref<192x16xbf16, #tpu.memory_space<vmem>>, vector<192x16xbf16>
    %c0_1 = arith.constant 0 : index
    %c0_2 = arith.constant 0 : index
    %1 = vector.load %arg10[%c0_1, %c0_2] : memref<264x16xbf16, #tpu.memory_space<vmem>>, vector<192x16xbf16>
    tpu.vector_store %arg10[%c0_1, %c0_2], %0 {strides = array<i32>} : memref<264x16xbf16, #tpu.memory_space<vmem>>, vector<192x16xbf16>,
    %c0_3 = arith.constant 0 : index
    %c0_4 = arith.constant 0 : index
    %2 = vector.load %arg3[%c0_3, %c0_4] : memref<72x16xbf16, #tpu.memory_space<vmem>>, vector<72x16xbf16>
    %c192 = arith.constant 192 : index
    %c0_5 = arith.constant 0 : index
    %3 = vector.load %arg10[%c192, %c0_5] : memref<264x16xbf16, #tpu.memory_space<vmem>>, vector<72x16xbf16>
    tpu.vector_store %arg10[%c192, %c0_5], %2 {strides = array<i32>} : memref<264x16xbf16, #tpu.memory_space<vmem>>, vector<72x16xbf16>,
    %cst = arith.constant 0.000000e+00 : f32
    %4 = vector.broadcast %cst : f32 to vector<192x16xf32>
    %c0_6 = arith.constant 0 : index
    %c0_7 = arith.constant 0 : index
    %5 = vector.load %arg10[%c0_6, %c0_7] : memref<264x16xbf16, #tpu.memory_space<vmem>>, vector<192x16xbf16>
    %c0_8 = arith.constant 0 : index
    %c0_9 = arith.constant 0 : index
    %6 = vector.load %arg4[%c0_8, %c0_9] : memref<144x16xbf16, #tpu.memory_space<vmem>>, vector<16x16xbf16>
    %cst_10 = arith.constant dense<0.000000e+00> : vector<192x16xf32>
    %7 = tpu.matmul %5, %6, %cst_10 {dimension_numbers = #tpu.dot_dimension_numbers<[1], [0], [0], [1], [0, 0, 1, 1], [], []>} : vector<192x16xbf16>, vector<16x16xbf16>, vector<192x16xf32> -> vector<192x16xf32>
    %8 = arith.addf %4, %7 : vector<192x16xf32>
    %c1 = arith.constant 1 : index
    %c0_11 = arith.constant 0 : index
    %9 = vector.load %arg10[%c1, %c0_11] : memref<264x16xbf16, #tpu.memory_space<vmem>>, vector<192x16xbf16>
    %c16 = arith.constant 16 : index
    %c0_12 = arith.constant 0 : index
    %10 = vector.load %arg4[%c16, %c0_12] : memref<144x16xbf16, #tpu.memory_space<vmem>>, vector<16x16xbf16>
    %cst_13 = arith.constant dense<0.000000e+00> : vector<192x16xf32>
    %11 = tpu.matmul %9, %10, %cst_13 {dimension_numbers = #tpu.dot_dimension_numbers<[1], [0], [0], [1], [0, 0, 1, 1], [], []>} : vector<192x16xbf16>, vector<16x16xbf16>, vector<192x16xf32> -> vector<192x16xf32>
    %12 = arith.addf %8, %11 : vector<192x16xf32>
    %c2 = arith.constant 2 : index
    %c0_14 = arith.constant 0 : index
    %13 = vector.load %arg10[%c2, %c0_14] : memref<264x16xbf16, #tpu.memory_space<vmem>>, vector<192x16xbf16>
    %c32 = arith.constant 32 : index
    %c0_15 = arith.constant 0 : index
    %14 = vector.load %arg4[%c32, %c0_15] : memref<144x16xbf16, #tpu.memory_space<vmem>>, vector<16x16xbf16>
    %cst_16 = arith.constant dense<0.000000e+00> : vector<192x16xf32>
    %15 = tpu.matmul %13, %14, %cst_16 {dimension_numbers = #tpu.dot_dimension_numbers<[1], [0], [0], [1], [0, 0, 1, 1], [], []>} : vector<192x16xbf16>, vector<16x16xbf16>, vector<192x16xf32> -> vector<192x16xf32>
    %16 = arith.addf %12, %15 : vector<192x16xf32>
    %c24 = arith.constant 24 : index
    %c0_17 = arith.constant 0 : index
    %17 = vector.load %arg10[%c24, %c0_17] : memref<264x16xbf16, #tpu.memory_space<vmem>>, vector<192x16xbf16>
    %c48 = arith.constant 48 : index
    %c0_18 = arith.constant 0 : index
    %18 = vector.load %arg4[%c48, %c0_18] : memref<144x16xbf16, #tpu.memory_space<vmem>>, vector<16x16xbf16>
    %cst_19 = arith.constant dense<0.000000e+00> : vector<192x16xf32>
    %19 = tpu.matmul %17, %18, %cst_19 {dimension_numbers = #tpu.dot_dimension_numbers<[1], [0], [0], [1], [0, 0, 1, 1], [], []>} : vector<192x16xbf16>, vector<16x16xbf16>, vector<192x16xf32> -> vector<192x16xf32>
    %20 = arith.addf %16, %19 : vector<192x16xf32>
    %c25 = arith.constant 25 : index
    %c0_20 = arith.constant 0 : index
    %21 = vector.load %arg10[%c25, %c0_20] : memref<264x16xbf16, #tpu.memory_space<vmem>>, vector<192x16xbf16>
    %c64 = arith.constant 64 : index
    %c0_21 = arith.constant 0 : index
    %22 = vector.load %arg4[%c64, %c0_21] : memref<144x16xbf16, #tpu.memory_space<vmem>>, vector<16x16xbf16>
    %cst_22 = arith.constant dense<0.000000e+00> : vector<192x16xf32>
    %23 = tpu.matmul %21, %22, %cst_22 {dimension_numbers = #tpu.dot_dimension_numbers<[1], [0], [0], [1], [0, 0, 1, 1], [], []>} : vector<192x16xbf16>, vector<16x16xbf16>, vector<192x16xf32> -> vector<192x16xf32>
    %24 = arith.addf %20, %23 : vector<192x16xf32>
    %c26 = arith.constant 26 : index
    %c0_23 = arith.constant 0 : index
    %25 = vector.load %arg10[%c26, %c0_23] : memref<264x16xbf16, #tpu.memory_space<vmem>>, vector<192x16xbf16>
    %c80 = arith.constant 80 : index
    %c0_24 = arith.constant 0 : index
    %26 = vector.load %arg4[%c80, %c0_24] : memref<144x16xbf16, #tpu.memory_space<vmem>>, vector<16x16xbf16>
    %cst_25 = arith.constant dense<0.000000e+00> : vector<192x16xf32>
    %27 = tpu.matmul %25, %26, %cst_25 {dimension_numbers = #tpu.dot_dimension_numbers<[1], [0], [0], [1], [0, 0, 1, 1], [], []>} : vector<192x16xbf16>, vector<16x16xbf16>, vector<192x16xf32> -> vector<192x16xf32>
    %28 = arith.addf %24, %27 : vector<192x16xf32>
    %c48_26 = arith.constant 48 : index
    %c0_27 = arith.constant 0 : index
    %29 = vector.load %arg10[%c48_26, %c0_27] : memref<264x16xbf16, #tpu.memory_space<vmem>>, vector<192x16xbf16>
    %c96 = arith.constant 96 : index
    %c0_28 = arith.constant 0 : index
    %30 = vector.load %arg4[%c96, %c0_28] : memref<144x16xbf16, #tpu.memory_space<vmem>>, vector<16x16xbf16>
    %cst_29 = arith.constant dense<0.000000e+00> : vector<192x16xf32>
    %31 = tpu.matmul %29, %30, %cst_29 {dimension_numbers = #tpu.dot_dimension_numbers<[1], [0], [0], [1], [0, 0, 1, 1], [], []>} : vector<192x16xbf16>, vector<16x16xbf16>, vector<192x16xf32> -> vector<192x16xf32>
    %32 = arith.addf %28, %31 : vector<192x16xf32>
    %c49 = arith.constant 49 : index
    %c0_30 = arith.constant 0 : index
    %33 = vector.load %arg10[%c49, %c0_30] : memref<264x16xbf16, #tpu.memory_space<vmem>>, vector<192x16xbf16>
    %c112 = arith.constant 112 : index
    %c0_31 = arith.constant 0 : index
    %34 = vector.load %arg4[%c112, %c0_31] : memref<144x16xbf16, #tpu.memory_space<vmem>>, vector<16x16xbf16>
    %cst_32 = arith.constant dense<0.000000e+00> : vector<192x16xf32>
    %35 = tpu.matmul %33, %34, %cst_32 {dimension_numbers = #tpu.dot_dimension_numbers<[1], [0], [0], [1], [0, 0, 1, 1], [], []>} : vector<192x16xbf16>, vector<16x16xbf16>, vector<192x16xf32> -> vector<192x16xf32>
    %36 = arith.addf %32, %35 : vector<192x16xf32>
    %c50 = arith.constant 50 : index
    %c0_33 = arith.constant 0 : index
    %37 = vector.load %arg10[%c50, %c0_33] : memref<264x16xbf16, #tpu.memory_space<vmem>>, vector<192x16xbf16>
    %c128 = arith.constant 128 : index
    %c0_34 = arith.constant 0 : index
    %38 = vector.load %arg4[%c128, %c0_34] : memref<144x16xbf16, #tpu.memory_space<vmem>>, vector<16x16xbf16>
    %cst_35 = arith.constant dense<0.000000e+00> : vector<192x16xf32>
    %39 = tpu.matmul %37, %38, %cst_35 {dimension_numbers = #tpu.dot_dimension_numbers<[1], [0], [0], [1], [0, 0, 1, 1], [], []>} : vector<192x16xbf16>, vector<16x16xbf16>, vector<192x16xf32> -> vector<192x16xf32>
    %40 = arith.addf %36, %39 : vector<192x16xf32>
    %c0_36 = arith.constant 0 : index
    %c0_37 = arith.constant 0 : index
    %41 = vector.load %arg5[%c0_36, %c0_37] : memref<1x16xf32, #tpu.memory_space<vmem>>, vector<1x16xf32>
    %42 = vector.broadcast %41 : vector<1x16xf32> to vector<192x16xf32>
    %43 = arith.addf %40, %42 : vector<192x16xf32>
    %cst_38 = arith.constant 0.000000e+00 : f32
    %44 = vector.broadcast %cst_38 : f32 to vector<192x16xf32>
    %45 = arith.maximumf %43, %44 : vector<192x16xf32>
    %46 = arith.truncf %45 : vector<192x16xf32> to vector<192x16xbf16>
    %c0_39 = arith.constant 0 : index
    %c0_40 = arith.constant 0 : index
    %47 = vector.load %arg6[%c0_39, %c0_40] : memref<16x128xbf16, #tpu.memory_space<vmem>>, vector<16x128xbf16>
    %cst_41 = arith.constant dense<0.000000e+00> : vector<192x128xf32>
    %48 = tpu.matmul %46, %47, %cst_41 {dimension_numbers = #tpu.dot_dimension_numbers<[1], [0], [0], [1], [0, 0, 1, 1], [], []>} : vector<192x16xbf16>, vector<16x128xbf16>, vector<192x128xf32> -> vector<192x128xf32>
    %c0_42 = arith.constant 0 : index
    %c0_43 = arith.constant 0 : index
    %49 = vector.load %arg7[%c0_42, %c0_43] : memref<1x128xf32, #tpu.memory_space<vmem>>, vector<1x128xf32>
    %50 = vector.broadcast %49 : vector<1x128xf32> to vector<192x128xf32>
    %51 = arith.addf %48, %50 : vector<192x128xf32>
    %c0_44 = arith.constant 0 : index
    %c0_45 = arith.constant 0 : index
    %52 = vector.load %arg8[%c0_44, %c0_45] : memref<192x12xf32, #tpu.memory_space<vmem>>, vector<192x12xf32>
    %53 = vector.extract_strided_slice %52 {offsets = [0, 0], sizes = [192, 3], strides = [1, 1]} : vector<192x12xf32> to vector<192x3xf32>
    %54 = vector.extract_strided_slice %52 {offsets = [0, 3], sizes = [192, 3], strides = [1, 1]} : vector<192x12xf32> to vector<192x3xf32>
    %55 = vector.extract_strided_slice %52 {offsets = [0, 6], sizes = [192, 3], strides = [1, 1]} : vector<192x12xf32> to vector<192x3xf32>
    %56 = vector.extract_strided_slice %52 {offsets = [0, 9], sizes = [192, 3], strides = [1, 1]} : vector<192x12xf32> to vector<192x3xf32>
    %57 = arith.subf %55, %53 : vector<192x3xf32>
    %58 = arith.subf %56, %54 : vector<192x3xf32>
    %cst_46 = arith.constant 5.000000e-01 : f32
    %59 = vector.broadcast %cst_46 : f32 to vector<192x3xf32>
    %60 = arith.mulf %59, %57 : vector<192x3xf32>
    %61 = arith.addf %53, %60 : vector<192x3xf32>
    %cst_47 = arith.constant 5.000000e-01 : f32
    %62 = vector.broadcast %cst_47 : f32 to vector<192x3xf32>
    %63 = arith.mulf %62, %58 : vector<192x3xf32>
    %64 = arith.addf %54, %63 : vector<192x3xf32>
    %65 = vector.extract_strided_slice %51 {offsets = [0, 0], sizes = [192, 3], strides = [1, 1]} : vector<192x128xf32> to vector<192x3xf32>
    %66 = vector.extract_strided_slice %51 {offsets = [0, 3], sizes = [192, 3], strides = [1, 1]} : vector<192x128xf32> to vector<192x3xf32>
    %67 = vector.extract_strided_slice %51 {offsets = [0, 6], sizes = [192, 3], strides = [1, 1]} : vector<192x128xf32> to vector<192x3xf32>
    %68 = vector.extract_strided_slice %51 {offsets = [0, 9], sizes = [192, 3], strides = [1, 1]} : vector<192x128xf32> to vector<192x3xf32>
    %cst_48 = arith.constant 4.13516665 : f32
    %69 = vector.broadcast %cst_48 : f32 to vector<192x3xf32>
    %70 = arith.minimumf %68, %69 : vector<192x3xf32>
    %71 = vector.extract_strided_slice %51 {offsets = [0, 12], sizes = [192, 3], strides = [1, 1]} : vector<192x128xf32> to vector<192x3xf32>
    %cst_49 = arith.constant 4.13516665 : f32
    %72 = vector.broadcast %cst_49 : f32 to vector<192x3xf32>
    %73 = arith.minimumf %71, %72 : vector<192x3xf32>
    %74 = arith.mulf %66, %57 : vector<192x3xf32>
    %75 = arith.addf %74, %61 : vector<192x3xf32>
    %76 = arith.mulf %67, %58 : vector<192x3xf32>
    %77 = arith.addf %76, %64 : vector<192x3xf32>
    %78 = math.exp %70 : vector<192x3xf32>
    %79 = arith.mulf %78, %57 : vector<192x3xf32>
    %80 = math.exp %73 : vector<192x3xf32>
    %81 = arith.mulf %80, %58 : vector<192x3xf32>
    %cst_50 = arith.constant 5.000000e-01 : f32
    %82 = vector.broadcast %cst_50 : f32 to vector<192x3xf32>
    %83 = arith.mulf %82, %79 : vector<192x3xf32>
    %84 = arith.subf %75, %83 : vector<192x3xf32>
    %cst_51 = arith.constant 0.000000e+00 : f32
    %cst_52 = arith.constant 1.280000e+02 : f32
    %85 = vector.broadcast %cst_51 : f32 to vector<192x3xf32>
    %86 = arith.maximumf %85, %84 : vector<192x3xf32>
    %87 = vector.broadcast %cst_52 : f32 to vector<192x3xf32>
    %88 = arith.minimumf %87, %86 : vector<192x3xf32>
    %cst_53 = arith.constant 5.000000e-01 : f32
    %89 = vector.broadcast %cst_53 : f32 to vector<192x3xf32>
    %90 = arith.mulf %89, %81 : vector<192x3xf32>
    %91 = arith.subf %77, %90 : vector<192x3xf32>
    %cst_54 = arith.constant 0.000000e+00 : f32
    %cst_55 = arith.constant 1.280000e+02 : f32
    %92 = vector.broadcast %cst_54 : f32 to vector<192x3xf32>
    %93 = arith.maximumf %92, %91 : vector<192x3xf32>
    %94 = vector.broadcast %cst_55 : f32 to vector<192x3xf32>
    %95 = arith.minimumf %94, %93 : vector<192x3xf32>
    %cst_56 = arith.constant 5.000000e-01 : f32
    %96 = vector.broadcast %cst_56 : f32 to vector<192x3xf32>
    %97 = arith.mulf %96, %79 : vector<192x3xf32>
    %98 = arith.addf %75, %97 : vector<192x3xf32>
    %cst_57 = arith.constant 0.000000e+00 : f32
    %cst_58 = arith.constant 1.280000e+02 : f32
    %99 = vector.broadcast %cst_57 : f32 to vector<192x3xf32>
    %100 = arith.maximumf %99, %98 : vector<192x3xf32>
    %101 = vector.broadcast %cst_58 : f32 to vector<192x3xf32>
    %102 = arith.minimumf %101, %100 : vector<192x3xf32>
    %cst_59 = arith.constant 5.000000e-01 : f32
    %103 = vector.broadcast %cst_59 : f32 to vector<192x3xf32>
    %104 = arith.mulf %103, %81 : vector<192x3xf32>
    %105 = arith.addf %77, %104 : vector<192x3xf32>
    %cst_60 = arith.constant 0.000000e+00 : f32
    %cst_61 = arith.constant 1.280000e+02 : f32
    %106 = vector.broadcast %cst_60 : f32 to vector<192x3xf32>
    %107 = arith.maximumf %106, %105 : vector<192x3xf32>
    %108 = vector.broadcast %cst_61 : f32 to vector<192x3xf32>
    %109 = arith.minimumf %108, %107 : vector<192x3xf32>
    %cst_62 = arith.constant 0.000000e+00 : f32
    %110 = vector.broadcast %cst_62 : f32 to vector<192x113xf32>
    %111 = tpu.concatenate %65, %88, %95, %102, %109, %110 in 1 : vector<192x3xf32>, vector<192x3xf32>, vector<192x3xf32>, vector<192x3xf32>, vector<192x3xf32>, vector<192x113xf32> -> vector<192x128xf32>
    %c0_63 = arith.constant 0 : index
    %c0_64 = arith.constant 0 : index
    %112 = vector.load %arg9[%c0_63, %c0_64] : memref<192x128xf32, #tpu.memory_space<vmem>>, vector<192x128xf32>
    tpu.vector_store %arg9[%c0_63, %c0_64], %111 {strides = array<i32>} : memref<192x128xf32, #tpu.memory_space<vmem>>, vector<192x128xf32>,
    return
  }
  func.func @transform_0(%arg0: i32, %arg1: i32) -> (i32, i32) {
    %c2_i32 = arith.constant 2 : i32
    %0 = arith.muli %arg0, %c2_i32 : i32
    %1 = arith.addi %0, %arg1 : i32
    %c0_i32 = arith.constant 0 : i32
    %c0_i32_0 = arith.constant 0 : i32
    return %1, %c0_i32 : i32, i32
  }
  func.func @transform_1(%arg0: i32, %arg1: i32) -> (i32, i32) {
    %c2_i32 = arith.constant 2 : i32
    %0 = arith.muli %arg0, %c2_i32 : i32
    %1 = arith.addi %0, %arg1 : i32
    %c0_i32 = arith.constant 0 : i32
    %c0_i32_0 = arith.constant 0 : i32
    return %1, %c0_i32 : i32, i32
  }
  func.func @transform_2(%arg0: i32, %arg1: i32) -> (i32, i32) {
    %c0_i32 = arith.constant 0 : i32
    %c0_i32_0 = arith.constant 0 : i32
    %c0_i32_1 = arith.constant 0 : i32
    return %c0_i32, %c0_i32_0 : i32, i32
  }
  func.func @transform_3(%arg0: i32, %arg1: i32) -> (i32, i32) {
    %c0_i32 = arith.constant 0 : i32
    %c0_i32_0 = arith.constant 0 : i32
    %c0_i32_1 = arith.constant 0 : i32
    return %c0_i32, %c0_i32_0 : i32, i32
  }
  func.func @transform_4(%arg0: i32, %arg1: i32) -> (i32, i32) {
    %c0_i32 = arith.constant 0 : i32
    %c0_i32_0 = arith.constant 0 : i32
    %c0_i32_1 = arith.constant 0 : i32
    return %c0_i32, %c0_i32_0 : i32, i32
  }
  func.func @transform_5(%arg0: i32, %arg1: i32) -> (i32, i32) {
    %c0_i32 = arith.constant 0 : i32
    %c0_i32_0 = arith.constant 0 : i32
    %c0_i32_1 = arith.constant 0 : i32
    return %c0_i32, %c0_i32_0 : i32, i32
  }
  func.func @transform_6(%arg0: i32, %arg1: i32) -> (i32, i32) {
    %c0_i32 = arith.constant 0 : i32
    %c0_i32_0 = arith.constant 0 : i32
    return %arg1, %c0_i32 : i32, i32
  }
  func.func @transform_7(%arg0: i32, %arg1: i32) -> (i32, i32) {
    %c2_i32 = arith.constant 2 : i32
    %0 = arith.muli %arg0, %c2_i32 : i32
    %1 = arith.addi %0, %arg1 : i32
    %c0_i32 = arith.constant 0 : i32
    %c0_i32_0 = arith.constant 0 : i32
    return %1, %c0_i32 : i32, i32
  }
}

</mosaic_0001>

<bundles_post_ra>
// kernel: tpu_custom_call.1
= control target key start
LH: loop header
LB: loop body
LE: loop exit
PB: predicated region body
PF: predicated region fallthrough
CT: control target
= control target key end

     0   :  { %12 = vsyncpa [#allocation4], 0  ;;  %s7607_s0 = inlined_call_operand.vmem [shape: bf16[768,16], index: 0, kind: input, shape index: {}]   ;;  %s7608_s1 = inlined_call_operand.vmem [shape: bf16[288,16], index: 1, kind: input, shape index: {}]   ;;  %s7609_s2 = inlined_call_operand.vmem [shape: bf16[144,16], index: 2, kind: input, shape index: {}]   ;;  %s7610_s3 = inlined_call_operand.vmem [shape: f32[1,16], index: 3, kind: input, shape index: {}]   ;;  %s7611_s4 = inlined_call_operand.vmem [shape: bf16[16,128], index: 4, kind: input, shape index: {}]   ;;  %s7612_s5 = inlined_call_operand.vmem [shape: f32[1,128], index: 5, kind: input, shape index: {}]   ;;  %s7613_s6 = inlined_call_operand.vmem [shape: f32[384,12], index: 6, kind: input, shape index: {}]   ;;  %s7614_s7 = inlined_call_operand.hbm [shape: f32[768,128], index: 7, kind: output, shape index: {}]  }
   0x1   :  { %14 = vsyncpa [#allocation4 + $0x1], 0  ;;  %s5683_s24 = smov 0   ;;  %s5685_s25 = smov 0  }
   0x2   :  { %s5687_s26 = smov 0   ;;  %s5689_s27 = smov 0  }
   0x3   :  { %s5691_s28 = smov 0   ;;  %s5693_s29 = smov 0  }
   0x4   :  { %s5695_s30 = smov 0   ;;  %s5697_s8 = smov 0  }
   0x5 LB: > { %s4540_s9 = sadd.s32 4294967295, %s5634_s8   ;;  %s29_s10 = sadd.s32 1, %s5626_s29  ;;  %s5634_s8 = sphi %s5697_s8, %s20_s8   ;;  %s5630_s30 = sphi %s5695_s30, %s7739_s30   ;;  %s5626_s29 = sphi %s5693_s29, %s7738_s29   ;;  %s5622_s28 = sphi %s5691_s28, %s7737_s28   ;;  %s5618_s27 = sphi %s5689_s27, %s7736_s27   ;;  %s5614_s26 = sphi %s5687_s26, %s7735_s26   ;;  %s5610_s25 = sphi %s5685_s25, %s7734_s25   ;;  %s5606_s24 = sphi %s5683_s24, %s7733_s24  }
   0x6   : > { %s32_s11 = sadd.s32 1, %s5630_s30  ;;  %p30_p0 = scmp.ge.s32.totalorder %s29_s10, 2 }
   0x7   : > { %s4546_s12 = sshll.u32 %s5630_s30, 1  ;;  %s4541_s13 = sadd.s32 4294967294, %s5634_s8  }
   0x8   : > { %s207_s14 = sadd.s32 %s5626_s29, %s4546_s12  ;;  %s7741_s10 = smov (%p30_p0, %s29_s10), 0 }
   0x9   : > { %s7743_s11 = smov (!%p30_p0, %s32_s11), %s5630_s30  ;;  %p223_p1 = scmp.ne.s32.totalorder %s5614_s26, %s5610_s25 }
   0xa   : > { %p224_p2 = scmp.eq.s32.totalorder %s4540_s9, 3  ;;  %p34_p3 = scmp.ge.s32.totalorder %s7743_s11, 2 }
   0xb   : > { %p229_p4 = scmp.ne.s32.totalorder %s5610_s25, %s5606_s24  ;;  %p230_p6 = scmp.eq.s32.totalorder %s4541_s13, 3 }
   0xc   : > { %p5736_p5 = por %p224_p2, %p223_p1  ;;  %s7745_s11 = smov (%p34_p3, %s7743_s11), 0 }
   0xd   : > { %7642 = sst [smem:[#allocation6_spill]] %s7745_s11  ;;  %p5742_p7 = por %p230_p6, %p229_p4 }
   0xe   : > { %p4550_p8 = scmp.ge.s32.totalorder %s5634_s8, 1  ;;  %s4547_s17 = sshll.u32 %s7745_s11, 1 }
   0xf   : > { %p295_p9 = scmp.lt.s32.totalorder %s5634_s8, 5  ;;  %s209_s18 = sadd.s32 %s4547_s17, %s7741_s10 }
  0x10   : > { %s213_s19 = sadd.s32 1, %s5614_s26  ;;  %s210_s20 = ssub.s32 %s207_s14, %s209_s18 }
  0x11   : > { %p296_p10 = pnand %p4550_p8, %p295_p9  ;;  %p211_p11 = scmp.eq.s32.totalorder %s210_s20, 0 }
  0x13   : > { %s5752_s21 = scalar_select %p211_p11, %s5614_s26, %s213_s19  }
  0x14   : > { %299 = sbr.rel (%p296_p10) target bundleno = 1014 (0x3f6), region = 48 }
  0x1b   : > { %v5419_v0 = vld [vmem:[%s7609_s2 + $0x20] sm:$0xff]   ;;  %s4551_s9 = sshll.u32 %s5622_s28, 1  ;;  %v5420_v1 = vld [vmem:[%s7609_s2 + $0x8] sm:$0xff]   ;;  %vm395_vm0 = vcmask 125952   ;;  %vm530_vm1 = vsmask.f32 7424 }
  0x1c   : > { %s5762_s11 = sadd.s32 %s5618_s27, %s4551_s9  ;;  %4993 = vmatprep.subr.bf16.mxu0 %v5419_v0  ;;  %4889 = vmatprep.subr.bf16.mxu1 %v5420_v1  ;;  %v5768_v2 = vld [vmem:[%s7609_s2 + $0x28] sm:$0xff]   ;;  %v5774_v3 = vld [vmem:[%s7609_s2] sm:$0xff]   ;;  %vm637_vm2 = vcmask 130048   ;;  %v5872_v54 = vld [vmem:[%s7609_s2 + $0x10] sm:$0xff]   ;;  %vm968_vm3 = vcmask 1046528   ;;  %s361_s17 = smul.u32 24, %s5618_s27 }
  0x1d   : > { %s343_s14 = smul.u32 24, %s5762_s11  ;;  %4994 = vmatpush3.bf16.msra.mxu0 %v5419_v0  ;;  %4890 = vmatpush3.bf16.msra.mxu1 %v5420_v1  ;;  %s5637_s9 = smov 125   ;;  %vm4276_vm4 = vcmask 23552   ;;  %vm4301_vm5 = vcmask 48128   ;;  %vm4326_vm6 = vcmask 72704   ;;  %vm4351_vm7 = vcmask 97280  }
  0x1e   : > { %s353_s28 = smul.u32 9, %s5762_s11  ;;  %5019 = vmatprep.subr.bf16.mxu0 %v5768_v2  ;;  %4915 = vmatprep.subr.bf16.mxu1 %v5774_v3  ;;  %p362_p0 = scmp.lt.s32.totalorder %s361_s17, 47  ;;  %vm4376_vm8 = vcmask 121856  }
  0x1f   : > { %p344_p12 = scmp.lt.s32.totalorder %s343_s14, 95  ;;  %s5640_s19 = smov [#allocation3]  }
  0x20   : > { %p5780_p13 = scmp.lt.s32.totalorder %s353_s28, 35  ;;  %s7751_s17 = smov (!%p362_p0, %s361_s17), 47 }
  0x21   : > { %s7747_s14 = smov (!%p344_p12, %s343_s14), 95  ;;  %s4555_s18 = sshll.u32 %s7751_s17, 3 }
  0x22   : > { %s4552_s22 = sshll.u32 %s7747_s14, 2  ;;  %s7749_s28 = smov (!%p5780_p13, %s353_s28), 35 }
  0x23   : > { %s5787_s13 = scalar_lea.vmem %s7607_s0, %s4552_s22  ;;  %s4554_s20 = sshll.u32 %s7749_s28, 2 }
  0x24   : > { %v371_v4 = vld [vmem:[%s5787_s13] sm:$0xf]  ;;  %v372_v5 = vld [vmem:[%s5787_s13 + $0x4] sm:$0xf]  ;;  %v373_v6 = vld [vmem:[%s5787_s13 + $0x8] sm:$0xf]  ;;  %s5957_s23 = scalar_lea.vmem %s7608_s1, %s4554_s20  ;;  %s6151_s20 = scalar_lea.vmem %s7613_s6, %s4555_s18 }
  0x25   : > { %v374_v7 = vld [vmem:[%s5787_s13 + $0xc] sm:$0xf]  ;;  %396 = vst.msk [vmem:[#allocation2] sm:$0xf] %vm395_vm0, %v371_v4  ;;  %397 = vst.msk [vmem:[#allocation2 + $0x4] sm:$0xf] %vm395_vm0, %v372_v5 }
  0x26   : > { %398 = vst.msk [vmem:[#allocation2 + $0x8] sm:$0xf] %vm395_vm0, %v373_v6  ;;  %v375_v8 = vld [vmem:[%s5787_s13 + $0x10] sm:$0xf]  ;;  %v376_v9 = vld [vmem:[%s5787_s13 + $0x14] sm:$0xf] }
  0x27   : > { %399 = vst.msk [vmem:[#allocation2 + $0xc] sm:$0xf] %vm395_vm0, %v374_v7  ;;  %v377_v10 = vld [vmem:[%s5787_s13 + $0x18] sm:$0xf]  ;;  %400 = vst.msk [vmem:[#allocation2 + $0x10] sm:$0xf] %vm395_vm0, %v375_v8 }
  0x28   : > { %401 = vst.msk [vmem:[#allocation2 + $0x14] sm:$0xf] %vm395_vm0, %v376_v9  ;;  %v378_v11 = vld [vmem:[%s5787_s13 + $0x1c] sm:$0xf]  ;;  %v379_v12 = vld [vmem:[%s5787_s13 + $0x20] sm:$0xf] }
  0x29   : > { %402 = vst.msk [vmem:[#allocation2 + $0x18] sm:$0xf] %vm395_vm0, %v377_v10  ;;  %403 = vst.msk [vmem:[#allocation2 + $0x1c] sm:$0xf] %vm395_vm0, %v378_v11  ;;  %v380_v13 = vld [vmem:[%s5787_s13 + $0x24] sm:$0xf] }
  0x2a   : > { %404 = vst.msk [vmem:[#allocation2 + $0x20] sm:$0xf] %vm395_vm0, %v379_v12  ;;  %v381_v14 = vld [vmem:[%s5787_s13 + $0x28] sm:$0xf]  ;;  %v382_v15 = vld [vmem:[%s5787_s13 + $0x2c] sm:$0xf] }
  0x2b   : > { %405 = vst.msk [vmem:[#allocation2 + $0x24] sm:$0xf] %vm395_vm0, %v380_v13  ;;  %406 = vst.msk [vmem:[#allocation2 + $0x28] sm:$0xf] %vm395_vm0, %v381_v14  ;;  %v383_v16 = vld [vmem:[%s5787_s13 + $0x30] sm:$0xf] }
  0x2c   : > { %407 = vst.msk [vmem:[#allocation2 + $0x2c] sm:$0xf] %vm395_vm0, %v382_v15  ;;  %v384_v17 = vld [vmem:[%s5787_s13 + $0x34] sm:$0xf]  ;;  %v385_v18 = vld [vmem:[%s5787_s13 + $0x38] sm:$0xf] }
  0x2d   : > { %408 = vst.msk [vmem:[#allocation2 + $0x30] sm:$0xf] %vm395_vm0, %v383_v16  ;;  %409 = vst.msk [vmem:[#allocation2 + $0x34] sm:$0xf] %vm395_vm0, %v384_v17  ;;  %v386_v19 = vld [vmem:[%s5787_s13 + $0x3c] sm:$0xf] }
  0x2e   : > { %410 = vst.msk [vmem:[#allocation2 + $0x38] sm:$0xf] %vm395_vm0, %v385_v18  ;;  %v387_v20 = vld [vmem:[%s5787_s13 + $0x40] sm:$0xf]  ;;  %v388_v21 = vld [vmem:[%s5787_s13 + $0x44] sm:$0xf] }
  0x2f   : > { %411 = vst.msk [vmem:[#allocation2 + $0x3c] sm:$0xf] %vm395_vm0, %v386_v19  ;;  %412 = vst.msk [vmem:[#allocation2 + $0x40] sm:$0xf] %vm395_vm0, %v387_v20  ;;  %v389_v22 = vld [vmem:[%s5787_s13 + $0x48] sm:$0xf] }
  0x30   : > { %413 = vst.msk [vmem:[#allocation2 + $0x44] sm:$0xf] %vm395_vm0, %v388_v21  ;;  %v390_v23 = vld [vmem:[%s5787_s13 + $0x4c] sm:$0xf]  ;;  %v391_v24 = vld [vmem:[%s5787_s13 + $0x50] sm:$0xf] }
  0x31   : > { %414 = vst.msk [vmem:[#allocation2 + $0x48] sm:$0xf] %vm395_vm0, %v389_v22  ;;  %415 = vst.msk [vmem:[#allocation2 + $0x4c] sm:$0xf] %vm395_vm0, %v390_v23  ;;  %v392_v25 = vld [vmem:[%s5787_s13 + $0x54] sm:$0xf] }
  0x32   : > { %416 = vst.msk [vmem:[#allocation2 + $0x50] sm:$0xf] %vm395_vm0, %v391_v24  ;;  %v393_v26 = vld [vmem:[%s5787_s13 + $0x58] sm:$0xf]  ;;  %v438_v27 = vld [vmem:[#allocation2] sm:$0xf] }
  0x33   : > { %v5833_v28 = vld [vmem:[#allocation2 + $0x4] sm:$0xf]  ;;  %417 = vst.msk [vmem:[#allocation2 + $0x54] sm:$0xf] %vm395_vm0, %v392_v25  ;;  %418 = vst.msk [vmem:[#allocation2 + $0x58] sm:$0xf] %vm395_vm0, %v393_v26 }
  0x34   : > { %v5838_v29 = vcombine.low %v438_v27, %v5833_v28  ;;  %v5840_v30 = vld [vmem:[#allocation2 + $0x8] sm:$0xff]   ;;  %v5848_v32 = vld [vmem:[#allocation2 + $0x10] sm:$0xf]  ;;  %v5854_v37 = vld [vmem:[#allocation2 + $0x14] sm:$0xff]   ;;  %s5636_s28 = smov 6   ;;  %s5638_s14 = smov 122  }
  0x35   : > { %v1470_v31 = vld [vmem:[#allocation2 + $0xc] sm:$0xf]  ;;  %v539_v35 = vshll.u32 %v5840_v30, 16  ;;  %v543_v36 = vshrl.u32 %v5840_v30, 16  ;;  %v5856_v38 = vld [vmem:[#allocation2 + $0x10] sm:$0xff]   ;;  %v1568_v42 = vshll.u32 %v5854_v37, 16 }
  0x36   : > { %v532_v33 = vshrl.u32 %v5838_v29, 16  ;;  %v534_v34 = vshll.u32 %v5838_v29, 16  ;;  %v4634_v39 = vcombine.low %v1470_v31, %v5848_v32  ;;  %v1572_v43 = vshrl.u32 %v5854_v37, 16  ;;  %v5862_v47 = vld [vmem:[#allocation2 + $0x1c] sm:$0xff]   ;;  %v5867_v53 = vld [vmem:[#allocation2 + $0x24] sm:$0xff]   ;;  %v5886_v6 = vld [vmem:[%s7609_s2 + $0x30] sm:$0xff]  }
  0x37   : > { %v541_v41 = vrot.slane %v539_v35, 1  ;;  %v547_v46 = vshll.u32 %v5856_v38, 16  ;;  %v1570_v50 = vrot.slane %v1568_v42, 1  ;;  %v5864_v51 = vld [vmem:[#allocation2 + $0x18] sm:$0xff]   ;;  %v551_v52 = vshrl.u32 %v5856_v38, 16  ;;  %v5881_v5 = vld [vmem:[#allocation2 + $0x20] sm:$0xff]  }
  0x38   : > { %v536_v40 = vrot.slane %v534_v34, 1  ;;  %v1561_v44 = vshrl.u32 %v4634_v39, 16  ;;  %v1563_v45 = vshll.u32 %v4634_v39, 16  ;;  %v1576_v57 = vshll.u32 %v5862_v47, 16  ;;  %v5890_v10 = vld [vmem:[#allocation2 + $0x2c] sm:$0xff]   ;;  %v5908_v23 = vld [vmem:[#allocation2 + $0x34] sm:$0xff]  }
  0x39   : > { %v545_v49 = vor.u32 %v543_v36, %v541_v41  ;;  %v549_v56 = vrot.slane %v547_v46, 1  ;;  %v1580_v58 = vshrl.u32 %v5862_v47, 16  ;;  %v1574_v60 = vor.u32 %v1572_v43, %v1570_v50  ;;  %v5895_v15 = vld [vmem:[#allocation2 + $0x28] sm:$0xff]   ;;  %v5913_v27 = vld [vmem:[#allocation2 + $0x30] sm:$0xff]   ;;  %v5923_v42 = vld [vmem:[#allocation2 + $0x38] sm:$0xff]   ;;  %s5639_s17 = smov 3  }
  0x3a   : > { %v537_v48 = vor.u32 %v536_v40, %v532_v33  ;;  %v1565_v55 = vrot.slane %v1563_v45, 1  ;;  %v555_v61 = vshll.u32 %v5864_v51, 16  ;;  %v1584_v62 = vshll.u32 %v5867_v53, 16  ;;  %v5920_v40 = vld [vmem:[#allocation2 + $0x3c] sm:$0xff]   ;;  %s338_s22 = sand.u32 1, %s5610_s25   ;;  %s5544_s27 = sshll.u32 %s5640_s19, 4  ;;  %s5545_s27 = int_to_ptr.vmem [resolvable:$false] %s5544_s27 }
  0x3b   : > { %v550_v0 = vsel %vm530_vm1, %v545_v49, %v549_v56  ;;  %v1578_v1 = vrot.slane %v1576_v57, 1  ;;  %v553_v4 = vor.u32 %v551_v52, %v549_v56  ;;  %v559_v9 = vshrl.u32 %v5864_v51, 16  ;;  %v5931_v52 = vld [vmem:[#allocation2 + $0x44] sm:$0xff]  }
  0x3c   : > { %v542_v59 = vsel %vm530_vm1, %v537_v48, %v541_v41  ;;  %v1566_v63 = vor.u32 %v1565_v55, %v1561_v44  ;;  %v557_v7 = vrot.slane %v555_v61, 1  ;;  %v1586_v8 = vrot.slane %v1584_v62, 1 }
  0x3d   : > { %4891 = vmatprep.mubr.msk.bf16.mxu1 %vm637_vm2, %v542_v59  ;;  %v1579_v12 = vsel %vm530_vm1, %v1574_v60, %v1578_v1  ;;  %v1582_v13 = vor.u32 %v1580_v58, %v1578_v1  ;;  %v563_v14 = vshll.u32 %v5881_v5, 16  ;;  %v1588_v18 = vshrl.u32 %v5867_v53, 16  ;;  %v5936_v58 = vld [vmem:[#allocation2 + $0x40] sm:$0xff]  }
  0x3e   : > { %4892 = vmatmul.mubr.msk.bf16.vlgmr.msra.gmra.mrb[0].mxu1 %vm637_vm2, %v550_v0  ;;  %v1571_v11 = vsel %vm530_vm1, %v1566_v63, %v1570_v50  ;;  %v558_v16 = vsel %vm530_vm1, %v553_v4, %v557_v7  ;;  %v561_v17 = vor.u32 %v559_v9, %v557_v7  ;;  %v1592_v19 = vshll.u32 %v5890_v10, 16  ;;  %v5940_v63 = vld [vmem:[#allocation2 + $0x4c] sm:$0xff]   ;;  %v5947_v7 = vld [vmem:[#allocation2 + $0x54] sm:$0xff]  }
  0x3f   : > { %4916 = vmatpush3.bf16.msra.mxu1 %v5774_v3  ;;  %4995 = vmatprep.mubr.msk.bf16.mxu0 %vm637_vm2, %v1571_v11  ;;  %v1587_v20 = vsel %vm530_vm1, %v1582_v13, %v1586_v8  ;;  %v565_v21 = vrot.slane %v563_v14, 1  ;;  %v567_v3 = vshrl.u32 %v5881_v5, 16  ;;  %v571_v22 = vshll.u32 %v5895_v15, 16  ;;  %v5942_v0 = vld [vmem:[#allocation2 + $0x48] sm:$0xff]  }
  0x40   : > { %4941 = vmatprep.subr.bf16.mxu1 %v5872_v54  ;;  %4996 = vmatmul.mubr.msk.bf16.vlgmr.msra.gmra.mrb[0].mxu0 %vm637_vm2, %v1579_v12  ;;  %v1590_v24 = vor.u32 %v1588_v18, %v1586_v8  ;;  %v1594_v25 = vrot.slane %v1592_v19, 1  ;;  %v1596_v26 = vshrl.u32 %v5890_v10, 16  ;;  %v575_v31 = vshrl.u32 %v5895_v15, 16 }
  0x41   : > { %4895 = vmatprep.mubr.msk.bf16.mxu1 %vm637_vm2, %v558_v16  ;;  %5020 = vmatpush3.bf16.msra.mxu0 %v5768_v2  ;;  %v566_v33 = vsel %vm530_vm1, %v561_v17, %v565_v21  ;;  %v569_v34 = vor.u32 %v567_v3, %v565_v21  ;;  %v573_v35 = vrot.slane %v571_v22, 1  ;;  %v1600_v36 = vshll.u32 %v5908_v23, 16  ;;  %v5965_v22 = vld [vmem:[#allocation2 + $0x50] sm:$0xff]  }
  0x42   : > { %4999 = vmatprep.mubr.msk.bf16.mxu0 %vm637_vm2, %v1587_v20  ;;  %5045 = vmatprep.subr.bf16.mxu0 %v5886_v6  ;;  %v1598_v39 = vor.u32 %v1596_v26, %v1594_v25  ;;  %v579_v2 = vshll.u32 %v5913_v27, 16  ;;  %v1604_v41 = vshrl.u32 %v5908_v23, 16  ;;  %v583_v45 = vshrl.u32 %v5913_v27, 16 }
  0x43   : > { %v574_v43 = vsel %vm530_vm1, %v569_v34, %v573_v35  ;;  %v1602_v44 = vrot.slane %v1600_v36, 1  ;;  %v1595_v46 = vsel %vm530_vm1, %v1590_v24, %v1594_v25  ;;  %v1608_v49 = vshll.u32 %v5920_v40, 16  ;;  %v394_v24 = vld [vmem:[%s5787_s13 + $0x5c] sm:$0xf] }
  0x44   : > { %v581_v48 = vrot.slane %v579_v2, 1  ;;  %v587_v50 = vshll.u32 %v5923_v42, 16  ;;  %v577_v56 = vor.u32 %v575_v31, %v573_v35  ;;  %v1612_v57 = vshrl.u32 %v5920_v40, 16  ;;  %419 = vst.msk [vmem:[#allocation2 + $0x5c] sm:$0xf] %vm395_vm0, %v394_v24 }
  0x45   : > { %v1603_v55 = vsel %vm530_vm1, %v1598_v39, %v1602_v44  ;;  %v1610_v61 = vrot.slane %v1608_v49, 1  ;;  %v1616_v62 = vshll.u32 %v5931_v52, 16  ;;  %v1606_v1 = vor.u32 %v1604_v41, %v1602_v44  ;;  %v420_v31 = vld [vmem:[%s5957_s23] sm:$0xf]  ;;  %v421_v35 = vld [vmem:[%s5957_s23 + $0x4] sm:$0xf] }
  0x46   : > { %4896 = vmatmul.mubr.msk.bf16.gmra.mrb[4].mxu1 %vm637_vm2, %v566_v33  ;;  %v585_v59 = vor.u32 %v583_v45, %v581_v48  ;;  %v589_v60 = vrot.slane %v587_v50, 1  ;;  %v595_v4 = vshll.u32 %v5936_v58, 16  ;;  %v582_v8 = vsel %vm530_vm1, %v577_v56, %v581_v48  ;;  %429 = vst.msk [vmem:[#allocation2 + $0x60] sm:$0xf] %vm395_vm0, %v420_v31  ;;  %v422_v39 = vld [vmem:[%s5957_s23 + $0x8] sm:$0xf] }
  0x47   : > { %4899 = vmatprep.mubr.msk.bf16.mxu1 %vm637_vm2, %v574_v43  ;;  %v1614_v9 = vor.u32 %v1612_v57, %v1610_v61  ;;  %v1618_v11 = vrot.slane %v1616_v62, 1  ;;  %v591_v12 = vshrl.u32 %v5923_v42, 16  ;;  %v599_v14 = vshrl.u32 %v5936_v58, 16  ;;  %430 = vst.msk [vmem:[#allocation2 + $0x64] sm:$0xf] %vm395_vm0, %v421_v35 }
  0x48   : > { %5000 = vmatmul.mubr.msk.bf16.gmra.mrb[4].mxu0 %vm637_vm2, %v1595_v46  ;;  %v590_v13 = vsel %vm530_vm1, %v585_v59, %v589_v60  ;;  %v603_v16 = vshll.u32 %v5942_v0, 16  ;;  %v1620_v17 = vshrl.u32 %v5931_v52, 16  ;;  %v1624_v18 = vshll.u32 %v5940_v63, 16  ;;  %v423_v2 = vld [vmem:[%s5957_s23 + $0xc] sm:$0xf] }
  0x49   : > { %5003 = vmatprep.mubr.msk.bf16.mxu0 %vm637_vm2, %v1603_v55  ;;  %v1611_v19 = vsel %vm530_vm1, %v1606_v1, %v1610_v61  ;;  %v597_v20 = vrot.slane %v595_v4, 1  ;;  %v1628_v21 = vshrl.u32 %v5940_v63, 16  ;;  %v1632_v3 = vshll.u32 %v5947_v7, 16  ;;  %431 = vst.msk [vmem:[#allocation2 + $0x68] sm:$0xf] %vm395_vm0, %v422_v39 }
  0x4a   : > { %v1619_v25 = vsel %vm530_vm1, %v1614_v9, %v1618_v11  ;;  %v593_v26 = vor.u32 %v591_v12, %v589_v60  ;;  %v605_v34 = vrot.slane %v603_v16, 1  ;;  %v1626_v36 = vrot.slane %v1624_v18, 1  ;;  %432 = vst.msk [vmem:[#allocation2 + $0x6c] sm:$0xf] %vm395_vm0, %v423_v2  ;;  %v962_v49 = vld [vmem:[#allocation2] sm:$0xe] }
  0x4b   : > { %v601_v33 = vor.u32 %v599_v14, %v597_v20  ;;  %v1622_v41 = vor.u32 %v1620_v17, %v1618_v11  ;;  %v1634_v43 = vrot.slane %v1632_v3, 1  ;;  %v607_v44 = vshrl.u32 %v5942_v0, 16  ;;  %v5989_v60 = vld [vmem:[#allocation2 + $0x58] sm:$0xff]   ;;  %v1855_v16 = vld [vmem:[#allocation2 + $0xc] sm:$0xe] }
  0x4c   : > { %v611_v45 = vshll.u32 %v5965_v22, 16  ;;  %v598_v46 = vsel %vm530_vm1, %v593_v26, %v597_v20  ;;  %v1630_v48 = vor.u32 %v1628_v21, %v1626_v36  ;;  %v615_v55 = vshrl.u32 %v5965_v22, 16 }
  0x4d   : > { %v606_v50 = vsel %vm530_vm1, %v601_v33, %v605_v34  ;;  %v1636_v56 = vshrl.u32 %v5947_v7, 16  ;;  %v1627_v57 = vsel %vm530_vm1, %v1622_v41, %v1626_v36  ;;  %v4595_v61 = vcombine.low %v962_v49, %v5833_v28  ;;  %v5994_v4 = vld [vmem:[#allocation2 + $0x5c] sm:$0xff]  }
  0x4e   : > { %4900 = vmatmul.mubr.msk.bf16.gmra.mrb[8].mxu1 %vm637_vm2, %v582_v8  ;;  %v613_v59 = vrot.slane %v611_v45, 1  ;;  %v1635_v62 = vsel %vm530_vm1, %v1630_v48, %v1634_v43  ;;  %v609_v1 = vor.u32 %v607_v44, %v605_v34  ;;  %v619_v9 = vshll.u32 %v5989_v60, 16  ;;  %v5997_v11 = vld [vmem:[#allocation2 + $0x60] ss:$0 sps:$4 sm:$0x11]  }
  0x4f   : > { %4903 = vmatprep.mubr.msk.bf16.mxu1 %vm637_vm2, %v590_v13  ;;  %v1638_v12 = vor.u32 %v1636_v56, %v1634_v43  ;;  %v1640_v13 = vshll.u32 %v5994_v4, 16  ;;  %v1644_v28 = vshrl.u32 %v5994_v4, 16  ;;  %v623_v18 = vshrl.u32 %v5989_v60, 16 }
  0x50   : > { %5004 = vmatmul.mubr.msk.bf16.gmra.mrb[8].mxu0 %vm637_vm2, %v1611_v19  ;;  %v617_v8 = vor.u32 %v615_v55, %v613_v59  ;;  %v6001_v14 = vld [vmem:[#allocation2 + $0x64] sm:$0xff]   ;;  %v621_v17 = vrot.slane %v619_v9, 1  ;;  %v969_v19 = vrot.slane %v4595_v61, 1  ;;  %v970_v20 = vrot.slane %v5840_v30, 1 }
  0x51   : > { %5007 = vmatprep.mubr.msk.bf16.mxu0 %vm637_vm2, %v1619_v25  ;;  %v614_v21 = vsel %vm530_vm1, %v609_v1, %v613_v59  ;;  %v1642_v3 = vrot.slane %v1640_v13, 1  ;;  %v1648_v24 = vshll.u32 %v6001_v14, 16  ;;  %v627_v25 = vshll.u32 %v5997_v11, 16  ;;  %v6010_v26 = vld [vmem:[#allocation2 + $0x6c] ss:$0 sps:$4 sm:$0x11]  }
  0x52   : > { %v622_v31 = vsel %vm530_vm1, %v617_v8, %v621_v17  ;;  %v1862_v33 = vrot.slane %v5854_v37, 1  ;;  %v1652_v36 = vshrl.u32 %v6001_v14, 16  ;;  %v1656_v39 = vshll.u32 %v6010_v26, 16 }
  0x53   : > { %v1646_v34 = vor.u32 %v1644_v28, %v1642_v3  ;;  %v1650_v35 = vrot.slane %v1648_v24, 1  ;;  %v1643_v2 = vsel %vm530_vm1, %v1638_v12, %v1642_v3  ;;  %v625_v41 = vor.u32 %v623_v18, %v621_v17 }
  0x54   : > { %v4660_v43 = vcombine.low %v1855_v16, %v5848_v32  ;;  %v6020_v44 = vsel %vm968_vm3, %v969_v19, %v970_v20  ;;  %v629_v45 = vrot.slane %v627_v25, 1  ;;  %v972_v48 = vrot.slane %v5856_v38, 1  ;;  %v424_v19 = vld [vmem:[%s5957_s23 + $0x10] sm:$0xf] }
  0x55   : > { %v1651_v37 = vsel %vm530_vm1, %v1646_v34, %v1650_v35  ;;  %v974_v49 = vrot.slane %v5864_v51, 1  ;;  %v1654_v55 = vor.u32 %v1652_v36, %v1650_v35  ;;  %v978_v56 = vrot.slane %v5895_v15, 1  ;;  %433 = vst.msk [vmem:[#allocation2 + $0x70] sm:$0xf] %vm395_vm0, %v424_v19  ;;  %v6160_v36 = vld [vmem:[%s6151_s20 + $0x10] sm:$0xff] }
  0x56   : > { %4904 = vmatmul.mubr.msk.bf16.gmra.mrb[12].mxu1 %vm637_vm2, %v598_v46  ;;  %v1658_v46 = vrot.slane %v1656_v39, 1  ;;  %v6029_v32 = vsel %vm968_vm3, %v970_v20, %v972_v48  ;;  %v984_v1 = vrot.slane %v5936_v58, 1  ;;  %v630_v8 = vsel %vm530_vm1, %v625_v41, %v629_v45  ;;  %3272 = vrot.lane.b32.xlu1 %v6160_v36, %s5636_s28  ;;  %v6166_v39 = vld [vmem:[%s6151_s20 + $0x8] sm:$0xff]  ;;  %v5453_v41 = vld [vmem:[#allocation2 + $0x20] sm:$0xff]   ;;  %v5459_v19 = vld [vmem:[#allocation2 + $0x50] sm:$0xff]  }
  0x57   : > { %4907 = vmatprep.mubr.msk.bf16.mxu1 %vm637_vm2, %v606_v50  ;;  %v976_v50 = vrot.slane %v5881_v5, 1  ;;  %v6035_v59 = vsel %vm968_vm3, %v972_v48, %v974_v49  ;;  %v1861_v9 = vrot.slane %v4660_v43, 1  ;;  %v990_v17 = vrot.slane %v5989_v60, 1  ;;  %v5454_v43 = vld [vmem:[#allocation2 + $0x28] sm:$0xff]   ;;  %v6203_v48 = vld [vmem:[%s6151_s20 + $0x38] sm:$0xff] }
  0x58   : > { %5008 = vmatmul.mubr.msk.bf16.gmra.mrb[12].mxu0 %vm637_vm2, %v1627_v57  ;;  %v980_v57 = vrot.slane %v5913_v27, 1  ;;  %v992_v18 = vrot.slane %v5997_v11, 1  ;;  %v1659_v20 = vsel %vm530_vm1, %v1654_v55, %v1658_v46  ;;  %v1864_v11 = vrot.slane %v5862_v47, 1  ;;  %v6092_v47 = vld [vmem:[%s7609_s2 + $0x38] sm:$0xff]   ;;  %v6192_v45 = vld [vmem:[%s6151_s20 + $0x28] sm:$0xff]  ;;  %v6197_v46 = vld [vmem:[%s6151_s20 + $0x30] sm:$0xff] }
  0x59   : > { %5011 = vmatprep.mubr.msk.bf16.mxu0 %vm637_vm2, %v1635_v62  ;;  %v6038_v61 = vsel %vm968_vm3, %v974_v49, %v976_v50  ;;  %v982_v62 = vrot.slane %v5923_v42, 1  ;;  %v6044_v12 = vsel %vm968_vm3, %v976_v50, %v978_v56  ;;  %v1863_v3 = vsel %vm968_vm3, %v1861_v9, %v1862_v33  ;;  %v5455_v49 = vld [vmem:[#allocation2 + $0x30] sm:$0xff]   ;;  %v5456_v50 = vld [vmem:[#allocation2 + $0x38] sm:$0xff]   ;;  %v6210_v55 = vld [vmem:[%s6151_s20 + $0x40] sm:$0xff] }
  0x5a   : > { %v6047_v13 = vsel %vm968_vm3, %v978_v56, %v980_v57  ;;  %v6070_v24 = vsel %vm968_vm3, %v990_v17, %v992_v18  ;;  %v1866_v25 = vrot.slane %v5867_v53, 1  ;;  %v1884_v35 = vrot.slane %v6010_v26, 1  ;;  %v6154_v26 = vld [vmem:[%s6151_s20] sm:$0xff]  ;;  %v6224_v56 = vld [vmem:[%s6151_s20 + $0x50] sm:$0xff]  ;;  %v6244_v9 = vld [vmem:[%s6151_s20 + $0x68] sm:$0xff] }
  0x5b   : > { %v6050_v28 = vsel %vm968_vm3, %v980_v57, %v982_v62  ;;  %v6055_v16 = vsel %vm968_vm3, %v982_v62, %v984_v1  ;;  %3268 = vrot.lane.b32.xlu0 %v6154_v26, %s5636_s28  ;;  %v6229_v57 = vld [vmem:[%s6151_s20 + $0x58] sm:$0xff]  ;;  %v6236_v62 = vld [vmem:[%s6151_s20 + $0x60] sm:$0xff] }
  0x5c   : > { %v1867_v34 = vsel %vm968_vm3, %v1864_v11, %v1866_v25  ;;  %v6261_v18 = vld [vmem:[%s6151_s20 + $0x78] sm:$0xff] }
  0x5e   : > { %4908 = vmatmul.mubr.msk.bf16.gmra.mrb[16].mxu1 %vm637_vm2, %v614_v21  ;;  %v425_v21 = vld [vmem:[%s5957_s23 + $0x14] sm:$0xf] }
  0x5f   : > { %4911 = vmatprep.mubr.msk.bf16.mxu1 %vm637_vm2, %v622_v31  ;;  %434 = vst.msk [vmem:[#allocation2 + $0x74] sm:$0xf] %vm395_vm0, %v425_v21  ;;  %v1865_v31 = vsel %vm968_vm3, %v1862_v33, %v1864_v11  ;;  %3270 = vrot.lane.b32.xlu0 %v6166_v39, %s5636_s28  ;;  %v6268_v21 = vld [vmem:[%s6151_s20 + $0x80] sm:$0xff] }
  0x60   : > { %5012 = vmatmul.mubr.msk.bf16.gmra.mrb[16].mxu0 %vm637_vm2, %v1643_v2  ;;  %v6169_v2 = vld [vmem:[%s6151_s20 + $0x18] sm:$0xff] }
  0x61   : > { %5015 = vmatprep.mubr.msk.bf16.mxu0 %vm637_vm2, %v1651_v37  ;;  %3274 = vrot.lane.b32.xlu1 %v6169_v2, %s5636_s28  ;;  %v6186_v37 = vld [vmem:[%s7609_s2 + $0x40] sm:$0xff]  }
  0x65   : > { %3278 = vrot.lane.b32.xlu1 %v6192_v45, %s5636_s28 }
  0x66   : > { %4912 = vmatmul.mubr.msk.bf16.gmra.mrb[20].mxu1 %vm637_vm2, %v630_v8  ;;  %v986_v8 = vrot.slane %v5942_v0, 1 }
  0x67   : > { %4917 = vmatprep.mubr.msk.bf16.mxu1 %vm637_vm2, %v5838_v29  ;;  %v6080_v29 = vld [vmem:[%s7609_s2 + $0x18] sm:$0xff]  }
  0x68   : > { %5016 = vmatmul.mubr.msk.bf16.gmra.mrb[20].mxu0 %vm637_vm2, %v1659_v20  ;;  %v5460_v20 = vld [vmem:[#allocation2 + $0x58] sm:$0xff]  }
  0x69   : > { %5021 = vmatprep.mubr.msk.bf16.mxu0 %vm637_vm2, %v1863_v3  ;;  %3282 = vrot.lane.b32.xlu1 %v6203_v48, %s5636_s28  ;;  %v6276_v3 = vld [vmem:[%s6151_s20 + $0x88] sm:$0xff] }
  0x6e   : > { %4918 = vmatmul.mubr.msk.bf16.vlgmr.msra.gmra.mrb[0].mxu1 %vm637_vm2, %v5840_v30  ;;  %v1868_v30 = vrot.slane %v5890_v10, 1  ;;  %v1874_v10 = vrot.slane %v5931_v52, 1  ;;  %v1878_v52 = vrot.slane %v5947_v7, 1  ;;  %v1882_v7 = vrot.slane %v6001_v14, 1  ;;  %v5451_v14 = vld [vmem:[#allocation2 + $0x18] sm:$0xff]  }
  0x6f   : > { %4921 = vmatprep.mubr.msk.bf16.mxu1 %vm637_vm2, %v5856_v38  ;;  %4942 = vmatpush3.bf16.msra.mxu1 %v5872_v54  ;;  %v1870_v38 = vrot.slane %v5908_v23, 1  ;;  %v1876_v23 = vrot.slane %v5940_v63, 1  ;;  %v1880_v63 = vrot.slane %v5994_v4, 1 }
  0x70   : > { %4967 = vmatprep.subr.bf16.mxu1 %v6080_v29  ;;  %5022 = vmatmul.mubr.msk.bf16.vlgmr.msra.gmra.mrb[0].mxu0 %vm637_vm2, %v1865_v31  ;;  %v1869_v53 = vsel %vm968_vm3, %v1866_v25, %v1868_v30  ;;  %v1885_v4 = vsel %vm968_vm3, %v1882_v7, %v1884_v35  ;;  %v6294_v31 = vld [vmem:[%s6151_s20 + $0x98] sm:$0xff] }
  0x71   : > { %5046 = vmatpush3.bf16.msra.mxu0 %v5886_v6  ;;  %5025 = vmatprep.mubr.msk.bf16.mxu0 %vm637_vm2, %v1867_v34  ;;  %v1871_v54 = vsel %vm968_vm3, %v1868_v30, %v1870_v38  ;;  %v1872_v6 = vrot.slane %v5920_v40, 1  ;;  %v426_v40 = vld [vmem:[%s5957_s23 + $0x18] sm:$0xf]  ;;  %v1883_v33 = vsel %vm968_vm3, %v1880_v63, %v1882_v7  ;;  %v5461_v34 = vld [vmem:[#allocation2 + $0x60] sm:$0xff]  }
  0x72   : > { %5071 = vmatprep.subr.bf16.mxu0 %v6092_v47  ;;  %435 = vst.msk [vmem:[#allocation2 + $0x78] sm:$0xf] %vm395_vm0, %v426_v40  ;;  %v6300_v30 = vld [vmem:[%s6151_s20 + $0xa0] sm:$0xff]  ;;  %v6323_v40 = vld [vmem:[%s6151_s20 + $0xb8] sm:$0xff] }
  0x73   : > { %v6338_v35 = vld [vmem:[#allocation2 + $0x38] sm:$0xff]  }
  0x76   : > { %4922 = vmatmul.mubr.msk.bf16.gmra.mrb[4].mxu1 %vm637_vm2, %v5864_v51  ;;  %v1873_v51 = vsel %vm968_vm3, %v1870_v38, %v1872_v6 }
  0x77   : > { %4925 = vmatprep.mubr.msk.bf16.mxu1 %vm637_vm2, %v5881_v5  ;;  %v1875_v5 = vsel %vm968_vm3, %v1872_v6, %v1874_v10  ;;  %v6316_v6 = vld [vmem:[%s6151_s20 + $0xb0] sm:$0xff] }
  0x78   : > { %5026 = vmatmul.mubr.msk.bf16.gmra.mrb[4].mxu0 %vm637_vm2, %v1869_v53 }
  0x79   : > { %5029 = vmatprep.mubr.msk.bf16.mxu0 %vm637_vm2, %v1871_v54  ;;  %v6310_v54 = vld [vmem:[#allocation2 + $0x28] sm:$0xff]  }
  0x7a   : > { %v2472_v7 = vshrl.u32 %v6310_v54, 16 }
  0x7e   : > { %4926 = vmatmul.mubr.msk.bf16.gmra.mrb[8].mxu1 %vm637_vm2, %v5895_v15  ;;  %v1877_v15 = vsel %vm968_vm3, %v1874_v10, %v1876_v23  ;;  %v5465_v10 = vld [vmem:[#allocation2 + $0xc] sm:$0xff]  }
  0x7f   : > { %4929 = vmatprep.mubr.msk.bf16.mxu1 %vm637_vm2, %v5913_v27  ;;  %v1879_v27 = vsel %vm968_vm3, %v1876_v23, %v1878_v52  ;;  %v6318_v23 = vld [vmem:[#allocation2 + $0x30] sm:$0xff]  }
  0x80   : > { %5030 = vmatmul.mubr.msk.bf16.gmra.mrb[8].mxu0 %vm637_vm2, %v1873_v51 }
  0x81   : > { %5033 = vmatprep.mubr.msk.bf16.mxu0 %vm637_vm2, %v1875_v5 }
  0x86   : > { %4930 = vmatmul.mubr.msk.bf16.gmra.mrb[12].mxu1 %vm637_vm2, %v5923_v42  ;;  %v1881_v42 = vsel %vm968_vm3, %v1878_v52, %v1880_v63  ;;  %v5463_v52 = vld [vmem:[#allocation2 + $0x70] sm:$0xff]  }
  0x87   : > { %4933 = vmatprep.mubr.msk.bf16.mxu1 %vm637_vm2, %v5936_v58  ;;  %v988_v58 = vrot.slane %v5965_v22, 1 }
  0x88   : > { %5034 = vmatmul.mubr.msk.bf16.gmra.mrb[12].mxu0 %vm637_vm2, %v1877_v15  ;;  %v2468_v15 = vshll.u32 %v6310_v54, 16 }
  0x89   : > { %5037 = vmatprep.mubr.msk.bf16.mxu0 %vm637_vm2, %v1879_v27  ;;  %v989_v11 = vsel %vm968_vm3, %v986_v8, %v988_v58 }
  0x8e   : > { %4934 = vmatmul.mubr.msk.bf16.gmra.mrb[16].mxu1 %vm637_vm2, %v5942_v0  ;;  %v2362_v0 = vld [vmem:[#allocation2 + $0x18] sm:$0xf] }
  0x8f   : > { %4937 = vmatprep.mubr.msk.bf16.mxu1 %vm637_vm2, %v5965_v22  ;;  %v6286_v22 = vld [vmem:[#allocation2 + $0x20] sm:$0xff]  }
  0x90   : > { %5038 = vmatmul.mubr.msk.bf16.gmra.mrb[16].mxu0 %vm637_vm2, %v1881_v42  ;;  %v2464_v27 = vshrl.u32 %v6286_v22, 16  ;;  %v2476_v42 = vshll.u32 %v6318_v23, 16 }
  0x91   : > { %5041 = vmatprep.mubr.msk.bf16.mxu0 %vm637_vm2, %v1883_v33  ;;  %v2470_v33 = vrot.slane %v2468_v15, 1 }
  0x96   : > { %4938 = vmatmul.mubr.msk.bf16.gmra.mrb[20].mxu1 %vm637_vm2, %v5989_v60  ;;  %v2460_v60 = vshll.u32 %v6286_v22, 16 }
  0x97   : > { %4943 = vmatprep.mubr.msk.bf16.mxu1 %vm637_vm2, %v6020_v44  ;;  %v6178_v44 = vld [vmem:[%s6151_s20 + $0x20] sm:$0xff] }
  0x98   : > { %5042 = vmatmul.mubr.msk.bf16.gmra.mrb[20].mxu0 %vm637_vm2, %v1885_v4  ;;  %3276 = vrot.lane.b32.xlu0 %v6178_v44, %s5636_s28  ;;  %v2462_v5 = vrot.slane %v2460_v60, 1 }
  0x99   : > { %5047 = vmatprep.mubr.msk.bf16.mxu0 %vm637_vm2, %v5451_v14  ;;  %v5471_v14 = vld [vmem:[#allocation2 + $0x1c] sm:$0xff]  }
  0x9a   : > { %v2466_v4 = vor.u32 %v2464_v27, %v2462_v5  ;;  %v5479_v27 = vld [vmem:[#allocation2 + $0x3c] sm:$0xff]  }
  0x9c   : > { %3280 = vrot.lane.b32.xlu0 %v6197_v46, %s5636_s28 }
  0x9e   : > { %4944 = vmatmul.mubr.msk.bf16.vlgmr.msra.gmra.mrb[0].mxu1 %vm637_vm2, %v6029_v32  ;;  %v6220_v32 = vld [vmem:[%s6151_s20 + $0x48] sm:$0xff] }
  0x9f   : > { %4947 = vmatprep.mubr.msk.bf16.mxu1 %vm637_vm2, %v6035_v59  ;;  %4968 = vmatpush3.bf16.msra.mxu1 %v6080_v29  ;;  %v5457_v59 = vld [vmem:[#allocation2 + $0x40] sm:$0xff]   ;;  %v991_v29 = vsel %vm968_vm3, %v988_v58, %v990_v17  ;;  %v6307_v17 = vld [vmem:[%s6151_s20 + $0xa8] sm:$0xff] }
  0xa0   : > { %5048 = vmatmul.mubr.msk.bf16.vlgmr.msra.gmra.mrb[0].mxu0 %vm637_vm2, %v5453_v41  ;;  %3284 = vrot.lane.b32.xlu0 %v6210_v55, %s5636_s28  ;;  %v2474_v41 = vor.u32 %v2472_v7, %v2470_v33  ;;  %v5473_v58 = vld [vmem:[#allocation2 + $0x24] sm:$0xff]  }
  0xa1   : > { %5072 = vmatpush3.bf16.msra.mxu0 %v6092_v47  ;;  %5051 = vmatprep.mubr.msk.bf16.mxu0 %vm637_vm2, %v5454_v43  ;;  %v5462_v47 = vld [vmem:[#allocation2 + $0x68] sm:$0xff]   ;;  %v2478_v43 = vrot.slane %v2476_v42, 1  ;;  %v6370_v42 = vld [vmem:[#allocation2 + $0x60] sm:$0xff]  }
  0xa2   : > { %5097 = vmatprep.subr.bf16.mxu0 %v6186_v37  ;;  %3286 = vrot.lane.b32.xlu1 %v6220_v32, %s5636_s28 }
  0xa4   : > { %3288 = vrot.lane.b32.xlu0 %v6224_v56, %s5636_s28 }
  0xa6   : > { %4948 = vmatmul.mubr.msk.bf16.gmra.mrb[4].mxu1 %vm637_vm2, %v6038_v61  ;;  %v5458_v61 = vld [vmem:[#allocation2 + $0x48] sm:$0xff]   ;;  %3290 = vrot.lane.b32.xlu1 %v6229_v57, %s5636_s28 }
  0xa7   : > { %4951 = vmatprep.mubr.msk.bf16.mxu1 %vm637_vm2, %v6044_v12  ;;  %v6251_v12 = vld [vmem:[%s6151_s20 + $0x70] sm:$0xff] }
  0xa8   : > { %5052 = vmatmul.mubr.msk.bf16.gmra.mrb[4].mxu0 %vm637_vm2, %v5455_v49  ;;  %3292 = vrot.lane.b32.xlu0 %v6236_v62, %s5636_s28  ;;  %v6341_v49 = vld [vmem:[#allocation2 + $0x40] sm:$0xff]  }
  0xa9   : > { %5055 = vmatprep.mubr.msk.bf16.mxu0 %vm637_vm2, %v5456_v50  ;;  %v2484_v50 = vshll.u32 %v6338_v35, 16 }
  0xaa   : > { %3294 = vrot.lane.b32.xlu1 %v6244_v9, %s5636_s28 }
  0xac   : > { %3296 = vrot.lane.b32.xlu0 %v6251_v12, %s5636_s28 }
  0xae   : > { %4952 = vmatmul.mubr.msk.bf16.gmra.mrb[8].mxu1 %vm637_vm2, %v6047_v13  ;;  %v987_v13 = vsel %vm968_vm3, %v984_v1, %v986_v8  ;;  %3298 = vrot.lane.b32.xlu1 %v6261_v18, %s5636_s28  ;;  %v2479_v8 = vsel %vm530_vm1, %v2474_v41, %v2478_v43 }
  0xaf   : > { %4955 = vmatprep.mubr.msk.bf16.mxu1 %vm637_vm2, %v6050_v28  ;;  %v6258_v28 = vld [vmem:[#allocation2 + $0x1c] sm:$0xf] }
  0xb0   : > { %5056 = vmatmul.mubr.msk.bf16.gmra.mrb[8].mxu0 %vm637_vm2, %v5457_v59  ;;  %v4699_v1 = vcombine.low %v2362_v0, %v6258_v28  ;;  %3300 = vrot.lane.b32.xlu0 %v6268_v21, %s5636_s28  ;;  %v2471_v59 = vsel %vm530_vm1, %v2466_v4, %v2470_v33  ;;  %v2492_v0 = vshll.u32 %v6341_v49, 16 }
  0xb1   : > { %5059 = vmatprep.mubr.msk.bf16.mxu0 %vm637_vm2, %v5458_v61  ;;  %v2480_v61 = vshrl.u32 %v6318_v23, 16 }
  0xb2   : > { %v2455_v25 = vshll.u32 %v4699_v1, 16  ;;  %3302 = vrot.lane.b32.xlu1 %v6276_v3, %s5636_s28  ;;  %v2453_v38 = vshrl.u32 %v4699_v1, 16 }
  0xb3   : > { %v2482_v1 = vor.u32 %v2480_v61, %v2478_v43  ;;  %v2524_v43 = vshll.u32 %v6370_v42, 16  ;;  %v5481_v61 = vld [vmem:[#allocation2 + $0x44] sm:$0xff]  }
  0xb4   : > { %v2457_v53 = vrot.slane %v2455_v25, 1 }
  0xb6   : > { %4956 = vmatmul.mubr.msk.bf16.gmra.mrb[12].mxu1 %vm637_vm2, %v6055_v16  ;;  %v6283_v16 = vld [vmem:[%s6151_s20 + $0x90] sm:$0xff]  ;;  %3306 = vrot.lane.b32.xlu1 %v6294_v31, %s5636_s28  ;;  %v2458_v51 = vor.u32 %v2457_v53, %v2453_v38  ;;  %v2496_v53 = vshrl.u32 %v6341_v49, 16  ;;  %s5546_s20 = scalar_lea.vmem %s5545_s27, 6144 }
  0xb7   : > { %4959 = vmatprep.mubr.msk.bf16.mxu1 %vm637_vm2, %v987_v13  ;;  %3304 = vrot.lane.b32.xlu0 %v6283_v16, %s5636_s28  ;;  %v2488_v13 = vshrl.u32 %v6338_v35, 16 }
  0xb8   : > { %5060 = vmatmul.mubr.msk.bf16.gmra.mrb[12].mxu0 %vm637_vm2, %v5459_v19  ;;  %v2463_v63 = vsel %vm530_vm1, %v2458_v51, %v2462_v5  ;;  %v2486_v19 = vrot.slane %v2484_v50, 1  ;;  %v6367_v5 = vld [vmem:[#allocation2 + $0x58] sm:$0xff]  }
  0xb9   : > { %5063 = vmatprep.mubr.msk.bf16.mxu0 %vm637_vm2, %v5460_v20  ;;  %v6352_v20 = vld [vmem:[#allocation2 + $0x48] sm:$0xff]   ;;  %v2516_v33 = vshll.u32 %v6367_v5, 16  ;;  %v2520_v41 = vshrl.u32 %v6367_v5, 16 }
  0xba   : > { %3310 = vrot.lane.b32.xlu1 %v6307_v17, %s5636_s28  ;;  %v2490_v25 = vor.u32 %v2488_v13, %v2486_v19  ;;  %v2487_v38 = vsel %vm530_vm1, %v2482_v1, %v2486_v19  ;;  %v2504_v60 = vshrl.u32 %v6352_v20, 16  ;;  %v5483_v13 = vld [vmem:[#allocation2 + $0x4c] sm:$0xff]   ;;  %v2526_v19 = vrot.slane %v2524_v43, 1 }
  0xbb   : > { %3308 = vrot.lane.b32.xlu0 %v6300_v30, %s5636_s28  ;;  %v2518_v50 = vrot.slane %v2516_v33, 1 }
  0xbe   : > { %4960 = vmatmul.mubr.msk.bf16.gmra.mrb[16].mxu1 %vm637_vm2, %v989_v11  ;;  %3314 = vrot.lane.b32.xlu1 %v6323_v40, %s5636_s28  ;;  %v5475_v11 = vld [vmem:[#allocation2 + $0x2c] sm:$0xff]  }
  0xbf   : > { %4963 = vmatprep.mubr.msk.bf16.mxu1 %vm637_vm2, %v991_v29  ;;  %3312 = vrot.lane.b32.xlu0 %v6316_v6, %s5636_s28  ;;  %v2494_v29 = vrot.slane %v2492_v0, 1  ;;  %v2522_v0 = vor.u32 %v2520_v41, %v2518_v50 }
  0xc0   : > { %5064 = vmatmul.mubr.msk.bf16.gmra.mrb[16].mxu0 %vm637_vm2, %v5461_v34  ;;  %v6356_v34 = vld [vmem:[#allocation2 + $0x50] sm:$0xff]  }
  0xc1   : > { %5067 = vmatprep.mubr.msk.bf16.mxu0 %vm637_vm2, %v5462_v47  ;;  %v2500_v47 = vshll.u32 %v6352_v20, 16  ;;  %v2498_v15 = vor.u32 %v2496_v53, %v2494_v29 }
  0xc3   : > { %v2502_v51 = vrot.slane %v2500_v47, 1 }
  0xc5   : > { %v2503_v4 = vsel %vm530_vm1, %v2498_v15, %v2502_v51 }
  0xc6   : > { %4964 = vmatmul.mubr.msk.bf16.gmra.mrb[20].mxu1 %vm637_vm2, %v6070_v24  ;;  %v5469_v24 = vld [vmem:[#allocation2 + $0x14] sm:$0xff]  }
  0xc7   : > { %4969 = vmatprep.mubr.msk.bf16.mxu1 %vm637_vm2, %v5465_v10  ;;  %v2508_v10 = vshll.u32 %v6356_v34, 16 }
  0xc8   : > { %5068 = vmatmul.mubr.msk.bf16.gmra.mrb[20].mxu0 %vm637_vm2, %v5463_v52  ;;  %v5477_v52 = vld [vmem:[#allocation2 + $0x34] sm:$0xff]  }
  0xc9   : > { %5073 = vmatprep.mubr.msk.bf16.mxu0 %vm637_vm2, %v2463_v63  ;;  %v2506_v63 = vor.u32 %v2504_v60, %v2502_v51  ;;  %v2510_v7 = vrot.slane %v2508_v10, 1  ;;  %v6396_v10 = vld [vmem:[#allocation2 + $0x78] ss:$0 sps:$4 sm:$0x11]   ;;  %v5487_v51 = vld [vmem:[#allocation2 + $0x5c] sm:$0xff]  }
  0xca   : > { %v2548_v33 = vshll.u32 %v6396_v10, 16 }
  0xcc   : > { %v2550_v43 = vrot.slane %v2548_v33, 1 }
  0xce   : > { %4970 = vmatmul.mubr.msk.bf16.vlgmr.msra.gmra.mrb[0].mxu1 %vm637_vm2, %v5469_v24  ;;  %v2512_v24 = vshrl.u32 %v6356_v34, 16 }
  0xcf   : > { %4973 = vmatprep.mubr.msk.bf16.mxu1 %vm637_vm2, %v5471_v14  ;;  %v2511_v14 = vsel %vm530_vm1, %v2506_v63, %v2510_v7 }
  0xd0   : > { %5074 = vmatmul.mubr.msk.bf16.vlgmr.msra.gmra.mrb[0].mxu0 %vm637_vm2, %v2471_v59  ;;  %v6381_v59 = vld [vmem:[#allocation2 + $0x68] sm:$0xff]  }
  0xd1   : > { %5098 = vmatpush3.bf16.msra.mxu0 %v6186_v37  ;;  %5077 = vmatprep.mubr.msk.bf16.mxu0 %vm637_vm2, %v2479_v8  ;;  %v2495_v37 = vsel %vm530_vm1, %v2490_v25, %v2494_v29  ;;  %v2514_v8 = vor.u32 %v2512_v24, %v2510_v7  ;;  %v2532_v1 = vshll.u32 %v6381_v59, 16  ;;  %v2528_v25 = vshrl.u32 %v6370_v42, 16 }
  0xd2   : > { %v2527_v29 = vsel %vm530_vm1, %v2522_v0, %v2526_v19  ;;  %v2536_v47 = vshrl.u32 %v6381_v59, 16  ;;  %v2758_v0 = vrot.slane %v6318_v23, 1  ;;  %v2766_v23 = vrot.slane %v6356_v34, 1 }
  0xd3   : > { %v2534_v53 = vrot.slane %v2532_v1, 1  ;;  %v2530_v60 = vor.u32 %v2528_v25, %v2526_v19 }
  0xd5   : > { %v2535_v63 = vsel %vm530_vm1, %v2530_v60, %v2534_v53 }
  0xd6   : > { %4974 = vmatmul.mubr.msk.bf16.gmra.mrb[4].mxu1 %vm637_vm2, %v5473_v58  ;;  %v6384_v58 = vld [vmem:[#allocation2 + $0x70] sm:$0xff]  }
  0xd7   : > { %4977 = vmatprep.mubr.msk.bf16.mxu1 %vm637_vm2, %v5475_v11  ;;  %v2519_v11 = vsel %vm530_vm1, %v2514_v8, %v2518_v50  ;;  %v2544_v7 = vshrl.u32 %v6384_v58, 16 }
  0xd8   : > { %5078 = vmatmul.mubr.msk.bf16.gmra.mrb[4].mxu0 %vm637_vm2, %v2487_v38  ;;  %v2540_v38 = vshll.u32 %v6384_v58, 16 }
  0xd9   : > { %5081 = vmatprep.mubr.msk.bf16.mxu0 %vm637_vm2, %v2495_v37  ;;  %v5485_v37 = vld [vmem:[#allocation2 + $0x54] sm:$0xff]  }
  0xda   : > { %v2542_v15 = vrot.slane %v2540_v38, 1 }
  0xdc   : > { %v2546_v41 = vor.u32 %v2544_v7, %v2542_v15 }
  0xde   : > { %4978 = vmatmul.mubr.msk.bf16.gmra.mrb[8].mxu1 %vm637_vm2, %v5477_v52  ;;  %v2538_v52 = vor.u32 %v2536_v47, %v2534_v53  ;;  %v2551_v8 = vsel %vm530_vm1, %v2546_v41, %v2550_v43  ;;  %v3269_v47 = vpop.permute.xlu0 %3268  ;;  %v3273_v53 = vpop.permute.xlu1 %3272  ;;  %v2772_v41 = vrot.slane %v6381_v59, 1  ;;  %v2774_v43 = vrot.slane %v6384_v58, 1 }
  0xdf   : > { %4981 = vmatprep.mubr.msk.bf16.mxu1 %vm637_vm2, %v5479_v27  ;;  %v2747_v27 = vld [vmem:[#allocation2 + $0x18] sm:$0xe]  ;;  %v6428_v38 = vsub.f32 %v6154_v26, %v3269_v47 }
  0xe0   : > { %5082 = vmatmul.mubr.msk.bf16.gmra.mrb[8].mxu0 %vm637_vm2, %v2503_v4  ;;  %v2543_v4 = vsel %vm530_vm1, %v2538_v52, %v2542_v15  ;;  %v4725_v24 = vcombine.low %v2747_v27, %v6258_v28  ;;  %v2756_v28 = vrot.slane %v6310_v54, 1  ;;  %v2764_v54 = vrot.slane %v6352_v20, 1 }
  0xe1   : > { %5085 = vmatprep.mubr.msk.bf16.mxu0 %vm637_vm2, %v2511_v14  ;;  %v5489_v14 = vld [vmem:[#allocation2 + $0x64] sm:$0xff]   ;;  %3556 = vrot.lane.b32.xlu0 %v6428_v38, %s5637_s9  ;;  %v2770_v52 = vrot.slane %v6370_v42, 1  ;;  %v2775_v59 = vsel %vm968_vm3, %v2772_v41, %v2774_v43 }
  0xe2   : > { %v2753_v50 = vrot.slane %v4725_v24, 1  ;;  %v2759_v1 = vsel %vm968_vm3, %v2756_v28, %v2758_v0  ;;  %v3271_v60 = vpop.permute.xlu0 %3270  ;;  %v3275_v34 = vpop.permute.xlu1 %3274 }
  0xe3   : > { %v6438_v20 = vsub.f32 %v6166_v39, %v3271_v60  ;;  %v6449_v15 = vsub.f32 %v6169_v2, %v3275_v34 }
  0xe5   : > { %3558 = vrot.lane.b32.xlu1 %v6438_v20, %s5637_s9 }
  0xe6   : > { %4982 = vmatmul.mubr.msk.bf16.gmra.mrb[12].mxu1 %vm637_vm2, %v5481_v61  ;;  %v2754_v61 = vrot.slane %v6286_v22, 1  ;;  %v2760_v22 = vrot.slane %v6338_v35, 1  ;;  %v3279_v7 = vpop.permute.xlu1 %3278 }
  0xe7   : > { %4985 = vmatprep.mubr.msk.bf16.mxu1 %vm637_vm2, %v5483_v13  ;;  %v6461_v42 = vsub.f32 %v6192_v45, %v3279_v7 }
  0xe8   : > { %5086 = vmatmul.mubr.msk.bf16.gmra.mrb[12].mxu0 %vm637_vm2, %v2519_v11  ;;  %v2755_v13 = vsel %vm968_vm3, %v2753_v50, %v2754_v61  ;;  %v2757_v19 = vsel %vm968_vm3, %v2754_v61, %v2756_v28  ;;  %v2762_v11 = vrot.slane %v6341_v49, 1  ;;  %v2761_v25 = vsel %vm968_vm3, %v2758_v0, %v2760_v22 }
  0xe9   : > { %5089 = vmatprep.mubr.msk.bf16.mxu0 %vm637_vm2, %v2527_v29  ;;  %v6434_v49 = vsub.f32 %v6160_v36, %v3273_v53  ;;  %3562 = vrot.lane.b32.xlu1 %v6449_v15, %s5637_s9  ;;  %v2773_v28 = vsel %vm968_vm3, %v2770_v52, %v2772_v41 }
  0xea   : > { %v2763_v29 = vsel %vm968_vm3, %v2760_v22, %v2762_v11  ;;  %v2765_v35 = vsel %vm968_vm3, %v2762_v11, %v2764_v54  ;;  %v2776_v22 = vrot.slane %v6396_v10, 1 }
  0xeb   : > { %3560 = vrot.lane.b32.xlu0 %v6434_v49, %s5637_s9 }
  0xed   : > { %3566 = vrot.lane.b32.xlu1 %v6461_v42, %s5637_s9 }
  0xee   : > { %4986 = vmatmul.mubr.msk.bf16.gmra.mrb[16].mxu1 %vm637_vm2, %v5485_v37  ;;  %v2767_v37 = vsel %vm968_vm3, %v2764_v54, %v2766_v23 }
  0xef   : > { %4989 = vmatprep.mubr.msk.bf16.mxu1 %vm637_vm2, %v5487_v51  ;;  %v2768_v51 = vrot.slane %v6367_v5, 1 }
  0xf0   : > { %5090 = vmatmul.mubr.msk.bf16.gmra.mrb[16].mxu0 %vm637_vm2, %v2535_v63 }
  0xf1   : > { %5093 = vmatprep.mubr.msk.bf16.mxu0 %vm637_vm2, %v2543_v4  ;;  %v2769_v33 = vsel %vm968_vm3, %v2766_v23, %v2768_v51  ;;  %v2771_v5 = vsel %vm968_vm3, %v2768_v51, %v2770_v52  ;;  %v2777_v23 = vsel %vm968_vm3, %v2774_v43, %v2776_v22  ;;  %v5491_v51 = vld [vmem:[%s7611_s4] sm:$0xff]   ;;  %v3369_v43 = vmul.f32 0.5, %v6461_v42 }
  0xf2   : > { %5123 = vmatprep.subr.bf16.mxu1 %v5491_v51 }
  0xf3   : > { %5124 = vmatpush3.bf16.msra.mxu1 %v5491_v51 }
  0xf6   : > { %4990 = vmatmul.mubr.msk.bf16.gmra.mrb[20].mxu1 %vm637_vm2, %v5489_v14  ;;  %v3283_v14 = vpop.permute.xlu1 %3282 }
  0xf7   : > { %v6475_v50 = vsub.f32 %v6203_v48, %v3283_v14  ;;  %v3367_v14 = vmul.f32 0.5, %v6449_v15 }
  0xf8   : > { %5094 = vmatmul.mubr.msk.bf16.gmra.mrb[20].mxu0 %vm637_vm2, %v2551_v8 }
  0xf9   : > { %5099 = vmatprep.mubr.msk.bf16.mxu0 %vm637_vm2, %v2755_v13  ;;  %3570 = vrot.lane.b32.xlu1 %v6475_v50, %s5637_s9 }
 0x100   : > { %5100 = vmatmul.mubr.msk.bf16.vlgmr.msra.gmra.mrb[0].mxu0 %vm637_vm2, %v2757_v19 }
 0x101   : > { %5103 = vmatprep.mubr.msk.bf16.mxu0 %vm637_vm2, %v2759_v1 }
 0x108   : > { %5104 = vmatmul.mubr.msk.bf16.gmra.mrb[4].mxu0 %vm637_vm2, %v2761_v25 }
 0x109   : > { %5107 = vmatprep.mubr.msk.bf16.mxu0 %vm637_vm2, %v2763_v29 }
 0x10a   : > { %v3277_v27 = vpop.permute.xlu0 %3276 }
 0x10b   : > { %v6452_v63 = vsub.f32 %v6178_v44, %v3277_v27  ;;  %v3364_v27 = vmul.f32 0.5, %v6428_v38 }
 0x10d   : > { %3564 = vrot.lane.b32.xlu0 %v6452_v63, %s5637_s9 }
 0x10e   : > { %v3281_v4 = vpop.permute.xlu0 %3280 }
 0x10f   : > { %v6464_v24 = vsub.f32 %v6197_v46, %v3281_v4  ;;  %v3368_v4 = vmul.f32 0.5, %v6452_v63 }
 0x110   : > { %5108 = vmatmul.mubr.msk.bf16.gmra.mrb[8].mxu0 %vm637_vm2, %v2765_v35 }
 0x111   : > { %5111 = vmatprep.mubr.msk.bf16.mxu0 %vm637_vm2, %v2767_v37  ;;  %3568 = vrot.lane.b32.xlu0 %v6464_v24, %s5637_s9  ;;  %v3370_v41 = vmul.f32 0.5, %v6464_v24 }
 0x112   : > { %v3285_v61 = vpop.permute.xlu0 %3284 }
 0x113   : > { %v6478_v8 = vsub.f32 %v6210_v55, %v3285_v61 }
 0x114   : > { %v3287_v13 = vpop.permute.xlu1 %3286 }
 0x115   : > { %3572 = vrot.lane.b32.xlu0 %v6478_v8, %s5637_s9  ;;  %v6487_v58 = vsub.f32 %v6220_v32, %v3287_v13  ;;  %v3372_v61 = vmul.f32 0.5, %v6478_v8  ;;  %v3371_v13 = vmul.f32 0.5, %v6475_v50 }
 0x116   : > { %v3289_v0 = vpop.permute.xlu0 %3288 }
 0x117   : > { %v6490_v19 = vsub.f32 %v6224_v56, %v3289_v0  ;;  %3574 = vrot.lane.b32.xlu1 %v6487_v58, %s5637_s9 }
 0x118   : > { %5112 = vmatmul.mubr.msk.bf16.gmra.mrb[12].mxu0 %vm637_vm2, %v2769_v33  ;;  %v3291_v1 = vpop.permute.xlu1 %3290  ;;  %v3366_v33 = vmul.f32 0.5, %v6434_v49 }
 0x119   : > { %5115 = vmatprep.mubr.msk.bf16.mxu0 %vm637_vm2, %v2771_v5  ;;  %3576 = vrot.lane.b32.xlu0 %v6490_v19, %s5637_s9  ;;  %v6500_v11 = vsub.f32 %v6229_v57, %v3291_v1  ;;  %v3365_v5 = vmul.f32 0.5, %v6438_v20 }
 0x11a   : > { %v3293_v25 = vpop.permute.xlu0 %3292 }
 0x11b   : > { %v6503_v29 = vsub.f32 %v6236_v62, %v3293_v25  ;;  %3578 = vrot.lane.b32.xlu1 %v6500_v11, %s5637_s9  ;;  %v3375_v1 = vmul.f32 0.5, %v6500_v11 }
 0x11c   : > { %v3295_v54 = vpop.permute.xlu1 %3294 }
 0x11d   : > { %3580 = vrot.lane.b32.xlu0 %v6503_v29, %s5637_s9  ;;  %v6511_v10 = vsub.f32 %v6244_v9, %v3295_v54  ;;  %v3376_v0 = vmul.f32 0.5, %v6503_v29 }
 0x11e   : > { %v3297_v47 = vpop.permute.xlu0 %3296 }
 0x11f   : > { %v6514_v53 = vsub.f32 %v6251_v12, %v3297_v47  ;;  %3582 = vrot.lane.b32.xlu1 %v6511_v10, %s5637_s9  ;;  %v3377_v25 = vmul.f32 0.5, %v6511_v10 }
 0x120   : > { %5116 = vmatmul.mubr.msk.bf16.gmra.mrb[16].mxu0 %vm637_vm2, %v2773_v28  ;;  %v3299_v35 = vpop.permute.xlu1 %3298  ;;  %v3374_v28 = vmul.f32 0.5, %v6490_v19 }
 0x121   : > { %5119 = vmatprep.mubr.msk.bf16.mxu0 %vm637_vm2, %v2775_v59  ;;  %3584 = vrot.lane.b32.xlu0 %v6514_v53, %s5637_s9  ;;  %v6522_v37 = vsub.f32 %v6261_v18, %v3299_v35  ;;  %v3373_v59 = vmul.f32 0.5, %v6487_v58  ;;  %v3378_v22 = vmul.f32 0.5, %v6514_v53 }
 0x122   : > { %v3301_v60 = vpop.permute.xlu0 %3300 }
 0x123   : > { %v6525_v34 = vsub.f32 %v6268_v21, %v3301_v60  ;;  %3586 = vrot.lane.b32.xlu1 %v6522_v37, %s5637_s9  ;;  %v3379_v47 = vmul.f32 0.5, %v6522_v37 }
 0x124   : > { %v3303_v52 = vpop.permute.xlu1 %3302 }
 0x125   : > { %3588 = vrot.lane.b32.xlu0 %v6525_v34, %s5637_s9  ;;  %v6536_v7 = vsub.f32 %v6276_v3, %v3303_v52 }
 0x127   : > { %3590 = vrot.lane.b32.xlu1 %v6536_v7, %s5637_s9  ;;  %v3381_v60 = vmul.f32 0.5, %v6536_v7 }
 0x128   : > { %5120 = vmatmul.mubr.msk.bf16.gmra.mrb[20].mxu0 %vm637_vm2, %v2777_v23  ;;  %v3380_v23 = vmul.f32 0.5, %v6525_v34  ;;  %v3307_v52 = vpop.permute.xlu1 %3306 }
 0x129   : > { %3412 = vrot.lane.b32.xlu0 %v3364_v27, %s5638_s14  ;;  %v3305_v54 = vpop.permute.xlu0 %3304 }
 0x12a   : > { %v3358_v35 = vsub.f32 %v6283_v16, %v3305_v54 }
 0x12b   : > { %3414 = vrot.lane.b32.xlu1 %v3365_v5, %s5638_s14 }
 0x12c   : > { %v3382_v51 = vmul.f32 0.5, %v3358_v35 }
 0x12d   : > { %3416 = vrot.lane.b32.xlu0 %v3366_v33, %s5638_s14  ;;  %v3309_v27 = vpop.permute.xlu0 %3308  ;;  %v3359_v33 = vsub.f32 %v6294_v31, %v3307_v52 }
 0x12e   : > { %v3360_v5 = vsub.f32 %v6300_v30, %v3309_v27 }
 0x12f   : > { %3418 = vrot.lane.b32.xlu1 %v3367_v14, %s5638_s14 }
 0x130   : > { %v3384_v14 = vmul.f32 0.5, %v3360_v5 }
 0x131   : > { %3420 = vrot.lane.b32.xlu0 %v3368_v4, %s5638_s14  ;;  %v3383_v4 = vmul.f32 0.5, %v3359_v33 }
 0x133   : > { %3422 = vrot.lane.b32.xlu1 %v3369_v43, %s5638_s14  ;;  %v3313_v43 = vpop.permute.xlu0 %3312 }
 0x135   : > { %3424 = vrot.lane.b32.xlu0 %v3370_v41, %s5638_s14  ;;  %v3311_v41 = vpop.permute.xlu1 %3310 }
 0x137   : > { %3426 = vrot.lane.b32.xlu1 %v3371_v13, %s5638_s14  ;;  %v3362_v13 = vsub.f32 %v6316_v6, %v3313_v43 }
 0x139   : > { %3428 = vrot.lane.b32.xlu0 %v3372_v61, %s5638_s14  ;;  %v3361_v61 = vsub.f32 %v6307_v17, %v3311_v41 }
 0x13b   : > { %3430 = vrot.lane.b32.xlu1 %v3373_v59, %s5638_s14  ;;  %v3386_v59 = vmul.f32 0.5, %v3362_v13 }
 0x13d   : > { %3432 = vrot.lane.b32.xlu0 %v3374_v28, %s5638_s14  ;;  %v3385_v28 = vmul.f32 0.5, %v3361_v61 }
 0x13f   : > { %3434 = vrot.lane.b32.xlu1 %v3375_v1, %s5638_s14 }
 0x141   : > { %3436 = vrot.lane.b32.xlu0 %v3376_v0, %s5638_s14  ;;  %v3315_v0 = vpop.permute.xlu1 %3314 }
 0x142   : > { %v3363_v1 = vsub.f32 %v6323_v40, %v3315_v0 }
 0x143   : > { %3438 = vrot.lane.b32.xlu1 %v3377_v25, %s5638_s14 }
 0x145   : > { %3440 = vrot.lane.b32.xlu0 %v3378_v22, %s5638_s14  ;;  %v3387_v22 = vmul.f32 0.5, %v3363_v1 }
 0x147   : > { %3442 = vrot.lane.b32.xlu1 %v3379_v47, %s5638_s14 }
 0x149   : > { %3444 = vrot.lane.b32.xlu0 %v3380_v23, %s5638_s14 }
 0x14b   : > { %3446 = vrot.lane.b32.xlu1 %v3381_v60, %s5638_s14 }
 0x14d   : > { %3448 = vrot.lane.b32.xlu0 %v3382_v51, %s5638_s14 }
 0x14f   : > { %3450 = vrot.lane.b32.xlu1 %v3383_v4, %s5638_s14 }
 0x151   : > { %3452 = vrot.lane.b32.xlu0 %v3384_v14, %s5638_s14 }
 0x153   : > { %3454 = vrot.lane.b32.xlu1 %v3385_v28, %s5638_s14 }
 0x155   : > { %3456 = vrot.lane.b32.xlu0 %v3386_v59, %s5638_s14 }
 0x157   : > { %3458 = vrot.lane.b32.xlu1 %v3387_v22, %s5638_s14 }
 0x159   : > { %3592 = vrot.lane.b32.xlu0 %v3358_v35, %s5637_s9 }
 0x15b   : > { %3594 = vrot.lane.b32.xlu1 %v3359_v33, %s5637_s9 }
 0x15d   : > { %3596 = vrot.lane.b32.xlu0 %v3360_v5, %s5637_s9 }
 0x15f   : > { %3598 = vrot.lane.b32.xlu1 %v3361_v61, %s5637_s9 }
 0x161   : > { %3600 = vrot.lane.b32.xlu0 %v3362_v13, %s5637_s9 }
 0x163   : > { %3602 = vrot.lane.b32.xlu1 %v3363_v1, %s5637_s9  ;;  %s4758_s9 = smul.u32 3072, %s5762_s11 }
 0x165   : > { %3820 = vrot.lane.b32.xlu0 %v6428_v38, %s5639_s17  ;;  %v6611_v38 = vpop.permute.xlu0 %3556 }
 0x167   : > { %3822 = vrot.lane.b32.xlu1 %v6438_v20, %s5639_s17  ;;  %v6619_v20 = vpop.permute.xlu1 %3558 }
 0x169   : > { %3824 = vrot.lane.b32.xlu0 %v6434_v49, %s5639_s17  ;;  %v6617_v49 = vpop.permute.xlu0 %3560 }
 0x16b   : > { %3826 = vrot.lane.b32.xlu1 %v6449_v15, %s5639_s17 }
 0x16d   : > { %3828 = vrot.lane.b32.xlu0 %v6452_v63, %s5639_s17  ;;  %v6627_v63 = vpop.permute.xlu1 %3562 }
 0x16f   : > { %3830 = vrot.lane.b32.xlu1 %v6461_v42, %s5639_s17 }
 0x171   : > { %3832 = vrot.lane.b32.xlu0 %v6464_v24, %s5639_s17  ;;  %v6635_v24 = vpop.permute.xlu1 %3566 }
 0x173   : > { %3834 = vrot.lane.b32.xlu1 %v6475_v50, %s5639_s17 }
 0x175   : > { %3836 = vrot.lane.b32.xlu0 %v6478_v8, %s5639_s17  ;;  %v6643_v8 = vpop.permute.xlu1 %3570 }
 0x177   : > { %3838 = vrot.lane.b32.xlu1 %v6487_v58, %s5639_s17 }
 0x179   : > { %3840 = vrot.lane.b32.xlu0 %v6490_v19, %s5639_s17 }
 0x17b   : > { %3842 = vrot.lane.b32.xlu1 %v6500_v11, %s5639_s17 }
 0x17d   : > { %3844 = vrot.lane.b32.xlu0 %v6503_v29, %s5639_s17 }
 0x17f   : > { %v6625_v15 = vpop.permute.xlu0 %3564  ;;  %3846 = vrot.lane.b32.xlu1 %v6511_v10, %s5639_s17 }
 0x181   : > { %3848 = vrot.lane.b32.xlu0 %v6514_v53, %s5639_s17 }
 0x183   : > { %v6633_v42 = vpop.permute.xlu0 %3568  ;;  %3850 = vrot.lane.b32.xlu1 %v6522_v37, %s5639_s17 }
 0x185   : > { %3852 = vrot.lane.b32.xlu0 %v6525_v34, %s5639_s17 }
 0x187   : > { %v6641_v50 = vpop.permute.xlu0 %3572  ;;  %3854 = vrot.lane.b32.xlu1 %v6536_v7, %s5639_s17 }
 0x189   : > { %3856 = vrot.lane.b32.xlu0 %v3358_v35, %s5639_s17  ;;  %v6650_v19 = vpop.permute.xlu1 %3574 }
 0x18b   : > { %v6648_v58 = vpop.permute.xlu0 %3576  ;;  %3858 = vrot.lane.b32.xlu1 %v3359_v33, %s5639_s17 }
 0x18d   : > { %3860 = vrot.lane.b32.xlu0 %v3360_v5, %s5639_s17  ;;  %v6656_v29 = vpop.permute.xlu1 %3578 }
 0x18f   : > { %v6654_v11 = vpop.permute.xlu0 %3580  ;;  %3862 = vrot.lane.b32.xlu1 %v3361_v61, %s5639_s17 }
 0x191   : > { %3864 = vrot.lane.b32.xlu0 %v3362_v13, %s5639_s17  ;;  %v6662_v53 = vpop.permute.xlu1 %3582 }
 0x193   : > { %v6660_v10 = vpop.permute.xlu0 %3584  ;;  %3866 = vrot.lane.b32.xlu1 %v3363_v1, %s5639_s17 }
 0x195   : > { %v6669_v7 = vpop.permute.xlu1 %3586 }
 0x197   : > { %v6665_v37 = vpop.permute.xlu0 %3588 }
 0x199   : > { %v6677_v35 = vpop.permute.xlu1 %3590 }
 0x19a   : > { %7645 = vst [vmem:[#allocation7_spill] sm:$0xff] %v6677_v35 }
 0x19b   : > { %v3413_v47 = vpop.permute.xlu0 %3412 }
 0x19c   : > { %v3484_v60 = vadd.f32 %v3413_v47, %v6154_v26 }
 0x19d   : > { %v3415_v27 = vpop.permute.xlu1 %3414 }
 0x19e   : > { %3676 = vrot.lane.b32.xlu0 %v3484_v60, %s5639_s17  ;;  %v3485_v4 = vadd.f32 %v3415_v27, %v6166_v39 }
 0x19f   : > { %v3417_v51 = vpop.permute.xlu0 %3416 }
 0x1a0   : > { %v3486_v33 = vadd.f32 %v3417_v51, %v6160_v36  ;;  %3678 = vrot.lane.b32.xlu1 %v3485_v4, %s5639_s17 }
 0x1a1   : > { %v6667_v34 = vpop.f32.mrb[0].mxu1  ;;  %v3419_v26 = vpop.permute.xlu1 %3418 }
 0x1a2   : > { %v6671_v25 = vpop.f32.mrb[1].mxu1  ;;  %3680 = vrot.lane.b32.xlu0 %v3486_v33, %s5639_s17  ;;  %v3487_v13 = vadd.f32 %v3419_v26, %v6169_v2 }
 0x1a3   : > { %v6673_v54 = vpop.f32.mrb[2].mxu1  ;;  %v3421_v43 = vpop.permute.xlu0 %3420 }
 0x1a4   : > { %v6675_v23 = vpop.f32.mrb[3].mxu1  ;;  %v3488_v61 = vadd.f32 %v3421_v43, %v6178_v44  ;;  %3682 = vrot.lane.b32.xlu1 %v3487_v13, %s5639_s17 }
 0x1a5   : > { %v3423_v28 = vpop.permute.xlu1 %3422 }
 0x1a6   : > { %3684 = vrot.lane.b32.xlu0 %v3488_v61, %s5639_s17  ;;  %v3489_v1 = vadd.f32 %v3423_v28, %v6192_v45 }
 0x1a7   : > { %v3425_v36 = vpop.permute.xlu0 %3424 }
 0x1a8   : > { %v3490_v59 = vadd.f32 %v3425_v36, %v6197_v46  ;;  %3686 = vrot.lane.b32.xlu1 %v3489_v1, %s5639_s17 }
 0x1a9   : > { %v6681_v52 = vpop.f32.mrb[4].mxu1  ;;  %v3427_v47 = vpop.permute.xlu1 %3426 }
 0x1aa   : > { %v6684_v5 = vpop.f32.mrb[5].mxu1  ;;  %3688 = vrot.lane.b32.xlu0 %v3490_v59, %s5639_s17  ;;  %v3491_v51 = vadd.f32 %v3427_v47, %v6203_v48 }
 0x1ab   : > { %v6687_v14 = vpop.f32.mrb[6].mxu1  ;;  %v3429_v2 = vpop.permute.xlu0 %3428 }
 0x1ac   : > { %v6690_v41 = vpop.f32.mrb[7].mxu1  ;;  %v3492_v60 = vadd.f32 %v3429_v2, %v6210_v55  ;;  %3690 = vrot.lane.b32.xlu1 %v3491_v51, %s5639_s17 }
 0x1ad   : > { %v3431_v27 = vpop.permute.xlu1 %3430 }
 0x1ae   : > { %3692 = vrot.lane.b32.xlu0 %v3492_v60, %s5639_s17  ;;  %v3493_v43 = vadd.f32 %v3431_v27, %v6220_v32 }
 0x1af   : > { %v3433_v46 = vpop.permute.xlu0 %3432 }
 0x1b0   : > { %v3494_v33 = vadd.f32 %v3433_v46, %v6224_v56  ;;  %3694 = vrot.lane.b32.xlu1 %v3493_v43, %s5639_s17 }
 0x1b1   : > { %v6697_v39 = vpop.f32.mrb[8].mxu1  ;;  %v3435_v61 = vpop.permute.xlu1 %3434 }
 0x1b2   : > { %v6700_v0 = vpop.f32.mrb[9].mxu1  ;;  %3696 = vrot.lane.b32.xlu0 %v3494_v33, %s5639_s17  ;;  %v3495_v36 = vadd.f32 %v3435_v61, %v6229_v57 }
 0x1b3   : > { %v6703_v22 = vpop.f32.mrb[10].mxu1  ;;  %v3437_v48 = vpop.permute.xlu0 %3436 }
 0x1b4   : > { %v6706_v44 = vpop.f32.mrb[11].mxu1  ;;  %v3496_v13 = vadd.f32 %v3437_v48, %v6236_v62  ;;  %3698 = vrot.lane.b32.xlu1 %v3495_v36, %s5639_s17 }
 0x1b5   : > { %v3439_v28 = vpop.permute.xlu1 %3438 }
 0x1b6   : > { %3700 = vrot.lane.b32.xlu0 %v3496_v13, %s5639_s17  ;;  %v3497_v2 = vadd.f32 %v3439_v28, %v6244_v9 }
 0x1b7   : > { %v3441_v56 = vpop.permute.xlu0 %3440 }
 0x1b8   : > { %v3498_v59 = vadd.f32 %v3441_v56, %v6251_v12  ;;  %3702 = vrot.lane.b32.xlu1 %v3497_v2, %s5639_s17 }
 0x1b9   : > { %v6713_v45 = vpop.f32.mrb[12].mxu1  ;;  %v3443_v60 = vpop.permute.xlu1 %3442 }
 0x1ba   : > { %v6716_v4 = vpop.f32.mrb[13].mxu1  ;;  %3704 = vrot.lane.b32.xlu0 %v3498_v59, %s5639_s17  ;;  %v3499_v46 = vadd.f32 %v3443_v60, %v6261_v18 }
 0x1bb   : > { %v6719_v26 = vpop.f32.mrb[14].mxu1  ;;  %v3445_v57 = vpop.permute.xlu0 %3444 }
 0x1bc   : > { %v6722_v55 = vpop.f32.mrb[15].mxu1  ;;  %v3500_v51 = vadd.f32 %v3445_v57, %v6268_v21  ;;  %3706 = vrot.lane.b32.xlu1 %v3499_v46, %s5639_s17  ;;  %v6767_v57 = vld [vmem:[%s7610_s3] ss:$0 sm:$0xff] }
 0x1bd   : > { %v3447_v27 = vpop.permute.xlu1 %3446 }
 0x1be   : > { %3708 = vrot.lane.b32.xlu0 %v3500_v51, %s5639_s17  ;;  %v3501_v48 = vadd.f32 %v3447_v27, %v6276_v3 }
 0x1bf   : > { %v3449_v12 = vpop.permute.xlu0 %3448 }
 0x1c0   : > { %v3502_v33 = vadd.f32 %v3449_v12, %v6283_v16  ;;  %3710 = vrot.lane.b32.xlu1 %v3501_v48, %s5639_s17 }
 0x1c1   : > { %v6729_v32 = vpop.f32.mrb[16].mxu1  ;;  %v3451_v13 = vpop.permute.xlu1 %3450 }
 0x1c2   : > { %v6732_v1 = vpop.f32.mrb[17].mxu1  ;;  %3712 = vrot.lane.b32.xlu0 %v3502_v33, %s5639_s17  ;;  %v3503_v56 = vadd.f32 %v3451_v13, %v6294_v31 }
 0x1c3   : > { %v6735_v47 = vpop.f32.mrb[18].mxu1  ;;  %v3453_v18 = vpop.permute.xlu0 %3452 }
 0x1c4   : > { %v6738_v62 = vpop.f32.mrb[19].mxu1  ;;  %v3504_v36 = vadd.f32 %v3453_v18, %v6300_v30  ;;  %3714 = vrot.lane.b32.xlu1 %v3503_v56, %s5639_s17 }
 0x1c5   : > { %v3455_v3 = vpop.permute.xlu1 %3454 }
 0x1c6   : > { %3716 = vrot.lane.b32.xlu0 %v3504_v36, %s5639_s17  ;;  %v3505_v59 = vadd.f32 %v3455_v3, %v6307_v17 }
 0x1c7   : > { %v3457_v16 = vpop.permute.xlu0 %3456 }
 0x1c8   : > { %v3506_v28 = vadd.f32 %v3457_v16, %v6316_v6  ;;  %3718 = vrot.lane.b32.xlu1 %v3505_v59, %s5639_s17 }
 0x1c9   : > { %v6745_v9 = vpop.f32.mrb[20].mxu1  ;;  %v3459_v60 = vpop.permute.xlu1 %3458 }
 0x1ca   : > { %v6748_v43 = vpop.f32.mrb[21].mxu1  ;;  %3720 = vrot.lane.b32.xlu0 %v3506_v28, %s5639_s17  ;;  %v3507_v6 = vadd.f32 %v3459_v60, %v6323_v40 }
 0x1cb   : > { %v6751_v61 = vpop.f32.mrb[22].mxu1 }
 0x1cc   : > { %v6754_v21 = vpop.f32.mrb[23].mxu1  ;;  %3722 = vrot.lane.b32.xlu1 %v3507_v6, %s5639_s17  ;;  %s7555_s17 = scalar_lea.sflag [#allocation4], %s338_s22 }
 0x1d3   : > { %v5101_v2 = vpop.f32.mrb[0].mxu0 }
 0x1d4   : > { %v5149_v31 = vadd.f32 %v5101_v2, %v6667_v34  ;;  %v2854_v30 = vpop.f32.mrb[1].mxu0 }
 0x1d5   : > { %v5150_v51 = vadd.f32 %v2854_v30, %v6671_v25  ;;  %v5102_v46 = vpop.f32.mrb[2].mxu0 }
 0x1d6   : > { %v2982_v17 = vadd.f32 %v5149_v31, %v6767_v57  ;;  %v5151_v12 = vadd.f32 %v5102_v46, %v6673_v54  ;;  %v2857_v27 = vpop.f32.mrb[3].mxu0 }
 0x1d7   : > { %v2980_v33 = vadd.f32 %v5150_v51, %v6767_v57  ;;  %v5152_v48 = vadd.f32 %v2857_v27, %v6675_v23 }
 0x1d8   : > { %v2983_v34 = vadd.f32 %v5151_v12, %v6767_v57  ;;  %v3006_v13 = vmax.f32 %v2982_v17, 0.0 }
 0x1d9   : > { %v2981_v18 = vadd.f32 %v5152_v48, %v6767_v57  ;;  %v3004_v36 = vmax.f32 %v2980_v33, 0.0 }
 0x1da   : > { %v3007_v25 = vmax.f32 %v2983_v34, 0.0 }
 0x1db   : > { %v3005_v56 = vmax.f32 %v2981_v18, 0.0  ;;  %v5105_v40 = vpop.f32.mrb[4].mxu0 }
 0x1dc   : > { %v3029_v16 = vpack.c.bf16 %v3007_v25, %v3006_v13  ;;  %v5153_v3 = vadd.f32 %v5105_v40, %v6681_v52  ;;  %v2870_v54 = vpop.f32.mrb[5].mxu0 }
 0x1dd   : > { %v3028_v28 = vpack.c.bf16 %v3005_v56, %v3004_v36  ;;  %v5154_v59 = vadd.f32 %v2870_v54, %v6684_v5  ;;  %v5106_v2 = vpop.f32.mrb[6].mxu0 }
 0x1de   : > { %v2986_v23 = vadd.f32 %v5153_v3, %v6767_v57  ;;  %v5155_v31 = vadd.f32 %v5106_v2, %v6687_v14  ;;  %v2873_v30 = vpop.f32.mrb[7].mxu0 }
 0x1df   : > { %v2984_v60 = vadd.f32 %v5154_v59, %v6767_v57  ;;  %v5156_v51 = vadd.f32 %v2873_v30, %v6690_v41  ;;  %5125 = vmatprep.mubr.msk.bf16.mxu1 %vm637_vm2, %v3028_v28 }
 0x1e0   : > { %v2987_v46 = vadd.f32 %v5155_v31, %v6767_v57  ;;  %5126 = vmatmul.mubr.msk.bf16.vlgmr.msra.gmra.mrb[24].mxu1 %vm637_vm2, %v3029_v16  ;;  %v3010_v6 = vmax.f32 %v2986_v23, 0.0 }
 0x1e1   : > { %v2985_v52 = vadd.f32 %v5156_v51, %v6767_v57  ;;  %v3008_v17 = vmax.f32 %v2984_v60, 0.0 }
 0x1e2   : > { %v3011_v5 = vmax.f32 %v2987_v46, 0.0 }
 0x1e3   : > { %v3009_v12 = vmax.f32 %v2985_v52, 0.0  ;;  %v5109_v27 = vpop.f32.mrb[8].mxu0 }
 0x1e4   : > { %v3031_v33 = vpack.c.bf16 %v3011_v5, %v3010_v6  ;;  %v5157_v14 = vadd.f32 %v5109_v27, %v6697_v39  ;;  %v2886_v48 = vpop.f32.mrb[9].mxu0 }
 0x1e5   : > { %v3030_v34 = vpack.c.bf16 %v3009_v12, %v3008_v17  ;;  %v5158_v41 = vadd.f32 %v2886_v48, %v6700_v0  ;;  %v5110_v18 = vpop.f32.mrb[10].mxu0 }
 0x1e6   : > { %v2990_v13 = vadd.f32 %v5157_v14, %v6767_v57  ;;  %v5159_v25 = vadd.f32 %v5110_v18, %v6703_v22  ;;  %v2889_v36 = vpop.f32.mrb[11].mxu0 }
 0x1e7   : > { %v2988_v56 = vadd.f32 %v5158_v41, %v6767_v57  ;;  %v5160_v40 = vadd.f32 %v2889_v36, %v6706_v44  ;;  %5129 = vmatprep.mubr.msk.bf16.mxu1 %vm637_vm2, %v3030_v34 }
 0x1e8   : > { %v2991_v16 = vadd.f32 %v5159_v25, %v6767_v57  ;;  %5130 = vmatmul.mubr.msk.bf16.gmra.mrb[28].mxu1 %vm637_vm2, %v3031_v33  ;;  %v3014_v3 = vmax.f32 %v2990_v13, 0.0 }
 0x1e9   : > { %v2989_v39 = vadd.f32 %v5160_v40, %v6767_v57  ;;  %v3012_v54 = vmax.f32 %v2988_v56, 0.0 }
 0x1ea   : > { %v3015_v0 = vmax.f32 %v2991_v16, 0.0 }
 0x1eb   : > { %v3013_v28 = vmax.f32 %v2989_v39, 0.0  ;;  %v5113_v59 = vpop.f32.mrb[12].mxu0 }
 0x1ec   : > { %v3033_v2 = vpack.c.bf16 %v3015_v0, %v3014_v3  ;;  %v5161_v22 = vadd.f32 %v5113_v59, %v6713_v45  ;;  %v2902_v23 = vpop.f32.mrb[13].mxu0 }
 0x1ed   : > { %v3032_v31 = vpack.c.bf16 %v3013_v28, %v3012_v54  ;;  %v5162_v44 = vadd.f32 %v2902_v23, %v6716_v4  ;;  %v5114_v30 = vpop.f32.mrb[14].mxu0 }
 0x1ee   : > { %v2994_v60 = vadd.f32 %v5161_v22, %v6767_v57  ;;  %v5163_v51 = vadd.f32 %v5114_v30, %v6719_v26  ;;  %v2905_v46 = vpop.f32.mrb[15].mxu0 }
 0x1ef   : > { %v2992_v52 = vadd.f32 %v5162_v44, %v6767_v57  ;;  %v5164_v6 = vadd.f32 %v2905_v46, %v6722_v55  ;;  %5133 = vmatprep.mubr.msk.bf16.mxu1 %vm637_vm2, %v3032_v31 }
 0x1f0   : > { %v2995_v5 = vadd.f32 %v5163_v51, %v6767_v57  ;;  %5134 = vmatmul.mubr.msk.bf16.gmra.mrb[32].mxu1 %vm637_vm2, %v3033_v2  ;;  %v3018_v17 = vmax.f32 %v2994_v60, 0.0 }
 0x1f1   : > { %v2993_v45 = vadd.f32 %v5164_v6, %v6767_v57  ;;  %v3016_v12 = vmax.f32 %v2992_v52, 0.0 }
 0x1f2   : > { %v3019_v4 = vmax.f32 %v2995_v5, 0.0 }
 0x1f3   : > { %v3017_v27 = vmax.f32 %v2993_v45, 0.0  ;;  %v5117_v33 = vpop.f32.mrb[16].mxu0 }
 0x1f4   : > { %v3035_v14 = vpack.c.bf16 %v3019_v4, %v3018_v17  ;;  %v5165_v26 = vadd.f32 %v5117_v33, %v6729_v32  ;;  %v2918_v48 = vpop.f32.mrb[17].mxu0 }
 0x1f5   : > { %v3034_v34 = vpack.c.bf16 %v3017_v27, %v3016_v12  ;;  %v5166_v55 = vadd.f32 %v2918_v48, %v6732_v1  ;;  %v5118_v41 = vpop.f32.mrb[18].mxu0  ;;  %v6847_v27 = vld [vmem:[%s7612_s5] ss:$0 sm:$0xff] }
 0x1f6   : > { %v2998_v18 = vadd.f32 %v5165_v26, %v6767_v57  ;;  %v5167_v13 = vadd.f32 %v5118_v41, %v6735_v47  ;;  %v2921_v25 = vpop.f32.mrb[19].mxu0 }
 0x1f7   : > { %v2996_v36 = vadd.f32 %v5166_v55, %v6767_v57  ;;  %v5168_v56 = vadd.f32 %v2921_v25, %v6738_v62  ;;  %5137 = vmatprep.mubr.msk.bf16.mxu1 %vm637_vm2, %v3034_v34 }
 0x1f8   : > { %v2999_v40 = vadd.f32 %v5167_v13, %v6767_v57  ;;  %5138 = vmatmul.mubr.msk.bf16.gmra.mrb[36].mxu1 %vm637_vm2, %v3035_v14  ;;  %v3022_v16 = vmax.f32 %v2998_v18, 0.0 }
 0x1f9   : > { %v2997_v32 = vadd.f32 %v5168_v56, %v6767_v57  ;;  %v3020_v39 = vmax.f32 %v2996_v36, 0.0 }
 0x1fa   : > { %v3023_v1 = vmax.f32 %v2999_v40, 0.0 }
 0x1fb   : > { %v3021_v3 = vmax.f32 %v2997_v32, 0.0  ;;  %v5121_v0 = vpop.f32.mrb[20].mxu0 }
 0x1fc   : > { %v3037_v54 = vpack.c.bf16 %v3023_v1, %v3022_v16  ;;  %v5169_v47 = vadd.f32 %v5121_v0, %v6745_v9  ;;  %v2934_v28 = vpop.f32.mrb[21].mxu0 }
 0x1fd   : > { %v3036_v59 = vpack.c.bf16 %v3021_v3, %v3020_v39  ;;  %v5170_v62 = vadd.f32 %v2934_v28, %v6748_v43  ;;  %v5122_v2 = vpop.f32.mrb[22].mxu0 }
 0x1fe   : > { %v3002_v22 = vadd.f32 %v5169_v47, %v6767_v57  ;;  %v5171_v23 = vadd.f32 %v5122_v2, %v6751_v61  ;;  %v2937_v31 = vpop.f32.mrb[23].mxu0  ;;  %v6832_v61 = vpop.permute.xlu0 %3592 }
 0x1ff   : > { %v3000_v44 = vadd.f32 %v5170_v62, %v6767_v57  ;;  %v5172_v30 = vadd.f32 %v2937_v31, %v6754_v21  ;;  %5141 = vmatprep.mubr.msk.bf16.mxu1 %vm637_vm2, %v3036_v59  ;;  %v6834_v21 = vpop.permute.xlu1 %3594 }
 0x200   : > { %v3003_v60 = vadd.f32 %v5171_v23, %v6767_v57  ;;  %5142 = vmatmul.mubr.msk.bf16.gmra.mrb[40].mxu1 %vm637_vm2, %v3037_v54  ;;  %v3026_v51 = vmax.f32 %v3002_v22, 0.0 }
 0x201   : > { %v3001_v9 = vadd.f32 %v5172_v30, %v6767_v57  ;;  %v3024_v46 = vmax.f32 %v3000_v44, 0.0 }
 0x202   : > { %v3027_v43 = vmax.f32 %v3003_v60, 0.0  ;;  %v6836_v45 = vpop.permute.xlu0 %3596 }
 0x203   : > { %v3025_v52 = vmax.f32 %v3001_v9, 0.0  ;;  %7646 = vst [vmem:[#allocation8_spill] sm:$0xff] %v6836_v45  ;;  %v6838_v17 = vpop.permute.xlu1 %3598 }
 0x204   : > { %v3039_v6 = vpack.c.bf16 %v3027_v43, %v3026_v51  ;;  %7647 = vst [vmem:[#allocation9_spill] sm:$0xff] %v6838_v17 }
 0x205   : > { %v3038_v5 = vpack.c.bf16 %v3025_v52, %v3024_v46 }
 0x206   : > { %v6840_v4 = vpop.permute.xlu0 %3600 }
 0x207   : > { %5145 = vmatprep.mubr.msk.bf16.mxu1 %vm637_vm2, %v3038_v5  ;;  %7648 = vst [vmem:[#allocation10_spill] sm:$0xff] %v6840_v4  ;;  %v6842_v57 = vpop.permute.xlu1 %3602 }
 0x208   : > { %5146 = vmatmul.mubr.msk.bf16.gmra.mrb[44].mxu1 %vm637_vm2, %v3039_v6  ;;  %7649 = vst [vmem:[#allocation11_spill] sm:$0xff] %v6842_v57 }
 0x20a   : > { %v3821_v12 = vpop.permute.xlu0 %3820 }
 0x20b   : > { %v6849_v33 = vpop.permute.xlu1 %3822 }
 0x20e   : > { %v3825_v25 = vpop.permute.xlu0 %3824 }
 0x20f   : > { %v3827_v40 = vpop.permute.xlu1 %3826 }
 0x212   : > { %v6867_v0 = vpop.permute.xlu0 %3828 }
 0x213   : > { %v6875_v22 = vpop.permute.xlu1 %3830 }
 0x216   : > { %v3833_v43 = vpop.permute.xlu0 %3832 }
 0x2b3   : > { %v5127_v14 = vpop.f32.mrb[24].mxu1 }
 0x2b4   : > { %v6852_v26 = vadd.f32 %v5127_v14, %v6847_v27  ;;  %v3125_v48 = vpop.f32.mrb[25].mxu1 }
 0x2b5   : > { %v6855_v34 = vadd.f32 %v6847_v27, %v3125_v48  ;;  %v5128_v55 = vpop.f32.mrb[26].mxu1 }
 0x2b6   : > { %7650 = vst [vmem:[#allocation12_spill] sm:$0xff] %v6852_v26  ;;  %v3510_v41 = vmin.f32 %v6852_v26, 4.1351666  ;;  %v6859_v18 = vadd.f32 %v5128_v55, %v6847_v27  ;;  %v3128_v13 = vpop.f32.mrb[27].mxu1  ;;  %v6887_v55 = vpop.permute.xlu1 %3834 }
 0x2b7   : > { %7651 = vst [vmem:[#allocation13_spill] sm:$0xff] %v6855_v34  ;;  %v3508_v36 = vmin.f32 %v6855_v34, 4.1351666  ;;  %v6863_v56 = vadd.f32 %v6847_v27, %v3128_v13 }
 0x2b8   : > { %7652 = vst [vmem:[#allocation14_spill] sm:$0xff] %v6859_v18  ;;  %v3776_v32 = vmul.f32 1.442695, %v3510_v41  ;;  %v3511_v16 = vmin.f32 %v6859_v18, 4.1351666 }
 0x2b9   : > { %7653 = vst [vmem:[#allocation15_spill] sm:$0xff] %v6863_v56  ;;  %v3772_v1 = vmul.f32 1.442695, %v3508_v36  ;;  %v3509_v39 = vmin.f32 %v6863_v56, 4.1351666 }
 0x2ba   : > { %5492 = vpow2.f32 %v3776_v32  ;;  %v3778_v3 = vmul.f32 1.442695, %v3511_v16 }
 0x2bb   : > { %5494 = vpow2.f32 %v3772_v1  ;;  %v3774_v54 = vmul.f32 1.442695, %v3509_v39  ;;  %v5131_v47 = vpop.f32.mrb[28].mxu1 }
 0x2bc   : > { %5496 = vpow2.f32 %v3778_v3  ;;  %v6870_v28 = vadd.f32 %v5131_v47, %v6847_v27  ;;  %v3141_v59 = vpop.f32.mrb[29].mxu1 }
 0x2bd   : > { %v6873_v62 = vadd.f32 %v6847_v27, %v3141_v59  ;;  %v5132_v2 = vpop.f32.mrb[30].mxu1  ;;  %5498 = vpow2.f32 %v3774_v54 }
 0x2be   : > { %7654 = vst [vmem:[#allocation16_spill] sm:$0xff] %v6870_v28  ;;  %v3514_v23 = vmin.f32 %v6870_v28, 4.1351666  ;;  %v6879_v31 = vadd.f32 %v5132_v2, %v6847_v27  ;;  %v3144_v44 = vpop.f32.mrb[31].mxu1  ;;  %v6899_v2 = vpop.permute.xlu0 %3836 }
 0x2bf   : > { %v3512_v30 = vmin.f32 %v6873_v62, 4.1351666  ;;  %v6883_v60 = vadd.f32 %v6847_v27, %v3144_v44 }
 0x2c0   : > { %v3784_v9 = vmul.f32 1.442695, %v3514_v23  ;;  %v3515_v51 = vmin.f32 %v6879_v31, 4.1351666 }
 0x2c1   : > { %v3780_v46 = vmul.f32 1.442695, %v3512_v30  ;;  %v3513_v52 = vmin.f32 %v6883_v60, 4.1351666 }
 0x2c2   : > { %5500 = vpow2.f32 %v3784_v9  ;;  %v3786_v6 = vmul.f32 1.442695, %v3515_v51 }
 0x2c3   : > { %5502 = vpow2.f32 %v3780_v46  ;;  %v3782_v5 = vmul.f32 1.442695, %v3513_v52  ;;  %v5135_v14 = vpop.f32.mrb[32].mxu1 }
 0x2c4   : > { %v5493_v48 = vpop.eup %5492  ;;  %5504 = vpow2.f32 %v3786_v6  ;;  %v6890_v41 = vadd.f32 %v5135_v14, %v6847_v27  ;;  %v3157_v13 = vpop.f32.mrb[33].mxu1 }
 0x2c5   : > { %v5495_v36 = vpop.eup %5494  ;;  %v6893_v32 = vadd.f32 %v6847_v27, %v3157_v13  ;;  %v5136_v16 = vpop.f32.mrb[34].mxu1  ;;  %v3894_v1 = vmul.f32 %v5493_v48, %v3825_v25  ;;  %5506 = vpow2.f32 %v3782_v5 }
 0x2c6   : > { %v5497_v39 = vpop.eup %5496  ;;  %v3518_v3 = vmin.f32 %v6890_v41, 4.1351666  ;;  %v6897_v54 = vadd.f32 %v5136_v16, %v6847_v27  ;;  %v3160_v47 = vpop.f32.mrb[35].mxu1  ;;  %v3892_v59 = vmul.f32 %v5495_v36, %v3821_v12 }
 0x2c7   : > { %v3516_v23 = vmin.f32 %v6893_v32, 4.1351666  ;;  %v6903_v44 = vadd.f32 %v6847_v27, %v3160_v47  ;;  %v3918_v30 = vmul.f32 0.5, %v3894_v1  ;;  %v5499_v9 = vpop.eup %5498  ;;  %v3895_v6 = vmul.f32 %v5497_v39, %v3827_v40  ;;  %v6908_v5 = vpop.permute.xlu1 %3838 }
 0x2c8   : > { %v3792_v51 = vmul.f32 1.442695, %v3518_v3  ;;  %v3519_v25 = vmin.f32 %v6897_v54, 4.1351666  ;;  %v3916_v14 = vmul.f32 0.5, %v3892_v59  ;;  %v3893_v16 = vmul.f32 %v5499_v9, %v6849_v33 }
 0x2c9   : > { %v3788_v46 = vmul.f32 1.442695, %v3516_v23  ;;  %v3517_v52 = vmin.f32 %v6903_v44, 4.1351666  ;;  %3968 = vrot.lane.b32.xlu0 %v3918_v30, %s5638_s14  ;;  %v3919_v13 = vmul.f32 0.5, %v3895_v6  ;;  %v3841_v30 = vpop.permute.xlu0 %3840 }
 0x2ca   : > { %5508 = vpow2.f32 %v3792_v51  ;;  %v3794_v12 = vmul.f32 1.442695, %v3519_v25 }
 0x2cb   : > { %5510 = vpow2.f32 %v3788_v46  ;;  %v3790_v48 = vmul.f32 1.442695, %v3517_v52  ;;  %v5139_v36 = vpop.f32.mrb[36].mxu1  ;;  %3970 = vrot.lane.b32.xlu1 %v3919_v13, %s5638_s14 }
 0x2cc   : > { %v5501_v1 = vpop.eup %5500  ;;  %5512 = vpow2.f32 %v3794_v12  ;;  %v6912_v3 = vadd.f32 %v5139_v36, %v6847_v27  ;;  %v3173_v47 = vpop.f32.mrb[37].mxu1  ;;  %v3917_v12 = vmul.f32 0.5, %v3893_v16 }
 0x2cd   : > { %v5503_v23 = vpop.eup %5502  ;;  %v6916_v40 = vadd.f32 %v6847_v27, %v3173_v47  ;;  %v5140_v39 = vpop.f32.mrb[38].mxu1  ;;  %3964 = vrot.lane.b32.xlu0 %v3916_v14, %s5638_s14  ;;  %v3898_v59 = vmul.f32 %v5501_v1, %v3833_v43  ;;  %5514 = vpow2.f32 %v3790_v48 }
 0x2ce   : > { %v5505_v51 = vpop.eup %5504  ;;  %v3522_v33 = vmin.f32 %v6912_v3, 4.1351666  ;;  %v6921_v9 = vadd.f32 %v5140_v39, %v6847_v27  ;;  %v3176_v25 = vpop.f32.mrb[39].mxu1  ;;  %v3896_v46 = vmul.f32 %v5503_v23, %v6867_v0 }
 0x2cf   : > { %7655 = vst [vmem:[#allocation17_spill] sm:$0xff] %v6916_v40  ;;  %v3520_v52 = vmin.f32 %v6916_v40, 4.1351666  ;;  %v6926_v6 = vadd.f32 %v6847_v27, %v3176_v25  ;;  %v3922_v13 = vmul.f32 0.5, %v3898_v59  ;;  %v5507_v36 = vpop.eup %5506  ;;  %v3843_v14 = vpop.permute.xlu1 %3842  ;;  %3966 = vrot.lane.b32.xlu1 %v3917_v12, %s5638_s14  ;;  %v3899_v0 = vmul.f32 %v5505_v51, %v6887_v55 }
 0x2d0   : > { %7656 = vst [vmem:[#allocation18_spill] sm:$0xff] %v6921_v9  ;;  %v3800_v43 = vmul.f32 1.442695, %v3522_v33  ;;  %v3523_v48 = vmin.f32 %v6921_v9, 4.1351666  ;;  %v3920_v39 = vmul.f32 0.5, %v3896_v46  ;;  %v3845_v25 = vpop.permute.xlu0 %3844  ;;  %v3897_v33 = vmul.f32 %v5507_v36, %v6875_v22 }
 0x2d1   : > { %7657 = vst [vmem:[#allocation19_spill] sm:$0xff] %v6926_v6  ;;  %v3796_v1 = vmul.f32 1.442695, %v3520_v52  ;;  %v3521_v47 = vmin.f32 %v6926_v6, 4.1351666  ;;  %3976 = vrot.lane.b32.xlu0 %v3922_v13, %s5638_s14  ;;  %v3923_v57 = vmul.f32 0.5, %v3899_v0 }
 0x2d2   : > { %5516 = vpow2.f32 %v3800_v43  ;;  %v3802_v23 = vmul.f32 1.442695, %v3523_v48  ;;  %v3921_v0 = vmul.f32 0.5, %v3897_v33 }
 0x2d3   : > { %5518 = vpow2.f32 %v3796_v1  ;;  %v3798_v16 = vmul.f32 1.442695, %v3521_v47  ;;  %v5143_v59 = vpop.f32.mrb[40].mxu1  ;;  %3978 = vrot.lane.b32.xlu1 %v3923_v57, %s5638_s14  ;;  %v6942_v43 = vpop.permute.xlu1 %3846 }
 0x2d4   : > { %v5509_v4 = vpop.eup %5508  ;;  %5520 = vpow2.f32 %v3802_v23  ;;  %v6935_v52 = vadd.f32 %v5143_v59, %v6847_v27  ;;  %v3189_v12 = vpop.f32.mrb[41].mxu1 }
 0x2d5   : > { %v5511_v17 = vpop.eup %5510  ;;  %v6939_v55 = vadd.f32 %v6847_v27, %v3189_v12  ;;  %v5144_v51 = vpop.f32.mrb[42].mxu1  ;;  %3972 = vrot.lane.b32.xlu0 %v3920_v39, %s5638_s14  ;;  %v3902_v46 = vmul.f32 %v5509_v4, %v3841_v30  ;;  %5522 = vpow2.f32 %v3798_v16 }
 0x2d6   : > { %7658 = vst [vmem:[#allocation20_spill] sm:$0xff] %v6935_v52  ;;  %v5513_v13 = vpop.eup %5512  ;;  %v3526_v22 = vmin.f32 %v6935_v52, 4.1351666  ;;  %v6946_v36 = vadd.f32 %v5144_v51, %v6847_v27  ;;  %v3192_v48 = vpop.f32.mrb[43].mxu1  ;;  %v3900_v1 = vmul.f32 %v5511_v17, %v6899_v2 }
 0x2d7   : > { %7659 = vst [vmem:[#allocation21_spill] sm:$0xff] %v6939_v55  ;;  %v3524_v57 = vmin.f32 %v6939_v55, 4.1351666  ;;  %v6951_v47 = vadd.f32 %v6847_v27, %v3192_v48  ;;  %v3926_v23 = vmul.f32 0.5, %v3902_v46  ;;  %v5515_v4 = vpop.eup %5514  ;;  %v3849_v16 = vpop.permute.xlu0 %3848  ;;  %3974 = vrot.lane.b32.xlu1 %v3921_v0, %s5638_s14  ;;  %v3903_v17 = vmul.f32 %v5513_v13, %v3843_v14 }
 0x2d8   : > { %7660 = vst [vmem:[#allocation22_spill] sm:$0xff] %v6946_v36  ;;  %v3808_v30 = vmul.f32 1.442695, %v3526_v22  ;;  %v3527_v39 = vmin.f32 %v6946_v36, 4.1351666  ;;  %v3924_v51 = vmul.f32 0.5, %v3900_v1  ;;  %v3901_v22 = vmul.f32 %v5515_v4, %v6908_v5  ;;  %v3851_v35 = vpop.permute.xlu1 %3850 }
 0x2d9   : > { %7661 = vst [vmem:[#allocation23_spill] sm:$0xff] %v6951_v47  ;;  %v3804_v59 = vmul.f32 1.442695, %v3524_v57  ;;  %v3525_v12 = vmin.f32 %v6951_v47, 4.1351666  ;;  %3984 = vrot.lane.b32.xlu0 %v3926_v23, %s5638_s14  ;;  %v3927_v33 = vmul.f32 0.5, %v3903_v17 }
 0x2da   : > { %5524 = vpow2.f32 %v3808_v30  ;;  %v3810_v2 = vmul.f32 1.442695, %v3527_v39 }
 0x2db   : > { %5526 = vpow2.f32 %v3804_v59  ;;  %v3806_v48 = vmul.f32 1.442695, %v3525_v12  ;;  %v5147_v46 = vpop.f32.mrb[44].mxu1  ;;  %3986 = vrot.lane.b32.xlu1 %v3927_v33, %s5638_s14  ;;  %v3853_v59 = vpop.permute.xlu0 %3852 }
 0x2dc   : > { %v5517_v45 = vpop.eup %5516  ;;  %5528 = vpow2.f32 %v3810_v2  ;;  %v6959_v57 = vadd.f32 %v5147_v46, %v6847_v27  ;;  %v3205_v47 = vpop.f32.mrb[45].mxu1 }
 0x2dd   : > { %v5519_v0 = vpop.eup %5518  ;;  %v6963_v14 = vadd.f32 %v6847_v27, %v3205_v47  ;;  %3980 = vrot.lane.b32.xlu0 %v3924_v51, %s5638_s14  ;;  %v5148_v13 = vpop.f32.mrb[46].mxu1  ;;  %v3906_v1 = vmul.f32 %v5517_v45, %v3849_v16  ;;  %5530 = vpow2.f32 %v3806_v48  ;;  %v3925_v47 = vmul.f32 0.5, %v3901_v22 }
 0x2de   : > { %7662 = vst [vmem:[#allocation24_spill] sm:$0xff] %v6959_v57  ;;  %v5521_v23 = vpop.eup %5520  ;;  %v3530_v5 = vmin.f32 %v6959_v57, 4.1351666  ;;  %v6968_v4 = vadd.f32 %v5148_v13, %v6847_v27  ;;  %v3208_v30 = vpop.f32.mrb[47].mxu1  ;;  %v3904_v39 = vmul.f32 %v5519_v0, %v3845_v25 }
 0x2df   : > { %7663 = vst [vmem:[#allocation25_spill] sm:$0xff] %v6963_v14  ;;  %v3528_v12 = vmin.f32 %v6963_v14, 4.1351666  ;;  %v6972_v17 = vadd.f32 %v6847_v27, %v3208_v30  ;;  %v3930_v2 = vmul.f32 0.5, %v3906_v1  ;;  %v5523_v51 = vpop.eup %5522  ;;  %3982 = vrot.lane.b32.xlu1 %v3925_v47, %s5638_s14  ;;  %v3907_v25 = vmul.f32 %v5521_v23, %v3851_v35  ;;  %v3855_v46 = vpop.permute.xlu1 %3854 }
 0x2e0   : > { %7664 = vst [vmem:[#allocation26_spill] sm:$0xff] %v6968_v4  ;;  %v3816_v33 = vmul.f32 1.442695, %v3530_v5  ;;  %v3531_v45 = vmin.f32 %v6968_v4, 4.1351666  ;;  %v3928_v13 = vmul.f32 0.5, %v3904_v39  ;;  %v3857_v27 = vpop.permute.xlu0 %3856  ;;  %v3905_v5 = vmul.f32 %v5523_v51, %v6942_v43 }
 0x2e1   : > { %7665 = vst [vmem:[#allocation27_spill] sm:$0xff] %v6972_v17  ;;  %v3812_v16 = vmul.f32 1.442695, %v3528_v12  ;;  %v3529_v48 = vmin.f32 %v6972_v17, 4.1351666  ;;  %3992 = vrot.lane.b32.xlu0 %v3930_v2, %s5638_s14  ;;  %v3931_v1 = vmul.f32 0.5, %v3907_v25 }
 0x2e2   : > { %5532 = vpow2.f32 %v3816_v33  ;;  %v3818_v0 = vmul.f32 1.442695, %v3531_v45  ;;  %v3929_v23 = vmul.f32 0.5, %v3905_v5 }
 0x2e3   : > { %5534 = vpow2.f32 %v3812_v16  ;;  %v3814_v22 = vmul.f32 1.442695, %v3529_v48  ;;  %3994 = vrot.lane.b32.xlu1 %v3931_v1, %s5638_s14  ;;  %v3859_v35 = vpop.permute.xlu1 %3858 }
 0x2e4   : > { %v5525_v30 = vpop.eup %5524  ;;  %v3861_v16 = vpop.permute.xlu0 %3860 }
 0x2e5   : > { %v5527_v4 = vpop.eup %5526  ;;  %5536 = vpow2.f32 %v3814_v22  ;;  %3988 = vrot.lane.b32.xlu0 %v3928_v13, %s5638_s14  ;;  %v3910_v12 = vmul.f32 %v5525_v30, %v3857_v27 }
 0x2e6   : > { %v5529_v47 = vpop.eup %5528  ;;  %5538 = vpow2.f32 %v3818_v0  ;;  %v3908_v33 = vmul.f32 %v5527_v4, %v3853_v59 }
 0x2e7   : > { %v3934_v2 = vmul.f32 0.5, %v3910_v12  ;;  %v3911_v39 = vmul.f32 %v5529_v47, %v3859_v35  ;;  %v5531_v45 = vpop.eup %5530  ;;  %3990 = vrot.lane.b32.xlu1 %v3929_v23, %s5638_s14  ;;  %v3863_v22 = vpop.permute.xlu1 %3862 }
 0x2e8   : > { %v3932_v51 = vmul.f32 0.5, %v3908_v33  ;;  %v3909_v48 = vmul.f32 %v5531_v45, %v3855_v46  ;;  %v3865_v1 = vpop.permute.xlu0 %3864 }
 0x2e9   : > { %4000 = vrot.lane.b32.xlu0 %v3934_v2, %s5638_s14  ;;  %v3935_v43 = vmul.f32 0.5, %v3911_v39 }
 0x2ea   : > { %v3933_v4 = vmul.f32 0.5, %v3909_v48 }
 0x2eb   : > { %4002 = vrot.lane.b32.xlu1 %v3935_v43, %s5638_s14  ;;  %v3867_v47 = vpop.permute.xlu1 %3866 }
 0x2ec   : > { %v5533_v25 = vpop.eup %5532  ;;  %v3677_v2 = vpop.permute.xlu0 %3676 }
 0x2ed   : > { %v5535_v13 = vpop.eup %5534  ;;  %3996 = vrot.lane.b32.xlu0 %v3932_v51, %s5638_s14  ;;  %v3914_v12 = vmul.f32 %v5533_v25, %v3865_v1 }
 0x2ee   : > { %v3912_v0 = vmul.f32 %v5535_v13, %v3861_v16 }
 0x2ef   : > { %v5537_v27 = vpop.eup %5536  ;;  %3998 = vrot.lane.b32.xlu1 %v3933_v4, %s5638_s14  ;;  %v3938_v23 = vmul.f32 0.5, %v3914_v12  ;;  %v3679_v33 = vpop.permute.xlu1 %3678 }
 0x2f0   : > { %v5539_v59 = vpop.eup %5538  ;;  %v3936_v5 = vmul.f32 0.5, %v3912_v0  ;;  %v3913_v30 = vmul.f32 %v5537_v27, %v3863_v22  ;;  %v3681_v45 = vpop.permute.xlu0 %3680 }
 0x2f1   : > { %v3915_v35 = vmul.f32 %v5539_v59, %v3867_v47 }
 0x2f2   : > { %4004 = vrot.lane.b32.xlu0 %v3936_v5, %s5638_s14  ;;  %v3937_v46 = vmul.f32 0.5, %v3913_v30 }
 0x2f3   : > { %v3939_v39 = vmul.f32 0.5, %v3915_v35  ;;  %v3683_v16 = vpop.permute.xlu1 %3682 }
 0x2f4   : > { %4006 = vrot.lane.b32.xlu1 %v3937_v46, %s5638_s14  ;;  %v3685_v43 = vpop.permute.xlu0 %3684 }
 0x2f6   : > { %4008 = vrot.lane.b32.xlu0 %v3938_v23, %s5638_s14 }
 0x2f7   : > { %v6990_v51 = vpop.permute.xlu1 %3686 }
 0x2f8   : > { %4010 = vrot.lane.b32.xlu1 %v3939_v39, %s5638_s14  ;;  %v3689_v48 = vpop.permute.xlu0 %3688  ;;  %v3630_v39 = vmul.f32 %v6617_v49, %v6852_v26  ;;  %s7541_s14 = scalar_lea.hbm %s7614_s7, %s4758_s9 }
 0x2fa   : > { %v7024_v17 = vadd.f32 %v3681_v45, %v3630_v39  ;;  %v3629_v45 = vmul.f32 %v6619_v20, %v6863_v56 }
 0x2fb   : > { %v3691_v25 = vpop.permute.xlu1 %3690 }
 0x2fc   : > { %v6992_v22 = vpop.permute.xlu0 %3692 }
 0x2ff   : > { %v6994_v13 = vpop.permute.xlu1 %3694 }
 0x300   : > { %v6996_v0 = vpop.permute.xlu0 %3696 }
 0x303   : > { %v6998_v27 = vpop.permute.xlu1 %3698 }
 0x304   : > { %v7000_v1 = vpop.permute.xlu0 %3700 }
 0x307   : > { %v7002_v4 = vpop.permute.xlu1 %3702 }
 0x308   : > { %v7004_v59 = vpop.permute.xlu0 %3704 }
 0x30b   : > { %v7006_v5 = vpop.permute.xlu1 %3706 }
 0x30c   : > { %v7008_v30 = vpop.permute.xlu0 %3708 }
 0x30d   : > { %7666 = vst [vmem:[#allocation28_spill] sm:$0xff] %v7008_v30  ;;  %v3631_v30 = vmul.f32 %v6627_v63, %v6859_v18  ;;  %v3634_v63 = vmul.f32 %v6633_v42, %v6870_v28  ;;  %v3635_v42 = vmul.f32 %v6643_v8, %v6879_v31 }
 0x30f   : > { %v7010_v12 = vpop.permute.xlu1 %3710  ;;  %v7040_v39 = vadd.f32 %v3683_v16, %v3631_v30  ;;  %v7060_v30 = vadd.f32 %v3679_v33, %v3629_v45 }
 0x310   : > { %7667 = vst [vmem:[#allocation29_spill] sm:$0xff] %v7010_v12  ;;  %v7012_v47 = vpop.permute.xlu0 %3712  ;;  %v3628_v12 = vmul.f32 %v6611_v38, %v6855_v34 }
 0x312   : > { %v7046_v34 = vadd.f32 %v3677_v2, %v3628_v12  ;;  %v7065_v12 = vadd.f32 %v3689_v48, %v3634_v63  ;;  %v3633_v48 = vmul.f32 %v6635_v24, %v6883_v60  ;;  %v3638_v63 = vmul.f32 %v6648_v58, %v6890_v41 }
 0x313   : > { %v7014_v46 = vpop.permute.xlu1 %3714 }
 0x314   : > { %7668 = vst [vmem:[#allocation30_spill] sm:$0xff] %v7014_v46  ;;  %v7016_v35 = vpop.permute.xlu0 %3716 }
 0x317   : > { %v7018_v23 = vpop.permute.xlu1 %3718 }
 0x318   : > { %7669 = vst [vmem:[#allocation31_spill] sm:$0xff] %v7018_v23  ;;  %v7022_v57 = vpop.permute.xlu0 %3720 }
 0x31b   : > { %v7030_v14 = vpop.permute.xlu1 %3722 }
 0x31c   : > { %7670 = vst [vmem:[#allocation32_spill] sm:$0xff] %v7030_v14 }
 0x33b   : > { %v7032_v46 = vpop.permute.xlu0 %3968 }
 0x33c   : > { %7671 = vst [vmem:[#allocation33_spill] sm:$0xff] %v7032_v46  ;;  %v4110_v49 = vadd.f32 %v7032_v46, %v7024_v17 }
 0x33d   : > { %v7044_v38 = vpop.permute.xlu1 %3970 }
 0x33e   : > { %v4134_v26 = vmax.f32 %v4110_v49, 0.0  ;;  %v4111_v46 = vadd.f32 %v7044_v38, %v7040_v39 }
 0x33f   : > { %v7048_v18 = vpop.permute.xlu0 %3964 }
 0x340   : > { %v4158_v14 = vmin.f32 %v4134_v26, 128.0  ;;  %v4108_v16 = vadd.f32 %v7048_v18, %v7046_v34  ;;  %v4135_v2 = vmax.f32 %v4111_v46, 0.0  ;;  %v3632_v26 = vmul.f32 %v6625_v15, %v6873_v62 }
 0x341   : > { %v7067_v23 = vpop.permute.xlu1 %3966  ;;  %v7081_v46 = vadd.f32 %v3691_v25, %v3635_v42 }
 0x342   : > { %4208 = vrot.lane.b32.xlu0 %v4158_v14, %s5636_s28  ;;  %v4132_v49 = vmax.f32 %v4108_v16, 0.0  ;;  %v4159_v28 = vmin.f32 %v4135_v2, 128.0  ;;  %v4109_v8 = vadd.f32 %v7067_v23, %v7060_v30 }
 0x343   : > { %v7069_v20 = vpop.permute.xlu0 %3976 }
 0x344   : > { %v4156_v33 = vmin.f32 %v4132_v49, 128.0  ;;  %v4114_v15 = vadd.f32 %v7069_v20, %v7065_v12  ;;  %v4133_v45 = vmax.f32 %v4109_v8, 0.0  ;;  %4210 = vrot.lane.b32.xlu1 %v4159_v28, %s5636_s28  ;;  %v7089_v49 = vadd.f32 %v3685_v43, %v3632_v26 }
 0x345   : > { %v7086_v2 = vpop.permute.xlu1 %3978  ;;  %v3639_v43 = vmul.f32 %v6656_v29, %v6897_v54  ;;  %v7105_v8 = vadd.f32 %v6990_v51, %v3633_v48 }
 0x346   : > { %v4138_v16 = vmax.f32 %v4114_v15, 0.0  ;;  %4204 = vrot.lane.b32.xlu0 %v4156_v33, %s5636_s28  ;;  %v4157_v56 = vmin.f32 %v4133_v45, 128.0  ;;  %v4115_v25 = vadd.f32 %v7086_v2, %v7081_v46  ;;  %v3636_v33 = vmul.f32 %v6641_v50, %v6893_v32 }
 0x347   : > { %v7091_v14 = vpop.permute.xlu0 %3972  ;;  %v7110_v15 = vadd.f32 %v6996_v0, %v3638_v63  ;;  %v3637_v63 = vmul.f32 %v6650_v19, %v6903_v44 }
 0x348   : > { %v4162_v28 = vmin.f32 %v4138_v16, 128.0  ;;  %v4112_v42 = vadd.f32 %v7091_v14, %v7089_v49  ;;  %v4139_v26 = vmax.f32 %v4115_v25, 0.0  ;;  %4206 = vrot.lane.b32.xlu1 %v4157_v56, %s5636_s28  ;;  %v7128_v25 = vadd.f32 %v6998_v27, %v3639_v43 }
 0x349   : > { %v7112_v16 = vpop.permute.xlu1 %3974  ;;  %v7137_v50 = vadd.f32 %v6992_v22, %v3636_v33  ;;  %v3643_v22 = vmul.f32 %v6669_v7, %v6921_v9 }
 0x34a   : > { %v4136_v45 = vmax.f32 %v4112_v42, 0.0  ;;  %4216 = vrot.lane.b32.xlu0 %v4162_v28, %s5636_s28  ;;  %v4163_v29 = vmin.f32 %v4139_v26, 128.0  ;;  %v4113_v51 = vadd.f32 %v7112_v16, %v7105_v8  ;;  %v3642_v42 = vmul.f32 %v6660_v10, %v6912_v3 }
 0x34b   : > { %v7115_v58 = vpop.permute.xlu0 %3984 }
 0x34c   : > { %v4160_v48 = vmin.f32 %v4136_v45, 128.0  ;;  %v4118_v0 = vadd.f32 %v7115_v58, %v7110_v15  ;;  %v4137_v28 = vmax.f32 %v4113_v51, 0.0  ;;  %4218 = vrot.lane.b32.xlu1 %v4163_v29, %s5636_s28 }
 0x34d   : > { %v7133_v45 = vpop.permute.xlu1 %3986 }
 0x34e   : > { %v4142_v26 = vmax.f32 %v4118_v0, 0.0  ;;  %4212 = vrot.lane.b32.xlu0 %v4160_v48, %s5636_s28  ;;  %v4161_v19 = vmin.f32 %v4137_v28, 128.0  ;;  %v4119_v43 = vadd.f32 %v7133_v45, %v7128_v25  ;;  %v7153_v48 = vadd.f32 %v6994_v13, %v3637_v63 }
 0x34f   : > { %v7139_v56 = vpop.permute.xlu0 %3980  ;;  %v3640_v0 = vmul.f32 %v6654_v11, %v6916_v40  ;;  %v7158_v28 = vadd.f32 %v7004_v59, %v3642_v42  ;;  %v3641_v42 = vmul.f32 %v6662_v53, %v6926_v6 }
 0x350   : > { %v4166_v29 = vmin.f32 %v4142_v26, 128.0  ;;  %v4116_v51 = vadd.f32 %v7139_v56, %v7137_v50  ;;  %v4143_v33 = vmax.f32 %v4119_v43, 0.0  ;;  %4214 = vrot.lane.b32.xlu1 %v4161_v19, %s5636_s28  ;;  %v7176_v43 = vadd.f32 %v7006_v5, %v3643_v22 }
 0x351   : > { %v7160_v10 = vpop.permute.xlu1 %3982  ;;  %v7185_v11 = vadd.f32 %v7000_v1, %v3640_v0  ;;  %v3647_v1 = vmul.f32 %v6834_v21, %v6946_v36 }
 0x352   : > { %v4140_v26 = vmax.f32 %v4116_v51, 0.0  ;;  %4224 = vrot.lane.b32.xlu0 %v4166_v29, %s5636_s28  ;;  %v4167_v7 = vmin.f32 %v4143_v33, 128.0  ;;  %v4117_v13 = vadd.f32 %v7160_v10, %v7153_v48  ;;  %v3646_v51 = vmul.f32 %v6832_v61, %v6935_v52 }
 0x353   : > { %v7163_v27 = vpop.permute.xlu0 %3992 }
 0x354   : > { %v4164_v63 = vmin.f32 %v4140_v26, 128.0  ;;  %v4122_v59 = vadd.f32 %v7163_v27, %v7158_v28  ;;  %v4141_v29 = vmax.f32 %v4117_v13, 0.0  ;;  %4226 = vrot.lane.b32.xlu1 %v4167_v7, %s5636_s28 }
 0x355   : > { %v7181_v26 = vpop.permute.xlu1 %3994 }
 0x356   : > { %v4146_v33 = vmax.f32 %v4122_v59, 0.0  ;;  %4220 = vrot.lane.b32.xlu0 %v4164_v63, %s5636_s28  ;;  %v4165_v53 = vmin.f32 %v4141_v29, 128.0  ;;  %v4123_v22 = vadd.f32 %v7181_v26, %v7176_v43  ;;  %v7201_v63 = vadd.f32 %v7002_v4, %v3641_v42 }
 0x357   : > { %v7187_v19 = vpop.permute.xlu0 %3988  ;;  %v3644_v59 = vmul.f32 %v6665_v37, %v6939_v55  ;;  %v7206_v29 = vadd.f32 %v7012_v47, %v3646_v51  ;;  %v7672_v51 = vld [vmem:[#allocation23_spill] sm:$0xff]  ;;  %v7676_v55 = vld [vmem:[#allocation8_spill] sm:$0xff] }
 0x358   : > { %v4170_v7 = vmin.f32 %v4146_v33, 128.0  ;;  %v4120_v13 = vadd.f32 %v7187_v19, %v7185_v11  ;;  %v4147_v0 = vmax.f32 %v4123_v22, 0.0  ;;  %4222 = vrot.lane.b32.xlu1 %v4165_v53, %s5636_s28  ;;  %v7673_v22 = vld [vmem:[#allocation7_spill] sm:$0xff]  ;;  %v7675_v53 = vld [vmem:[#allocation25_spill] sm:$0xff]  ;;  %v7678_v37 = vld [vmem:[#allocation28_spill] sm:$0xff] }
 0x359   : > { %v7208_v61 = vpop.permute.xlu1 %3990  ;;  %v3648_v36 = vmul.f32 %v7676_v55, %v7675_v53  ;;  %v7233_v6 = vadd.f32 %v7678_v37, %v3644_v59 }
 0x35a   : > { %v4144_v33 = vmax.f32 %v4120_v13, 0.0  ;;  %4232 = vrot.lane.b32.xlu0 %v4170_v7, %s5636_s28  ;;  %v4171_v21 = vmin.f32 %v4147_v0, 128.0  ;;  %v4121_v4 = vadd.f32 %v7208_v61, %v7201_v63  ;;  %v3645_v13 = vmul.f32 %v7673_v22, %v7672_v51  ;;  %v7674_v7 = vld [vmem:[#allocation30_spill] sm:$0xff] }
 0x35b   : > { %v7211_v5 = vpop.permute.xlu0 %4000  ;;  %v7224_v24 = vadd.f32 %v7674_v7, %v3647_v1  ;;  %v7681_v7 = vld [vmem:[#allocation9_spill] sm:$0xff]  ;;  %v7683_v1 = vld [vmem:[#allocation24_spill] sm:$0xff]  ;;  %v7684_v51 = vld [vmem:[#allocation10_spill] sm:$0xff]  ;;  %v7257_v55 = vadd.f32 %v7016_v35, %v3648_v36 }
 0x35c   : > { %v4168_v42 = vmin.f32 %v4144_v33, 128.0  ;;  %v4126_v47 = vadd.f32 %v7211_v5, %v7206_v29  ;;  %v4145_v0 = vmax.f32 %v4121_v4, 0.0  ;;  %4234 = vrot.lane.b32.xlu1 %v4171_v21, %s5636_s28  ;;  %v3650_v9 = vmul.f32 %v7684_v51, %v7683_v1 }
 0x35d   : > { %v7229_v33 = vpop.permute.xlu1 %4002 }
 0x35e   : > { %v4150_v52 = vmax.f32 %v4126_v47, 0.0  ;;  %7677 = vst [vmem:[#allocation7_spill] sm:$0xff] %v7229_v33  ;;  %4228 = vrot.lane.b32.xlu0 %v4168_v42, %s5636_s28  ;;  %v4169_v22 = vmin.f32 %v4145_v0, 128.0  ;;  %v4127_v21 = vadd.f32 %v7229_v33, %v7224_v24  ;;  %v7680_v42 = vld [vmem:[#allocation27_spill] sm:$0xff]  ;;  %v7682_v0 = vld [vmem:[#allocation29_spill] sm:$0xff]  ;;  %v7276_v1 = vadd.f32 %v7022_v57, %v3650_v9  ;;  %v7689_v9 = vld [vmem:[#allocation32_spill] sm:$0xff] }
 0x35f   : > { %v7235_v40 = vpop.permute.xlu0 %3996  ;;  %v3649_v59 = vmul.f32 %v7681_v7, %v7680_v42  ;;  %v7249_v53 = vadd.f32 %v7682_v0, %v3645_v13  ;;  %v7687_v0 = vld [vmem:[#allocation11_spill] sm:$0xff] }
 0x360   : > { %7679 = vst [vmem:[#allocation30_spill] sm:$0xff] %v7235_v40  ;;  %v4174_v4 = vmin.f32 %v4150_v52, 128.0  ;;  %v4124_v47 = vadd.f32 %v7235_v40, %v7233_v6  ;;  %v4151_v37 = vmax.f32 %v4127_v21, 0.0  ;;  %4230 = vrot.lane.b32.xlu1 %v4169_v22, %s5636_s28 }
 0x361   : > { %v7253_v52 = vpop.permute.xlu1 %3998 }
 0x362   : > { %v4148_v33 = vmax.f32 %v4124_v47, 0.0  ;;  %4240 = vrot.lane.b32.xlu0 %v4174_v4, %s5636_s28  ;;  %v4175_v40 = vmin.f32 %v4151_v37, 128.0  ;;  %v4125_v22 = vadd.f32 %v7253_v52, %v7249_v53  ;;  %v7686_v4 = vld [vmem:[#allocation26_spill] sm:$0xff]  ;;  %v7688_v37 = vld [vmem:[#allocation31_spill] sm:$0xff] }
 0x363   : > { %v3651_v36 = vmul.f32 %v7687_v0, %v7686_v4  ;;  %v7273_v21 = vadd.f32 %v7688_v37, %v3649_v59 }
 0x364   : > { %v7263_v13 = vpop.permute.xlu0 %4004  ;;  %v4172_v7 = vmin.f32 %v4148_v33, 128.0  ;;  %v4149_v35 = vmax.f32 %v4125_v22, 0.0  ;;  %4242 = vrot.lane.b32.xlu1 %v4175_v40, %s5636_s28 }
 0x365   : > { %7685 = vst [vmem:[#allocation8_spill] sm:$0xff] %v7263_v13  ;;  %v4128_v47 = vadd.f32 %v7263_v13, %v7257_v55  ;;  %v7290_v57 = vadd.f32 %v7689_v9, %v3651_v36 }
 0x366   : > { %v7278_v33 = vpop.permute.xlu1 %4006  ;;  %4236 = vrot.lane.b32.xlu0 %v4172_v7, %s5636_s28  ;;  %v4173_v51 = vmin.f32 %v4149_v35, 128.0 }
 0x367   : > { %v4152_v42 = vmax.f32 %v4128_v47, 0.0  ;;  %v4129_v22 = vadd.f32 %v7278_v33, %v7273_v21 }
 0x368   : > { %v7285_v0 = vpop.permute.xlu0 %4008  ;;  %4238 = vrot.lane.b32.xlu1 %v4173_v51, %s5636_s28  ;;  %v7690_v51 = vld [vmem:[#allocation33_spill] sm:$0xff] }
 0x369   : > { %v4176_v40 = vmin.f32 %v4152_v42, 128.0  ;;  %v4130_v59 = vadd.f32 %v7285_v0, %v7276_v1  ;;  %v4153_v47 = vmax.f32 %v4129_v22, 0.0  ;;  %v7691_v22 = vsub.f32 %v7024_v17, %v7690_v51  ;;  %v7696_v51 = vld [vmem:[#allocation12_spill] sm:$0xff] }
 0x36a   : > { %v7293_v35 = vpop.permute.xlu1 %4010  ;;  %v7695_v17 = vsub.f32 %v7065_v12, %v7069_v20 }
 0x36b   : > { %v4154_v7 = vmax.f32 %v4130_v59, 0.0  ;;  %4244 = vrot.lane.b32.xlu0 %v4176_v40, %s5636_s28  ;;  %v4177_v37 = vmin.f32 %v4153_v47, 128.0  ;;  %v4131_v13 = vadd.f32 %v7293_v35, %v7290_v57  ;;  %v4062_v59 = vmax.f32 %v7691_v22, 0.0 }
 0x36c   : > { %v7692_v40 = vsub.f32 %v7040_v39, %v7044_v38  ;;  %v7698_v38 = vsub.f32 %v7089_v49, %v7091_v14 }
 0x36d   : > { %v4178_v42 = vmin.f32 %v4154_v7, 128.0  ;;  %v4155_v4 = vmax.f32 %v4131_v13, 0.0  ;;  %4246 = vrot.lane.b32.xlu1 %v4177_v37, %s5636_s28  ;;  %v4086_v9 = vmin.f32 %v4062_v59, 128.0  ;;  %v7693_v13 = vsub.f32 %v7046_v34, %v7048_v18 }
 0x36e   : > { %v4063_v47 = vmax.f32 %v7692_v40, 0.0  ;;  %v7697_v18 = vsub.f32 %v7081_v46, %v7086_v2  ;;  %v4064_v20 = vmax.f32 %v7698_v38, 0.0 }
 0x36f   : > { %4248 = vrot.lane.b32.xlu0 %v4178_v42, %s5636_s28  ;;  %v4179_v36 = vmin.f32 %v4155_v4, 128.0  ;;  %v4060_v7 = vmax.f32 %v7693_v13, 0.0  ;;  %v7694_v4 = vsub.f32 %v7060_v30, %v7067_v23  ;;  %v4279_v22 = vsel %vm4276_vm4, %v7696_v51, %v4086_v9 }
 0x370   : > { %v4087_v42 = vmin.f32 %v4063_v47, 128.0  ;;  %v4067_v23 = vmax.f32 %v7697_v18, 0.0  ;;  %v4304_v30 = vsel %vm4301_vm5, %v4279_v22, %v4086_v9  ;;  %v7699_v47 = vld [vmem:[#allocation14_spill] sm:$0xff]  ;;  %v7701_v9 = vld [vmem:[#allocation15_spill] sm:$0xff]  ;;  %v7702_v51 = vsub.f32 %v7105_v8, %v7112_v16 }
 0x371   : > { %4250 = vrot.lane.b32.xlu1 %v4179_v36, %s5636_s28  ;;  %v4061_v37 = vmax.f32 %v7694_v4, 0.0  ;;  %v4066_v36 = vmax.f32 %v7695_v17, 0.0  ;;  %s5341_s28 = smul.u32 192, %s338_s22  ;;  %v4084_v39 = vmin.f32 %v4060_v7, 128.0  ;;  %v7700_v4 = vld [vmem:[#allocation13_spill] sm:$0xff]  ;;  %v4088_v17 = vmin.f32 %v4064_v20, 128.0 }
 0x372   : > { %v4280_v13 = vsel %vm4276_vm4, %v7699_v47, %v4087_v42  ;;  %v4091_v2 = vmin.f32 %v4067_v23, 128.0  ;;  %v4065_v22 = vmax.f32 %v7702_v51, 0.0  ;;  %v7703_v20 = vld [vmem:[#allocation16_spill] sm:$0xff] }
 0x373   : > { %v4085_v34 = vmin.f32 %v4061_v37, 128.0  ;;  %v4090_v59 = vmin.f32 %v4066_v36, 128.0  ;;  %v4277_v37 = vsel %vm4276_vm4, %v7700_v4, %v4084_v39  ;;  %s7335_s23 = scalar_lea.vmem [#allocation3], %s5341_s28  ;;  %v4305_v14 = vsel %vm4301_vm5, %v4280_v13, %v4087_v42 }
 0x374   : > { %v4302_v23 = vsel %vm4301_vm5, %v4277_v37, %v4084_v39  ;;  %v4089_v37 = vmin.f32 %v4065_v22, 128.0  ;;  %s4441_s11 = sshll.u32 %s7335_s23, 4  ;;  %s7549_s11 = int_to_ptr.vmem [resolvable:$true] %s4441_s11 }
 0x375   : > { %v4278_v36 = vsel %vm4276_vm4, %v7701_v9, %v4085_v34  ;;  %s5540_s18 = scalar_lea.vmem %s7549_s11, 3072  ;;  %p5547_p4 = scmp.lt.s32.totalorder %s7549_s11, %s5545_s27 }
 0x376   : > { %v4303_v13 = vsel %vm4301_vm5, %v4278_v36, %v4085_v34  ;;  %v7706_v34 = vsub.f32 %v7137_v50, %v7139_v56  ;;  %p5541_p1 = scmp.ne.s32.totalorder %s7549_s11, %s5540_s18  ;;  %p5548_p6 = scmp.lt.s32.totalorder %s5546_s20, %s5540_s18 }
 0x378   : > { %p5542_p2 = pnand %p5541_p1, %p5736_p5  ;;  %p5549_p8 = por %p5548_p6, %p5547_p4 }
 0x37a   : > { %p5543_p3 = pneg %p5542_p2 }
 0x37c   : > { %p5550_p9 = pnand %p5549_p8, %p5543_p3 }
 0x3b4   : > { %v4209_v12 = vpop.permute.xlu0 %4208 }
 0x3b5   : > { %v4329_v40 = vsel %vm4326_vm6, %v4304_v30, %v4209_v12  ;;  %v4283_v30 = vsel %vm4276_vm4, %v7703_v20, %v4090_v59 }
 0x3b6   : > { %v4354_v7 = vsel %vm4351_vm7, %v4329_v40, %v4209_v12  ;;  %v4211_v49 = vpop.permute.xlu1 %4210  ;;  %v7704_v12 = vsub.f32 %v7110_v15, %v7115_v58  ;;  %v4308_v4 = vsel %vm4301_vm5, %v4283_v30, %v4090_v59  ;;  %v4284_v58 = vsel %vm4276_vm4, %v6879_v31, %v4091_v2 }
 0x3b7   : > { %v4379_v46 = vsel %vm4376_vm8, %v4354_v7, 0.0  ;;  %v4330_v18 = vsel %vm4326_vm6, %v4305_v14, %v4211_v49  ;;  %v4281_v15 = vsel %vm4276_vm4, %v6873_v62, %v4088_v17  ;;  %v4309_v50 = vsel %vm4301_vm5, %v4284_v58, %v4091_v2 }
 0x3b8   : > { %4403 = vst [vmem:[%s7335_s23 + $0x10] sm:$0xff] %v4379_v46  ;;  %v4205_v38 = vpop.permute.xlu0 %4204  ;;  %v4070_v42 = vmax.f32 %v7704_v12, 0.0  ;;  %v4355_v40 = vsel %vm4351_vm7, %v4330_v18, %v4211_v49  ;;  %v7705_v46 = vsub.f32 %v7128_v25, %v7133_v45  ;;  %v4068_v49 = vmax.f32 %v7706_v34, 0.0 }
 0x3b9   : > { %v4327_v47 = vsel %vm4326_vm6, %v4302_v23, %v4205_v38  ;;  %v4380_v8 = vsel %vm4376_vm8, %v4355_v40, 0.0  ;;  %v7707_v25 = vsub.f32 %v7153_v48, %v7160_v10  ;;  %v4306_v23 = vsel %vm4301_vm5, %v4281_v15, %v4088_v17 }
 0x3ba   : > { %v4352_v16 = vsel %vm4351_vm7, %v4327_v47, %v4205_v38  ;;  %4404 = vst [vmem:[%s7335_s23 + $0x18] sm:$0xff] %v4380_v8  ;;  %v4207_v7 = vpop.permute.xlu1 %4206  ;;  %v4071_v14 = vmax.f32 %v7705_v46, 0.0  ;;  %v4094_v36 = vmin.f32 %v4070_v42, 128.0  ;;  %v4092_v20 = vmin.f32 %v4068_v49, 128.0 }
 0x3bb   : > { %v4377_v39 = vsel %vm4376_vm8, %v4352_v16, 0.0  ;;  %v4328_v9 = vsel %vm4326_vm6, %v4303_v13, %v4207_v7  ;;  %v4069_v45 = vmax.f32 %v7707_v25, 0.0  ;;  %v4282_v10 = vsel %vm4276_vm4, %v6883_v60, %v4089_v37 }
 0x3bc   : > { %4401 = vst [vmem:[%s7335_s23] sm:$0xff] %v4377_v39  ;;  %v4217_v59 = vpop.permute.xlu0 %4216  ;;  %v4353_v31 = vsel %vm4351_vm7, %v4328_v9, %v4207_v7  ;;  %v4095_v38 = vmin.f32 %v4071_v14, 128.0  ;;  %v7708_v48 = vsub.f32 %v7158_v28, %v7163_v27  ;;  %v4287_v17 = vsel %vm4276_vm4, %v6890_v41, %v4094_v36 }
 0x3bd   : > { %v4333_v51 = vsel %vm4326_vm6, %v4308_v4, %v4217_v59  ;;  %v4378_v62 = vsel %vm4376_vm8, %v4353_v31, 0.0  ;;  %v7709_v47 = vsub.f32 %v7176_v43, %v7181_v26  ;;  %v4093_v60 = vmin.f32 %v4069_v45, 128.0 }
 0x3be   : > { %v4358_v22 = vsel %vm4351_vm7, %v4333_v51, %v4217_v59  ;;  %4402 = vst [vmem:[%s7335_s23 + $0x8] sm:$0xff] %v4378_v62  ;;  %v4219_v18 = vpop.permute.xlu1 %4218  ;;  %v4074_v42 = vmax.f32 %v7708_v48, 0.0  ;;  %v4307_v28 = vsel %vm4301_vm5, %v4282_v10, %v4089_v37  ;;  %v4312_v41 = vsel %vm4301_vm5, %v4287_v17, %v4094_v36 }
 0x3bf   : > { %v4383_v56 = vsel %vm4376_vm8, %v4358_v22, 0.0  ;;  %v4334_v30 = vsel %vm4326_vm6, %v4309_v50, %v4219_v18  ;;  %v4075_v8 = vmax.f32 %v7709_v47, 0.0  ;;  %v4288_v43 = vsel %vm4276_vm4, %v6897_v54, %v4095_v38  ;;  %v7713_v50 = vld [vmem:[#allocation18_spill] sm:$0xff] }
 0x3c0   : > { %4407 = vst [vmem:[%s7335_s23 + $0x30] sm:$0xff] %v4383_v56  ;;  %v4213_v12 = vpop.permute.xlu0 %4212  ;;  %v4359_v2 = vsel %vm4351_vm7, %v4334_v30, %v4219_v18  ;;  %v4285_v26 = vsel %vm4276_vm4, %v6893_v32, %v4092_v20  ;;  %v4098_v58 = vmin.f32 %v4074_v42, 128.0  ;;  %v7710_v15 = vsub.f32 %v7185_v11, %v7187_v19 }
 0x3c1   : > { %v4331_v40 = vsel %vm4326_vm6, %v4306_v23, %v4213_v12  ;;  %v4384_v16 = vsel %vm4376_vm8, %v4359_v2, 0.0  ;;  %v4099_v34 = vmin.f32 %v4075_v8, 128.0  ;;  %v7711_v54 = vsub.f32 %v7201_v63, %v7208_v61 }
 0x3c2   : > { %v4356_v13 = vsel %vm4351_vm7, %v4331_v40, %v4213_v12  ;;  %4408 = vst [vmem:[%s7335_s23 + $0x38] sm:$0xff] %v4384_v16  ;;  %v4215_v39 = vpop.permute.xlu1 %4214  ;;  %v4072_v37 = vmax.f32 %v7710_v15, 0.0  ;;  %v4313_v36 = vsel %vm4301_vm5, %v4288_v43, %v4095_v38  ;;  %v4286_v11 = vsel %vm4276_vm4, %v6903_v44, %v4093_v60  ;;  %v7714_v38 = vld [vmem:[#allocation7_spill] sm:$0xff]  ;;  %v7716_v12 = vld [vmem:[#allocation30_spill] sm:$0xff]  ;;  %v7718_v16 = vld [vmem:[#allocation17_spill] sm:$0xff] }
 0x3c3   : > { %v4381_v27 = vsel %vm4376_vm8, %v4356_v13, 0.0  ;;  %v4332_v7 = vsel %vm4326_vm6, %v4307_v28, %v4215_v39  ;;  %v4073_v59 = vmax.f32 %v7711_v54, 0.0  ;;  %v7712_v31 = vsub.f32 %v7206_v29, %v7211_v5 }
 0x3c4   : > { %4405 = vst [vmem:[%s7335_s23 + $0x20] sm:$0xff] %v4381_v27  ;;  %v4225_v4 = vpop.permute.xlu0 %4224  ;;  %v4357_v46 = vsel %vm4351_vm7, %v4332_v7, %v4215_v39  ;;  %v4310_v61 = vsel %vm4301_vm5, %v4285_v26, %v4092_v20  ;;  %v4096_v22 = vmin.f32 %v4072_v37, 128.0  ;;  %v4291_v44 = vsel %vm4276_vm4, %v6912_v3, %v4098_v58 }
 0x3c5   : > { %v4337_v14 = vsel %vm4326_vm6, %v4312_v41, %v4225_v4  ;;  %v4382_v49 = vsel %vm4376_vm8, %v4357_v46, 0.0  ;;  %v4078_v51 = vmax.f32 %v7712_v31, 0.0  ;;  %v4311_v29 = vsel %vm4301_vm5, %v4286_v11, %v4093_v60 }
 0x3c6   : > { %v4362_v9 = vsel %vm4351_vm7, %v4337_v14, %v4225_v4  ;;  %4406 = vst [vmem:[%s7335_s23 + $0x28] sm:$0xff] %v4382_v49  ;;  %v4227_v19 = vpop.permute.xlu1 %4226  ;;  %v4292_v18 = vsel %vm4276_vm4, %v7713_v50, %v4099_v34  ;;  %v4097_v23 = vmin.f32 %v4073_v59, 128.0  ;;  %v7715_v20 = vsub.f32 %v7224_v24, %v7714_v38  ;;  %v7719_v4 = vld [vmem:[#allocation19_spill] sm:$0xff]  ;;  %v7721_v14 = vld [vmem:[#allocation20_spill] sm:$0xff] }
 0x3c7   : > { %v4387_v32 = vsel %vm4376_vm8, %v4362_v9, 0.0  ;;  %v4338_v62 = vsel %vm4326_vm6, %v4313_v36, %v4227_v19  ;;  %v7717_v10 = vsub.f32 %v7233_v6, %v7716_v12  ;;  %v4102_v2 = vmin.f32 %v4078_v51, 128.0  ;;  %v7722_v49 = vld [vmem:[#allocation8_spill] sm:$0xff]  ;;  %v7724_v51 = vld [vmem:[#allocation22_spill] sm:$0xff] }
 0x3c8   : > { %4411 = vst [vmem:[%s7335_s23 + $0x50] sm:$0xff] %v4387_v32  ;;  %v4221_v63 = vpop.permute.xlu0 %4220  ;;  %v4363_v25 = vsel %vm4351_vm7, %v4338_v62, %v4227_v19  ;;  %v4079_v30 = vmax.f32 %v7715_v20, 0.0  ;;  %v4316_v17 = vsel %vm4301_vm5, %v4291_v44, %v4098_v58  ;;  %v4289_v6 = vsel %vm4276_vm4, %v7718_v16, %v4096_v22 }
 0x3c9   : > { %v4335_v45 = vsel %vm4326_vm6, %v4310_v61, %v4221_v63  ;;  %v4388_v56 = vsel %vm4376_vm8, %v4363_v25, 0.0  ;;  %v4076_v48 = vmax.f32 %v7717_v10, 0.0  ;;  %v4317_v27 = vsel %vm4301_vm5, %v4292_v18, %v4099_v34  ;;  %v7727_v10 = vld [vmem:[#allocation23_spill] sm:$0xff] }
 0x3ca   : > { %v4360_v5 = vsel %vm4351_vm7, %v4335_v45, %v4221_v63  ;;  %4412 = vst [vmem:[%s7335_s23 + $0x58] sm:$0xff] %v4388_v56  ;;  %v4223_v42 = vpop.permute.xlu1 %4222  ;;  %v4103_v28 = vmin.f32 %v4079_v30, 128.0  ;;  %v4290_v43 = vsel %vm4276_vm4, %v7719_v4, %v4097_v23  ;;  %v7720_v26 = vsub.f32 %v7249_v53, %v7253_v52 }
 0x3cb   : > { %v4385_v3 = vsel %vm4376_vm8, %v4360_v5, 0.0  ;;  %v4336_v40 = vsel %vm4326_vm6, %v4311_v29, %v4223_v42  ;;  %v4100_v39 = vmin.f32 %v4076_v48, 128.0  ;;  %v4314_v37 = vsel %vm4301_vm5, %v4289_v6, %v4096_v22 }
 0x3cc   : > { %4409 = vst [vmem:[%s7335_s23 + $0x40] sm:$0xff] %v4385_v3  ;;  %v4233_v47 = vpop.permute.xlu0 %4232  ;;  %v4361_v24 = vsel %vm4351_vm7, %v4336_v40, %v4223_v42  ;;  %v4077_v58 = vmax.f32 %v7720_v26, 0.0  ;;  %v4295_v34 = vsel %vm4276_vm4, %v7721_v14, %v4102_v2  ;;  %v7723_v9 = vsub.f32 %v7257_v55, %v7722_v49  ;;  %v7728_v40 = vld [vmem:[#allocation25_spill] sm:$0xff] }
 0x3cd   : > { %v4341_v8 = vsel %vm4326_vm6, %v4316_v17, %v4233_v47  ;;  %v4386_v13 = vsel %vm4376_vm8, %v4361_v24, 0.0  ;;  %v4058_v59 = vsub.f32 %v7276_v1, %v7285_v0  ;;  %v4315_v19 = vsel %vm4301_vm5, %v4290_v43, %v4097_v23  ;;  %v7725_v0 = vld [vmem:[#allocation21_spill] sm:$0xff]  ;;  %v7730_v43 = vld [vmem:[#allocation24_spill] sm:$0xff] }
 0x3ce   : > { %v4366_v60 = vsel %vm4351_vm7, %v4341_v8, %v4233_v47  ;;  %4410 = vst [vmem:[%s7335_s23 + $0x48] sm:$0xff] %v4386_v13  ;;  %v4235_v41 = vpop.permute.xlu1 %4234  ;;  %v4080_v54 = vmax.f32 %v7723_v9, 0.0  ;;  %v4320_v55 = vsel %vm4301_vm5, %v4295_v34, %v4102_v2  ;;  %v4296_v1 = vsel %vm4276_vm4, %v7724_v51, %v4103_v28 }
 0x3cf   : > { %v4391_v7 = vsel %vm4376_vm8, %v4366_v60, 0.0  ;;  %v4342_v15 = vsel %vm4326_vm6, %v4317_v27, %v4235_v41  ;;  %v4293_v62 = vsel %vm4276_vm4, %v7725_v0, %v4100_v39  ;;  %v4101_v61 = vmin.f32 %v4077_v58, 128.0 }
 0x3d0   : > { %4415 = vst [vmem:[%s7335_s23 + $0x70] sm:$0xff] %v4391_v7  ;;  %v4229_v46 = vpop.permute.xlu0 %4228  ;;  %v4367_v53 = vsel %vm4351_vm7, %v4342_v15, %v4235_v41  ;;  %v7726_v63 = vsub.f32 %v7273_v21, %v7278_v33  ;;  %v4059_v25 = vsub.f32 %v7290_v57, %v7293_v35  ;;  %v4104_v56 = vmin.f32 %v4080_v54, 128.0  ;;  %v7731_v54 = vld [vmem:[#allocation26_spill] sm:$0xff] }
 0x3d1   : > { %v4339_v52 = vsel %vm4326_vm6, %v4314_v37, %v4229_v46  ;;  %v4392_v32 = vsel %vm4376_vm8, %v4367_v53, 0.0  ;;  %v4082_v5 = vmax.f32 %v4058_v59, 0.0  ;;  %v4321_v33 = vsel %vm4301_vm5, %v4296_v1, %v4103_v28 }
 0x3d2   : > { %v4364_v36 = vsel %vm4351_vm7, %v4339_v52, %v4229_v46  ;;  %4416 = vst [vmem:[%s7335_s23 + $0x78] sm:$0xff] %v4392_v32  ;;  %v4231_v31 = vpop.permute.xlu1 %4230  ;;  %v4081_v22 = vmax.f32 %v7726_v63, 0.0  ;;  %v4318_v35 = vsel %vm4301_vm5, %v4293_v62, %v4100_v39  ;;  %v4083_v20 = vmax.f32 %v4059_v25, 0.0  ;;  %v7729_v39 = vld [vmem:[#allocation27_spill] sm:$0xff] }
 0x3d3   : > { %v4389_v11 = vsel %vm4376_vm8, %v4364_v36, 0.0  ;;  %v4340_v45 = vsel %vm4326_vm6, %v4315_v19, %v4231_v31  ;;  %v4294_v48 = vsel %vm4276_vm4, %v7727_v10, %v4101_v61  ;;  %v4106_v3 = vmin.f32 %v4082_v5, 128.0 }
 0x3d4   : > { %4413 = vst [vmem:[%s7335_s23 + $0x60] sm:$0xff] %v4389_v11  ;;  %v4241_v44 = vpop.permute.xlu0 %4240  ;;  %v4365_v29 = vsel %vm4351_vm7, %v4340_v45, %v4231_v31  ;;  %v4105_v38 = vmin.f32 %v4081_v22, 128.0  ;;  %v4297_v17 = vsel %vm4276_vm4, %v7728_v40, %v4104_v56  ;;  %v4319_v16 = vsel %vm4301_vm5, %v4294_v48, %v4101_v61 }
 0x3d5   : > { %v4345_v50 = vsel %vm4326_vm6, %v4320_v55, %v4241_v44  ;;  %v4390_v18 = vsel %vm4376_vm8, %v4365_v29, 0.0  ;;  %v4107_v13 = vmin.f32 %v4083_v20, 128.0  ;;  %v4322_v27 = vsel %vm4301_vm5, %v4297_v17, %v4104_v56 }
 0x3d6   : > { %v4370_v23 = vsel %vm4351_vm7, %v4345_v50, %v4241_v44  ;;  %4414 = vst [vmem:[%s7335_s23 + $0x68] sm:$0xff] %v4390_v18  ;;  %v4243_v57 = vpop.permute.xlu1 %4242  ;;  %v4298_v7 = vsel %vm4276_vm4, %v7729_v39, %v4105_v38  ;;  %v4299_v26 = vsel %vm4276_vm4, %v7730_v43, %v4106_v3 }
 0x3d7   : > { %v4395_v21 = vsel %vm4376_vm8, %v4370_v23, 0.0  ;;  %v4346_v30 = vsel %vm4326_vm6, %v4321_v33, %v4243_v57  ;;  %v4323_v46 = vsel %vm4301_vm5, %v4298_v7, %v4105_v38  ;;  %v4324_v49 = vsel %vm4301_vm5, %v4299_v26, %v4106_v3 }
 0x3d8   : > { %4419 = vst [vmem:[%s7335_s23 + $0x90] sm:$0xff] %v4395_v21  ;;  %v4237_v12 = vpop.permute.xlu0 %4236  ;;  %v4371_v42 = vsel %vm4351_vm7, %v4346_v30, %v4243_v57  ;;  %v4300_v59 = vsel %vm4276_vm4, %v7731_v54, %v4107_v13 }
 0x3d9   : > { %v4343_v2 = vsel %vm4326_vm6, %v4318_v35, %v4237_v12  ;;  %v4396_v47 = vsel %vm4376_vm8, %v4371_v42, 0.0  ;;  %v4325_v11 = vsel %vm4301_vm5, %v4300_v59, %v4107_v13 }
 0x3da   : > { %v4368_v24 = vsel %vm4351_vm7, %v4343_v2, %v4237_v12  ;;  %4420 = vst [vmem:[%s7335_s23 + $0x98] sm:$0xff] %v4396_v47  ;;  %v4239_v6 = vpop.permute.xlu1 %4238 }
 0x3db   : > { %v4393_v8 = vsel %vm4376_vm8, %v4368_v24, 0.0  ;;  %v4344_v60 = vsel %vm4326_vm6, %v4319_v16, %v4239_v6 }
 0x3dc   : > { %4417 = vst [vmem:[%s7335_s23 + $0x80] sm:$0xff] %v4393_v8  ;;  %v4369_v41 = vsel %vm4351_vm7, %v4344_v60, %v4239_v6 }
 0x3dd   : > { %v4245_v28 = vpop.permute.xlu0 %4244  ;;  %v4394_v58 = vsel %vm4376_vm8, %v4369_v41, 0.0 }
 0x3de   : > { %v4347_v4 = vsel %vm4326_vm6, %v4322_v27, %v4245_v28  ;;  %4418 = vst [vmem:[%s7335_s23 + $0x88] sm:$0xff] %v4394_v58 }
 0x3df   : > { %v4372_v15 = vsel %vm4351_vm7, %v4347_v4, %v4245_v28  ;;  %v4247_v14 = vpop.permute.xlu1 %4246 }
 0x3e0   : > { %v4397_v37 = vsel %vm4376_vm8, %v4372_v15, 0.0  ;;  %v4348_v34 = vsel %vm4326_vm6, %v4323_v46, %v4247_v14 }
 0x3e1   : > { %4421 = vst [vmem:[%s7335_s23 + $0xa0] sm:$0xff] %v4397_v37  ;;  %v4249_v9 = vpop.permute.xlu0 %4248  ;;  %v4373_v53 = vsel %vm4351_vm7, %v4348_v34, %v4247_v14 }
 0x3e2   : > { %v4349_v52 = vsel %vm4326_vm6, %v4324_v49, %v4249_v9  ;;  %v4398_v32 = vsel %vm4376_vm8, %v4373_v53, 0.0 }
 0x3e3   : > { %v4374_v36 = vsel %vm4351_vm7, %v4349_v52, %v4249_v9  ;;  %4422 = vst [vmem:[%s7335_s23 + $0xa8] sm:$0xff] %v4398_v32  ;;  %v4251_v31 = vpop.permute.xlu1 %4250 }
 0x3e4   : > { %v4399_v19 = vsel %vm4376_vm8, %v4374_v36, 0.0  ;;  %v4350_v55 = vsel %vm4326_vm6, %v4325_v11, %v4251_v31 }
 0x3e5   : > { %4423 = vst [vmem:[%s7335_s23 + $0xb0] sm:$0xff] %v4399_v19  ;;  %v4375_v51 = vsel %vm4351_vm7, %v4350_v55, %v4251_v31 }
 0x3e6   : > { %v4400_v1 = vsel %vm4376_vm8, %v4375_v51, 0.0 }
 0x3e7   : > { %4424 = vst [vmem:[%s7335_s23 + $0xb8] sm:$0xff] %v4400_v1 }
 0x3e8   : > { %5553 = shalt.err (!%p5550_p9)
}
 0x3e9   : > { %s5554_s22 = scalar_lea.hbm %s7541_s14, 3072  ;;  %s5558_s9 = scalar_lea.hbm %s7614_s7, 12288 }
 0x3ea   : > { %p5555_p10 = scmp.ne.s32.totalorder %s7541_s14, %s5554_s22  ;;  %p5559_p13 = scmp.lt.u32.totalorder %s7541_s14, %s7614_s7 }
 0x3eb   : > { %p5560_p0 = scmp.lt.u32.totalorder %s5558_s9, %s5554_s22  ;;  %p5562_p2 = scmp.lt.u32.totalorder %s5554_s22, %s7541_s14 }
 0x3ec   : > { %p5556_p11 = pnand %p5555_p10, %p5736_p5 }
 0x3ed   : > { %p5561_p1 = por %p5560_p0, %p5559_p13 }
 0x3ee   : > { %p5557_p12 = pneg %p5556_p11 }
 0x3ef   : > { %p5563_p3 = por %p5562_p2, %p5561_p1 }
 0x3f1   : > { %p5564_p4 = pnand %p5563_p3, %p5557_p12 }
 0x3f3   : > { %5567 = shalt.err (!%p5564_p4)
}
 0x3f4   : > { %s5641_s18 = smov 128   ;;  %s5642_s19 = smov 8  }
 0x3f5   : > { %5342 = dma.vmem_to_hbm [thread:$0]  (%p5736_p5), %s7549_s11, 3072, %s7541_s14, %s7555_s17, %s5641_s18, %s5641_s18, %s5642_s19  }
 0x3f6 PF: > { %p5348_p6 = scmp.ge.s32.totalorder %s5634_s8, 2  ;;  %s4456_s27 = sand.u32 1, %s5606_s24  }
 0x3f7   : > { %s4457_s20 = scalar_lea.sflag [#allocation4], %s4456_s27 }
 0x3f8   : > { %p5345_p8 = pnand %p5348_p6, %p5742_p7 }
 0x3fa   : > { %5601 = dma.done.wait (!%p5345_p8), %s4457_s20, 3072  }
 0x3fb   : > { %5603 = vsyncadd (!%p5345_p8), %s4457_s20, 4294964224  ;;  %s20_s8 = sadd.s32 1, %s5634_s8   ;;  %s7732_s15 = sld [smem:[#allocation6_spill]] }
 0x3fc   : > { %p17_p9 = scmp.ge.s32.totalorder %s20_s8, 6   ;;  %s7733_s24 = smov %s5610_s25 }
 0x3fd   : > { %s7734_s25 = smov %s5614_s26  ;;  %s7735_s26 = smov %s5752_s21 }
 0x3fe   : > { %s7736_s27 = smov %s5626_s29  ;;  %s7737_s28 = smov %s5630_s30 }
 0x3ff   : > { %s7738_s29 = smov %s7741_s10  ;;  %19 = sbr.rel (!%p17_p9) target bundleno = 5 (0x5), region = 89 }
 0x401   : > { %s7739_s30 = smov %s7732_s15 }
 0x406   :  { %4462 = vsyncpa [#allocation4], 1 }
 0x407   :  { %4464 = vsyncpa [#allocation4 + $0x1], 1 }

</bundles_post_ra>
